<compile_context>
chip_gen: v7x
topology: tpu7x:2x2x1
jax: 0.10.0
libtpu: 0.0.40
codegen_flags: <defaults>
</compile_context>

<pallas_src>
import functools
import math

import jax
import jax.numpy as jnp
from jax.experimental import pallas as pl
from jax.experimental.pallas import tpu as pltpu

F32 = jnp.float32
BF16 = jnp.bfloat16
LN_EPS = 1e-5
BN_EPS = 1e-5


# ------------------------------ Pallas kernels ------------------------------

def _encoder_kernel(x_ref, emb_w_ref, emb_b_ref, pos_ref,
                    qkv_w_ref, qkv_b_ref, out_w_ref, out_b_ref,
                    ln1_g_ref, ln1_b_ref, ff1_w_ref, ff1_b_ref,
                    ff2_w_ref, ff2_b_ref, ln2_g_ref, ln2_b_ref,
                    enc_g_ref, enc_b_ref, bn_s_ref, bn_t_ref,
                    fc_w_ref, fc_b_ref, o_ref, *, n_heads):
    """Full TransformerClassifier (encoder + BN(eval) + fc) for one branch."""
    T, H = pos_ref.shape
    BT = x_ref.shape[0]
    B = BT // T
    nh = n_heads
    dh = H // nh
    n_layers = ln1_g_ref.shape[0]
    scale = 1.0 / math.sqrt(dh)

    def layer_norm(y, g, b):
        mu = jnp.mean(y, axis=-1, keepdims=True)
        var = jnp.mean((y - mu) * (y - mu), axis=-1, keepdims=True)
        return (y - mu) * jax.lax.rsqrt(var + LN_EPS) * g + b

    # ---- embedding + positional encoding (broadcast add, no concat) --------
    emb = jnp.dot(x_ref[...].astype(BF16), emb_w_ref[...],
                  preferred_element_type=F32)                      # (B*T, H)
    bias = pos_ref[...] + emb_b_ref[...]                           # (T, H)
    h = (emb.reshape(B, T, H) + bias[None]).reshape(BT, H)

    # ---- post-norm encoder layers (eval-mode dropout = identity) -----------
    for l in range(n_layers):
        # one fused QKV projection matmul per layer
        qkv = jnp.dot(h.astype(BF16), qkv_w_ref[l],
                      preferred_element_type=F32) + qkv_b_ref[l]   # (B*T, 3H)

        head_outs = []
        for hh in range(nh):
            q_h = qkv[:, hh * dh:(hh + 1) * dh].reshape(B, T, dh)
            k_h = qkv[:, H + hh * dh:H + (hh + 1) * dh].reshape(B, T, dh)
            v_h = qkv[:, 2 * H + hh * dh:2 * H + (hh + 1) * dh].reshape(B, T, dh)
            s = jnp.einsum('bqd,bkd->bqk', q_h.astype(BF16), k_h.astype(BF16),
                           preferred_element_type=F32) * scale     # (B, T, T)
            m = jnp.max(s, axis=-1, keepdims=True)
            p = jnp.exp(s - m)
            p = p * pl.reciprocal(jnp.sum(p, axis=-1, keepdims=True),
                                  approx=True)
            o = jnp.einsum('bqk,bkd->bqd', p.astype(BF16), v_h.astype(BF16),
                           preferred_element_type=F32)             # (B, T, dh)
            head_outs.append(o.reshape(BT, dh))

        # single out-proj matmul on the lane-concatenated head outputs
        attn = jnp.concatenate(head_outs, axis=-1)                 # (B*T, H)
        attn = jnp.dot(attn.astype(BF16), out_w_ref[l],
                       preferred_element_type=F32) + out_b_ref[l]
        h1 = layer_norm(h + attn, ln1_g_ref[l], ln1_b_ref[l])

        ff = jnp.dot(h1.astype(BF16), ff1_w_ref[l],
                     preferred_element_type=F32) + ff1_b_ref[l]    # (B*T, FF)
        # f32 ReLU (v5e has no bf16 VALU); bf16 intermediate feeds the ff2 MXU op.
        ff = jnp.maximum(ff, 0.0).astype(BF16)
        ff = jnp.dot(ff, ff2_w_ref[l],
                     preferred_element_type=F32) + ff2_b_ref[l]    # (B*T, H)
        h = layer_norm(h1 + ff, ln2_g_ref[l], ln2_b_ref[l])

    # ---- final encoder LayerNorm (nn.Transformer encoder norm) -------------
    h = layer_norm(h, enc_g_ref[...], enc_b_ref[...])              # (B*T, H)

    # ---- fused branch head: (B, T*H) flatten -> BN(eval) -> fc -------------
    h3 = h.reshape(B, T, H)
    flat = jnp.concatenate([h3[:, t, :] for t in range(T)], axis=-1)  # (B, T*H)
    flat = flat * bn_s_ref[...] + bn_t_ref[...]
    out = jnp.dot(flat.astype(BF16), fc_w_ref[...],
                  preferred_element_type=F32) + fc_b_ref[...]      # (B, H)
    o_ref[...] = out.astype(o_ref.dtype)


def _mix_head_kernel(br_ref, alpha_ref, mbs_ref, mbt_ref, mfw_ref, mfb_ref,
                     o_ref):
    """alpha-mix of branch outputs + combined BatchNorm(eval) + final fc."""
    a = alpha_ref[0, 0]                                            # SMEM scalar
    c = a * br_ref[0] + (1.0 - a) * br_ref[1]                      # (B, H)
    c = c * mbs_ref[...] + mbt_ref[...]
    out = jnp.dot(c.astype(BF16), mfw_ref[...],
                  preferred_element_type=F32) + mfb_ref[...]
    o_ref[...] = out.astype(o_ref.dtype)


# ------------------------------ Forward wrapper ------------------------------

_BRANCH_KEYS = ('emb_w', 'emb_b', 'pos', 'qkv_w', 'qkv_b', 'out_w', 'out_b',
                'ln1_g', 'ln1_b', 'ff1_w', 'ff1_b', 'ff2_w', 'ff2_b',
                'ln2_g', 'ln2_b', 'enc_g', 'enc_b',
                'br_bn_scale', 'br_bn_shift', 'br_fc_w', 'br_fc_b')


def _branch_spec(shape):
    rest = tuple(shape[1:])
    zeros = (0,) * len(rest)
    return pl.BlockSpec((None,) + rest, lambda br, _z=zeros: (br,) + _z)


def dual_transformer_forward(x1, x2, params, *, n_heads):
    B, T, _ = x1.shape
    H = params['emb_w'].shape[-1]
    d_pad = params['emb_w'].shape[1]
    n_classes = params['mix_fc_w'].shape[-1]

    def pad_feat(x):
        d = x.shape[-1]
        return jnp.pad(x, ((0, 0), (0, 0), (0, d_pad - d))) if d < d_pad else x

    # stack both branches; zero-pad x2's feature dim (matching zero-padded emb_w)
    xs = jnp.stack([pad_feat(x1), pad_feat(x2)], axis=0)
    xs = xs.reshape(2, B * T, d_pad).astype(F32)

    enc_inputs = [xs] + [params[k] for k in _BRANCH_KEYS]
    branch_out = pl.pallas_call(
        functools.partial(_encoder_kernel, n_heads=n_heads),
        out_shape=jax.ShapeDtypeStruct((2, B, H), F32),
        grid=(2,),                                   # one grid step per branch
        in_specs=[_branch_spec(a.shape) for a in enc_inputs],
        out_specs=pl.BlockSpec((None, B, H), lambda br: (br, 0, 0)),
        compiler_params=pltpu.CompilerParams(
            dimension_semantics=("parallel",)),      # v7x: branch per TensorCore
    )(*enc_inputs)

    vmem = pltpu.MemorySpace.VMEM
    smem = pltpu.MemorySpace.SMEM
    return pl.pallas_call(
        _mix_head_kernel,
        out_shape=jax.ShapeDtypeStruct((B, n_classes), F32),
        in_specs=[pl.BlockSpec(memory_space=vmem),   # stacked branch outputs
                  pl.BlockSpec(memory_space=smem),   # alpha (scalar)
                  pl.BlockSpec(memory_space=vmem),   # combined bn scale
                  pl.BlockSpec(memory_space=vmem),   # combined bn shift
                  pl.BlockSpec(memory_space=vmem),   # combined fc w
                  pl.BlockSpec(memory_space=vmem)],  # combined fc b
        out_specs=pl.BlockSpec(memory_space=vmem),
    )(branch_out, params['alpha'], params['mix_bn_scale'],
      params['mix_bn_shift'], params['mix_fc_w'], params['mix_fc_b'])


# --------------------------- Parameter construction --------------------------

def _bn_eval_affine(gamma, beta, mean, var, eps=BN_EPS):
    scale = gamma * jax.lax.rsqrt(var + eps)
    return scale.astype(F32), (beta - mean * scale).astype(F32)


def make_raw_params(key, input_dim1, input_dim2, hidden, output_dim,
                    n_layers, num_timesteps, ff_dim):
    T = num_timesteps

    def branch(bkey, input_dim):
        ki = iter(jax.random.split(bkey, 4 + 8 * n_layers))

        def w(shape, s=0.05):
            return (s * jax.random.normal(next(ki), shape)).astype(F32)

        p = {
            'emb_w': w((input_dim, hidden)),
            'emb_b': w((hidden,)),
            'pos': jnp.zeros((T, hidden), F32),       # torch: Parameter(zeros)
            'enc_g': jnp.ones((hidden,), F32),
            'enc_b': jnp.zeros((hidden,), F32),
            'fc_w': w((T * hidden, hidden)),
            'fc_b': w((hidden,)),
            'layers': [],
        }
        p['bn_scale'], p['bn_shift'] = _bn_eval_affine(
            jnp.ones((T * hidden,), F32), jnp.zeros((T * hidden,), F32),
            jnp.zeros((T * hidden,), F32), jnp.ones((T * hidden,), F32))
        for _ in range(n_layers):
            p['layers'].append({
                'in_proj_w': w((hidden, 3 * hidden)),
                'in_proj_b': w((3 * hidden,)),
                'out_proj_w': w((hidden, hidden)),
                'out_proj_b': w((hidden,)),
                'ln1_g': jnp.ones((hidden,), F32),
                'ln1_b': jnp.zeros((hidden,), F32),
                'ff1_w': w((hidden, ff_dim)),
                'ff1_b': w((ff_dim,)),
                'ff2_w': w((ff_dim, hidden)),
                'ff2_b': w((hidden,)),
                'ln2_g': jnp.ones((hidden,), F32),
                'ln2_b': jnp.zeros((hidden,), F32),
            })
        return p

    k1, k2, k3 = jax.random.split(key, 3)
    raw = {
        't1': branch(k1, input_dim1),
        't2': branch(k2, input_dim2),
        'alpha': jnp.asarray(0.5, F32),
        'fc_w': (0.05 * jax.random.normal(k3, (hidden, output_dim))).astype(F32),
        'fc_b': jnp.zeros((output_dim,), F32),
    }
    raw['bn_scale'], raw['bn_shift'] = _bn_eval_affine(
        jnp.ones((hidden,), F32), jnp.zeros((hidden,), F32),
        jnp.zeros((hidden,), F32), jnp.ones((hidden,), F32))
    return raw


def pack_params(raw):
    """Stack both branches along a leading axis (the kernel grid axis).
    Per-layer weights keep their natural (H, 3H)/(H, H)/(H, FF) shapes; all
    matmul weights are stored bf16, bias/norm vectors stay f32."""
    t1, t2 = raw['t1'], raw['t2']
    d_pad = max(t1['emb_w'].shape[0], t2['emb_w'].shape[0])

    def stack(fn, dtype=F32):
        return jnp.stack([fn(t1), fn(t2)], axis=0).astype(dtype)

    def pad_emb(w):
        return jnp.pad(w, ((0, d_pad - w.shape[0]), (0, 0)))

    def per_layer(t, name, as_row=False):
        arrs = [lp[name] for lp in t['layers']]
        if as_row:
            arrs = [a[None, :] for a in arrs]
        return jnp.stack(arrs, axis=0)

    return {
        'emb_w': stack(lambda t: pad_emb(t['emb_w']), BF16),
        'emb_b': stack(lambda t: t['emb_b'][None, :]),
        'pos': stack(lambda t: t['pos']),
        'qkv_w': stack(lambda t: per_layer(t, 'in_proj_w'), BF16),      # (2,L,H,3H)
        'qkv_b': stack(lambda t: per_layer(t, 'in_proj_b', as_row=True)),
        'out_w': stack(lambda t: per_layer(t, 'out_proj_w'), BF16),
        'out_b': stack(lambda t: per_layer(t, 'out_proj_b', as_row=True)),
        'ln1_g': stack(lambda t: per_layer(t, 'ln1_g', as_row=True)),
        'ln1_b': stack(lambda t: per_layer(t, 'ln1_b', as_row=True)),
        'ff1_w': stack(lambda t: per_layer(t, 'ff1_w'), BF16),
        'ff1_b': stack(lambda t: per_layer(t, 'ff1_b', as_row=True)),
        'ff2_w': stack(lambda t: per_layer(t, 'ff2_w'), BF16),
        'ff2_b': stack(lambda t: per_layer(t, 'ff2_b', as_row=True)),
        'ln2_g': stack(lambda t: per_layer(t, 'ln2_g', as_row=True)),
        'ln2_b': stack(lambda t: per_layer(t, 'ln2_b', as_row=True)),
        'enc_g': stack(lambda t: t['enc_g'][None, :]),
        'enc_b': stack(lambda t: t['enc_b'][None, :]),
        'br_bn_scale': stack(lambda t: t['bn_scale'][None, :]),
        'br_bn_shift': stack(lambda t: t['bn_shift'][None, :]),
        'br_fc_w': stack(lambda t: t['fc_w'], BF16),
        'br_fc_b': stack(lambda t: t['fc_b'][None, :]),
        'alpha': raw['alpha'].reshape(1, 1).astype(F32),
        'mix_bn_scale': raw['bn_scale'][None, :],
        'mix_bn_shift': raw['bn_shift'][None, :],
        'mix_fc_w': raw['fc_w'].astype(BF16),
        'mix_fc_b': raw['fc_b'][None, :],
    }


# ------------------------- Pure-JAX (f32) reference --------------------------

def _layer_norm_ref(y, g, b, eps=LN_EPS):
    mu = jnp.mean(y, axis=-1, keepdims=True)
    var = jnp.mean((y - mu) ** 2, axis=-1, keepdims=True)
    return (y - mu) * jax.lax.rsqrt(var + eps) * g + b


def reference_forward(x1, x2, raw, *, n_heads):
    def branch(x, t):
        B, T, _ = x.shape
        H = t['emb_w'].shape[1]
        nh = n_heads
        dh = H // nh
        h = x @ t['emb_w'] + t['emb_b'] + t['pos'][None, :, :]
        for lp in t['layers']:
            qkv = h @ lp['in_proj_w'] + lp['in_proj_b']
            q, k, v = qkv[..., :H], qkv[..., H:2 * H], qkv[..., 2 * H:]

            def heads(z):
                return z.reshape(B, T, nh, dh).transpose(0, 2, 1, 3)

            qh, kh, vh = heads(q), heads(k), heads(v)
            s = jnp.einsum('bhqd,bhkd->bhqk', qh, kh) / math.sqrt(dh)
            p = jax.nn.softmax(s, axis=-1)
            o = jnp.einsum('bhqk,bhkd->bhqd', p, vh)
            o = o.transpose(0, 2, 1, 3).reshape(B, T, H)
            attn = o @ lp['out_proj_w'] + lp['out_proj_b']
            h1 = _layer_norm_ref(h + attn, lp['ln1_g'], lp['ln1_b'])
            ff = jax.nn.relu(h1 @ lp['ff1_w'] + lp['ff1_b'])
            ff = ff @ lp['ff2_w'] + lp['ff2_b']
            h = _layer_norm_ref(h1 + ff, lp['ln2_g'], lp['ln2_b'])
        h = _layer_norm_ref(h, t['enc_g'], t['enc_b'])
        flat = h.reshape(B, T * H) * t['bn_scale'] + t['bn_shift']
        return flat @ t['fc_w'] + t['fc_b']

    o1 = branch(x1, raw['t1'])
    o2 = branch(x2, raw['t2'])
    c = raw['alpha'] * o1 + (1.0 - raw['alpha']) * o2
    c = c * raw['bn_scale'] + raw['bn_shift']
    return c @ raw['fc_w'] + raw['fc_b']


# ------------------------------------ main -----------------------------------

if __name__ == "__main__":
    B = 2            # batch
    T = 8            # num_timesteps
    IN1, IN2 = 16, 12
    HIDDEN = 32
    N_HEADS = 4
    N_LAYERS = 2
    OUT_DIM = 5
    FF_DIM = 2048    # nn.Transformer default dim_feedforward

    root = jax.random.PRNGKey(0)
    kx1, kx2, kp = jax.random.split(root, 3)
    x1 = jax.random.normal(kx1, (B, T, IN1), dtype=F32)
    x2 = jax.random.normal(kx2, (B, T, IN2), dtype=F32)

    raw = make_raw_params(kp, IN1, IN2, HIDDEN, OUT_DIM, N_LAYERS, T, FF_DIM)
    packed = pack_params(raw)

    fwd = jax.jit(functools.partial(dual_transformer_forward, n_heads=N_HEADS))
    out = jax.block_until_ready(fwd(x1, x2, packed))

    assert out.shape == (B, OUT_DIM), out.shape
    assert bool(jnp.all(jnp.isfinite(out)))

    # sanity check vs. a pure-JAX f32 reference; tolerance covers bf16 matmul
    # operands and the approximate softmax reciprocal used inside the kernels.
    ref = reference_forward(x1, x2, raw, n_heads=N_HEADS)
    max_diff = float(jnp.max(jnp.abs(out - ref)))
    assert max_diff < 1e-1, max_diff

    print("KERNEL_OK")
</pallas_src>

<mosaic_0001>
module attributes {stable_mosaic.version = 11 : i64} {
  func.func @_mix_head_kernel(%arg0: memref<2x2x32xf32, #tpu.memory_space<vmem>>, %arg1: memref<1x1xf32, #tpu.memory_space<smem>>, %arg2: memref<1x32xf32, #tpu.memory_space<vmem>>, %arg3: memref<1x32xf32, #tpu.memory_space<vmem>>, %arg4: memref<32x5xbf16, #tpu.memory_space<vmem>>, %arg5: memref<1x5xf32, #tpu.memory_space<vmem>>, %arg6: memref<2x5xf32, #tpu.memory_space<vmem>>) attributes {dimension_semantics = [], scalar_prefetch = 0 : i64, scratch_operands = 0 : i64, tpu.core_type = #tpu.core_type<tc>} {
    %c0 = arith.constant 0 : index
    %c0_0 = arith.constant 0 : index
    %0 = memref.load %arg1[%c0, %c0_0] : memref<1x1xf32, #tpu.memory_space<smem>>
    %c0_1 = arith.constant 0 : index
    %c0_2 = arith.constant 0 : index
    %c0_3 = arith.constant 0 : index
    %1 = vector.load %arg0[%c0_1, %c0_2, %c0_3] : memref<2x2x32xf32, #tpu.memory_space<vmem>>, vector<1x2x32xf32>
    %2 = vector.shape_cast %1 : vector<1x2x32xf32> to vector<2x32xf32>
    %3 = vector.broadcast %0 : f32 to vector<2x32xf32>
    %4 = arith.mulf %3, %2 : vector<2x32xf32>
    %cst = arith.constant 1.000000e+00 : f32
    %5 = arith.subf %cst, %0 : f32
    %c1 = arith.constant 1 : index
    %c0_4 = arith.constant 0 : index
    %c0_5 = arith.constant 0 : index
    %6 = vector.load %arg0[%c1, %c0_4, %c0_5] : memref<2x2x32xf32, #tpu.memory_space<vmem>>, vector<1x2x32xf32>
    %7 = vector.shape_cast %6 : vector<1x2x32xf32> to vector<2x32xf32>
    %8 = vector.broadcast %5 : f32 to vector<2x32xf32>
    %9 = arith.mulf %8, %7 : vector<2x32xf32>
    %10 = arith.addf %4, %9 : vector<2x32xf32>
    %c0_6 = arith.constant 0 : index
    %c0_7 = arith.constant 0 : index
    %11 = vector.load %arg2[%c0_6, %c0_7] : memref<1x32xf32, #tpu.memory_space<vmem>>, vector<1x32xf32>
    %12 = vector.broadcast %11 : vector<1x32xf32> to vector<2x32xf32>
    %13 = arith.mulf %10, %12 : vector<2x32xf32>
    %c0_8 = arith.constant 0 : index
    %c0_9 = arith.constant 0 : index
    %14 = vector.load %arg3[%c0_8, %c0_9] : memref<1x32xf32, #tpu.memory_space<vmem>>, vector<1x32xf32>
    %15 = vector.broadcast %14 : vector<1x32xf32> to vector<2x32xf32>
    %16 = arith.addf %13, %15 : vector<2x32xf32>
    %17 = arith.truncf %16 : vector<2x32xf32> to vector<2x32xbf16>
    %c0_10 = arith.constant 0 : index
    %c0_11 = arith.constant 0 : index
    %18 = vector.load %arg4[%c0_10, %c0_11] : memref<32x5xbf16, #tpu.memory_space<vmem>>, vector<32x5xbf16>
    %cst_12 = arith.constant dense<0.000000e+00> : vector<2x5xf32>
    %19 = tpu.matmul %17, %18, %cst_12 {dimension_numbers = #tpu.dot_dimension_numbers<[1], [0], [0], [1], [0, 0, 1, 1], [], []>} : vector<2x32xbf16>, vector<32x5xbf16>, vector<2x5xf32> -> vector<2x5xf32>
    %c0_13 = arith.constant 0 : index
    %c0_14 = arith.constant 0 : index
    %20 = vector.load %arg5[%c0_13, %c0_14] : memref<1x5xf32, #tpu.memory_space<vmem>>, vector<1x5xf32>
    %21 = vector.broadcast %20 : vector<1x5xf32> to vector<2x5xf32>
    %22 = arith.addf %19, %21 : vector<2x5xf32>
    %c0_15 = arith.constant 0 : index
    %c0_16 = arith.constant 0 : index
    %23 = vector.load %arg6[%c0_15, %c0_16] : memref<2x5xf32, #tpu.memory_space<vmem>>, vector<2x5xf32>
    tpu.vector_store %arg6[%c0_15, %c0_16], %22 {strides = array<i32>} : memref<2x5xf32, #tpu.memory_space<vmem>>, vector<2x5xf32>,
    return
  }
}

module attributes {stable_mosaic.version = 11 : i64} {
  func.func @_encoder_kernel(%arg0: i32, %arg1: memref<1x16x16xf32, #tpu.memory_space<vmem>>, %arg2: memref<1x16x32xbf16, #tpu.memory_space<vmem>>, %arg3: memref<1x1x32xf32, #tpu.memory_space<vmem>>, %arg4: memref<1x8x32xf32, #tpu.memory_space<vmem>>, %arg5: memref<1x2x32x96xbf16, #tpu.memory_space<vmem>>, %arg6: memref<1x2x1x96xf32, #tpu.memory_space<vmem>>, %arg7: memref<1x2x32x32xbf16, #tpu.memory_space<vmem>>, %arg8: memref<1x2x1x32xf32, #tpu.memory_space<vmem>>, %arg9: memref<1x2x1x32xf32, #tpu.memory_space<vmem>>, %arg10: memref<1x2x1x32xf32, #tpu.memory_space<vmem>>, %arg11: memref<1x2x32x2048xbf16, #tpu.memory_space<vmem>>, %arg12: memref<1x2x1x2048xf32, #tpu.memory_space<vmem>>, %arg13: memref<1x2x2048x32xbf16, #tpu.memory_space<vmem>>, %arg14: memref<1x2x1x32xf32, #tpu.memory_space<vmem>>, %arg15: memref<1x2x1x32xf32, #tpu.memory_space<vmem>>, %arg16: memref<1x2x1x32xf32, #tpu.memory_space<vmem>>, %arg17: memref<1x1x32xf32, #tpu.memory_space<vmem>>, %arg18: memref<1x1x32xf32, #tpu.memory_space<vmem>>, %arg19: memref<1x1x256xf32, #tpu.memory_space<vmem>>, %arg20: memref<1x1x256xf32, #tpu.memory_space<vmem>>, %arg21: memref<1x256x32xbf16, #tpu.memory_space<vmem>>, %arg22: memref<1x1x32xf32, #tpu.memory_space<vmem>>, %arg23: memref<1x2x32xf32, #tpu.memory_space<vmem>>) attributes {dimension_semantics = [#tpu.dimension_semantics<parallel>], iteration_bounds = array<i64: 2>, scalar_prefetch = 0 : i64, scratch_operands = 0 : i64, tpu.core_type = #tpu.core_type<tc>, window_params = [{transform_indices = @transform_0, window_bounds = array<i64: 1, 16, 16>}, {transform_indices = @transform_1, window_bounds = array<i64: 1, 16, 32>}, {transform_indices = @transform_2, window_bounds = array<i64: 1, 1, 32>}, {transform_indices = @transform_3, window_bounds = array<i64: 1, 8, 32>}, {transform_indices = @transform_4, window_bounds = array<i64: 1, 2, 32, 96>}, {transform_indices = @transform_5, window_bounds = array<i64: 1, 2, 1, 96>}, {transform_indices = @transform_6, window_bounds = array<i64: 1, 2, 32, 32>}, {transform_indices = @transform_7, window_bounds = array<i64: 1, 2, 1, 32>}, {transform_indices = @transform_8, window_bounds = array<i64: 1, 2, 1, 32>}, {transform_indices = @transform_9, window_bounds = array<i64: 1, 2, 1, 32>}, {transform_indices = @transform_10, window_bounds = array<i64: 1, 2, 32, 2048>}, {transform_indices = @transform_11, window_bounds = array<i64: 1, 2, 1, 2048>}, {transform_indices = @transform_12, window_bounds = array<i64: 1, 2, 2048, 32>}, {transform_indices = @transform_13, window_bounds = array<i64: 1, 2, 1, 32>}, {transform_indices = @transform_14, window_bounds = array<i64: 1, 2, 1, 32>}, {transform_indices = @transform_15, window_bounds = array<i64: 1, 2, 1, 32>}, {transform_indices = @transform_16, window_bounds = array<i64: 1, 1, 32>}, {transform_indices = @transform_17, window_bounds = array<i64: 1, 1, 32>}, {transform_indices = @transform_18, window_bounds = array<i64: 1, 1, 256>}, {transform_indices = @transform_19, window_bounds = array<i64: 1, 1, 256>}, {transform_indices = @transform_20, window_bounds = array<i64: 1, 256, 32>}, {transform_indices = @transform_21, window_bounds = array<i64: 1, 1, 32>}, {transform_indices = @transform_22, window_bounds = array<i64: 1, 2, 32>}]} {
    %c0 = arith.constant 0 : index
    %c0_0 = arith.constant 0 : index
    %c0_1 = arith.constant 0 : index
    %0 = vector.load %arg1[%c0, %c0_0, %c0_1] : memref<1x16x16xf32, #tpu.memory_space<vmem>>, vector<1x16x16xf32>
    %1 = vector.shape_cast %0 : vector<1x16x16xf32> to vector<16x16xf32>
    %2 = arith.truncf %1 : vector<16x16xf32> to vector<16x16xbf16>
    %c0_2 = arith.constant 0 : index
    %c0_3 = arith.constant 0 : index
    %c0_4 = arith.constant 0 : index
    %3 = vector.load %arg2[%c0_2, %c0_3, %c0_4] : memref<1x16x32xbf16, #tpu.memory_space<vmem>>, vector<1x16x32xbf16>
    %4 = vector.shape_cast %3 : vector<1x16x32xbf16> to vector<16x32xbf16>
    %cst = arith.constant dense<0.000000e+00> : vector<16x32xf32>
    %5 = tpu.matmul %2, %4, %cst {dimension_numbers = #tpu.dot_dimension_numbers<[1], [0], [0], [1], [0, 0, 1, 1], [], []>} : vector<16x16xbf16>, vector<16x32xbf16>, vector<16x32xf32> -> vector<16x32xf32>
    %c0_5 = arith.constant 0 : index
    %c0_6 = arith.constant 0 : index
    %c0_7 = arith.constant 0 : index
    %6 = vector.load %arg4[%c0_5, %c0_6, %c0_7] : memref<1x8x32xf32, #tpu.memory_space<vmem>>, vector<1x8x32xf32>
    %7 = vector.shape_cast %6 : vector<1x8x32xf32> to vector<8x32xf32>
    %c0_8 = arith.constant 0 : index
    %c0_9 = arith.constant 0 : index
    %c0_10 = arith.constant 0 : index
    %8 = vector.load %arg3[%c0_8, %c0_9, %c0_10] : memref<1x1x32xf32, #tpu.memory_space<vmem>>, vector<1x1x32xf32>
    %9 = vector.shape_cast %8 : vector<1x1x32xf32> to vector<1x32xf32>
    %10 = vector.broadcast %9 : vector<1x32xf32> to vector<8x32xf32>
    %11 = arith.addf %7, %10 : vector<8x32xf32>
    %12 = vector.shape_cast %5 : vector<16x32xf32> to vector<2x8x32xf32>
    %13 = vector.shape_cast %11 : vector<8x32xf32> to vector<1x8x32xf32>
    %14 = vector.broadcast %13 : vector<1x8x32xf32> to vector<2x8x32xf32>
    %15 = arith.addf %12, %14 : vector<2x8x32xf32>
    %16 = vector.shape_cast %15 : vector<2x8x32xf32> to vector<16x32xf32>
    %17 = arith.truncf %16 : vector<16x32xf32> to vector<16x32xbf16>
    %c0_11 = arith.constant 0 : index
    %c0_12 = arith.constant 0 : index
    %c0_13 = arith.constant 0 : index
    %c0_14 = arith.constant 0 : index
    %18 = vector.load %arg5[%c0_11, %c0_12, %c0_13, %c0_14] : memref<1x2x32x96xbf16, #tpu.memory_space<vmem>>, vector<1x1x32x96xbf16>
    %19 = vector.shape_cast %18 : vector<1x1x32x96xbf16> to vector<32x96xbf16>
    %cst_15 = arith.constant dense<0.000000e+00> : vector<16x96xf32>
    %20 = tpu.matmul %17, %19, %cst_15 {dimension_numbers = #tpu.dot_dimension_numbers<[1], [0], [0], [1], [0, 0, 1, 1], [], []>} : vector<16x32xbf16>, vector<32x96xbf16>, vector<16x96xf32> -> vector<16x96xf32>
    %c0_16 = arith.constant 0 : index
    %c0_17 = arith.constant 0 : index
    %c0_18 = arith.constant 0 : index
    %c0_19 = arith.constant 0 : index
    %21 = vector.load %arg6[%c0_16, %c0_17, %c0_18, %c0_19] : memref<1x2x1x96xf32, #tpu.memory_space<vmem>>, vector<1x1x1x96xf32>
    %22 = vector.shape_cast %21 : vector<1x1x1x96xf32> to vector<1x96xf32>
    %23 = vector.broadcast %22 : vector<1x96xf32> to vector<16x96xf32>
    %24 = arith.addf %20, %23 : vector<16x96xf32>
    %25 = vector.extract_strided_slice %24 {offsets = [0, 0], sizes = [16, 8], strides = [1, 1]} : vector<16x96xf32> to vector<16x8xf32>
    %26 = vector.shape_cast %25 : vector<16x8xf32> to vector<2x8x8xf32>
    %27 = vector.extract_strided_slice %24 {offsets = [0, 32], sizes = [16, 8], strides = [1, 1]} : vector<16x96xf32> to vector<16x8xf32>
    %28 = vector.shape_cast %27 : vector<16x8xf32> to vector<2x8x8xf32>
    %29 = vector.extract_strided_slice %24 {offsets = [0, 64], sizes = [16, 8], strides = [1, 1]} : vector<16x96xf32> to vector<16x8xf32>
    %30 = vector.shape_cast %29 : vector<16x8xf32> to vector<2x8x8xf32>
    %31 = arith.truncf %26 : vector<2x8x8xf32> to vector<2x8x8xbf16>
    %32 = arith.truncf %28 : vector<2x8x8xf32> to vector<2x8x8xbf16>
    "tpu.trace_start"() <{level = 10 : i32, message = "bqd,bkd->bqk"}> : () -> ()
    %cst_20 = arith.constant dense<0.000000e+00> : vector<2x8x8xf32>
    %33 = tpu.matmul %31, %32, %cst_20 {dimension_numbers = #tpu.dot_dimension_numbers<[2], [2], [1], [1], [0, 0, 0, 1, 1, 1], [0], [0]>} : vector<2x8x8xbf16>, vector<2x8x8xbf16>, vector<2x8x8xf32> -> vector<2x8x8xf32>
    "tpu.trace_stop"() : () -> ()
    %cst_21 = arith.constant 0.353553385 : f32
    %34 = vector.broadcast %cst_21 : f32 to vector<2x8x8xf32>
    %35 = arith.mulf %33, %34 : vector<2x8x8xf32>
    %cst_22 = arith.constant dense<0xFF800000> : vector<2x8xf32>
    %36 = vector.multi_reduction <maximumf>, %35, %cst_22 [2] : vector<2x8x8xf32> to vector<2x8xf32>
    %37 = vector.shape_cast %36 : vector<2x8xf32> to vector<2x8x1xf32>
    %38 = vector.broadcast %37 : vector<2x8x1xf32> to vector<2x8x8xf32>
    %39 = arith.subf %35, %38 : vector<2x8x8xf32>
    %40 = math.exp %39 : vector<2x8x8xf32>
    %cst_23 = arith.constant dense<0.000000e+00> : vector<2x8xf32>
    %41 = vector.multi_reduction <add>, %40, %cst_23 [2] : vector<2x8x8xf32> to vector<2x8xf32>
    %42 = vector.shape_cast %41 : vector<2x8xf32> to vector<2x8x1xf32>
    %43 = tpu.reciprocal %42 {approx = true} : vector<2x8x1xf32> -> vector<2x8x1xf32>
    %44 = vector.broadcast %43 : vector<2x8x1xf32> to vector<2x8x8xf32>
    %45 = arith.mulf %40, %44 : vector<2x8x8xf32>
    %46 = arith.truncf %45 : vector<2x8x8xf32> to vector<2x8x8xbf16>
    %47 = arith.truncf %30 : vector<2x8x8xf32> to vector<2x8x8xbf16>
    "tpu.trace_start"() <{level = 10 : i32, message = "bqk,bkd->bqd"}> : () -> ()
    %cst_24 = arith.constant dense<0.000000e+00> : vector<2x8x8xf32>
    %48 = tpu.matmul %46, %47, %cst_24 {dimension_numbers = #tpu.dot_dimension_numbers<[2], [1], [1], [2], [0, 0, 0, 1, 1, 2], [0], [0]>} : vector<2x8x8xbf16>, vector<2x8x8xbf16>, vector<2x8x8xf32> -> vector<2x8x8xf32>
    "tpu.trace_stop"() : () -> ()
    %49 = vector.shape_cast %48 : vector<2x8x8xf32> to vector<16x8xf32>
    %50 = vector.extract_strided_slice %24 {offsets = [0, 8], sizes = [16, 8], strides = [1, 1]} : vector<16x96xf32> to vector<16x8xf32>
    %51 = vector.shape_cast %50 : vector<16x8xf32> to vector<2x8x8xf32>
    %52 = vector.extract_strided_slice %24 {offsets = [0, 40], sizes = [16, 8], strides = [1, 1]} : vector<16x96xf32> to vector<16x8xf32>
    %53 = vector.shape_cast %52 : vector<16x8xf32> to vector<2x8x8xf32>
    %54 = vector.extract_strided_slice %24 {offsets = [0, 72], sizes = [16, 8], strides = [1, 1]} : vector<16x96xf32> to vector<16x8xf32>
    %55 = vector.shape_cast %54 : vector<16x8xf32> to vector<2x8x8xf32>
    %56 = arith.truncf %51 : vector<2x8x8xf32> to vector<2x8x8xbf16>
    %57 = arith.truncf %53 : vector<2x8x8xf32> to vector<2x8x8xbf16>
    "tpu.trace_start"() <{level = 10 : i32, message = "bqd,bkd->bqk"}> : () -> ()
    %cst_25 = arith.constant dense<0.000000e+00> : vector<2x8x8xf32>
    %58 = tpu.matmul %56, %57, %cst_25 {dimension_numbers = #tpu.dot_dimension_numbers<[2], [2], [1], [1], [0, 0, 0, 1, 1, 1], [0], [0]>} : vector<2x8x8xbf16>, vector<2x8x8xbf16>, vector<2x8x8xf32> -> vector<2x8x8xf32>
    "tpu.trace_stop"() : () -> ()
    %cst_26 = arith.constant 0.353553385 : f32
    %59 = vector.broadcast %cst_26 : f32 to vector<2x8x8xf32>
    %60 = arith.mulf %58, %59 : vector<2x8x8xf32>
    %cst_27 = arith.constant dense<0xFF800000> : vector<2x8xf32>
    %61 = vector.multi_reduction <maximumf>, %60, %cst_27 [2] : vector<2x8x8xf32> to vector<2x8xf32>
    %62 = vector.shape_cast %61 : vector<2x8xf32> to vector<2x8x1xf32>
    %63 = vector.broadcast %62 : vector<2x8x1xf32> to vector<2x8x8xf32>
    %64 = arith.subf %60, %63 : vector<2x8x8xf32>
    %65 = math.exp %64 : vector<2x8x8xf32>
    %cst_28 = arith.constant dense<0.000000e+00> : vector<2x8xf32>
    %66 = vector.multi_reduction <add>, %65, %cst_28 [2] : vector<2x8x8xf32> to vector<2x8xf32>
    %67 = vector.shape_cast %66 : vector<2x8xf32> to vector<2x8x1xf32>
    %68 = tpu.reciprocal %67 {approx = true} : vector<2x8x1xf32> -> vector<2x8x1xf32>
    %69 = vector.broadcast %68 : vector<2x8x1xf32> to vector<2x8x8xf32>
    %70 = arith.mulf %65, %69 : vector<2x8x8xf32>
    %71 = arith.truncf %70 : vector<2x8x8xf32> to vector<2x8x8xbf16>
    %72 = arith.truncf %55 : vector<2x8x8xf32> to vector<2x8x8xbf16>
    "tpu.trace_start"() <{level = 10 : i32, message = "bqk,bkd->bqd"}> : () -> ()
    %cst_29 = arith.constant dense<0.000000e+00> : vector<2x8x8xf32>
    %73 = tpu.matmul %71, %72, %cst_29 {dimension_numbers = #tpu.dot_dimension_numbers<[2], [1], [1], [2], [0, 0, 0, 1, 1, 2], [0], [0]>} : vector<2x8x8xbf16>, vector<2x8x8xbf16>, vector<2x8x8xf32> -> vector<2x8x8xf32>
    "tpu.trace_stop"() : () -> ()
    %74 = vector.shape_cast %73 : vector<2x8x8xf32> to vector<16x8xf32>
    %75 = vector.extract_strided_slice %24 {offsets = [0, 16], sizes = [16, 8], strides = [1, 1]} : vector<16x96xf32> to vector<16x8xf32>
    %76 = vector.shape_cast %75 : vector<16x8xf32> to vector<2x8x8xf32>
    %77 = vector.extract_strided_slice %24 {offsets = [0, 48], sizes = [16, 8], strides = [1, 1]} : vector<16x96xf32> to vector<16x8xf32>
    %78 = vector.shape_cast %77 : vector<16x8xf32> to vector<2x8x8xf32>
    %79 = vector.extract_strided_slice %24 {offsets = [0, 80], sizes = [16, 8], strides = [1, 1]} : vector<16x96xf32> to vector<16x8xf32>
    %80 = vector.shape_cast %79 : vector<16x8xf32> to vector<2x8x8xf32>
    %81 = arith.truncf %76 : vector<2x8x8xf32> to vector<2x8x8xbf16>
    %82 = arith.truncf %78 : vector<2x8x8xf32> to vector<2x8x8xbf16>
    "tpu.trace_start"() <{level = 10 : i32, message = "bqd,bkd->bqk"}> : () -> ()
    %cst_30 = arith.constant dense<0.000000e+00> : vector<2x8x8xf32>
    %83 = tpu.matmul %81, %82, %cst_30 {dimension_numbers = #tpu.dot_dimension_numbers<[2], [2], [1], [1], [0, 0, 0, 1, 1, 1], [0], [0]>} : vector<2x8x8xbf16>, vector<2x8x8xbf16>, vector<2x8x8xf32> -> vector<2x8x8xf32>
    "tpu.trace_stop"() : () -> ()
    %cst_31 = arith.constant 0.353553385 : f32
    %84 = vector.broadcast %cst_31 : f32 to vector<2x8x8xf32>
    %85 = arith.mulf %83, %84 : vector<2x8x8xf32>
    %cst_32 = arith.constant dense<0xFF800000> : vector<2x8xf32>
    %86 = vector.multi_reduction <maximumf>, %85, %cst_32 [2] : vector<2x8x8xf32> to vector<2x8xf32>
    %87 = vector.shape_cast %86 : vector<2x8xf32> to vector<2x8x1xf32>
    %88 = vector.broadcast %87 : vector<2x8x1xf32> to vector<2x8x8xf32>
    %89 = arith.subf %85, %88 : vector<2x8x8xf32>
    %90 = math.exp %89 : vector<2x8x8xf32>
    %cst_33 = arith.constant dense<0.000000e+00> : vector<2x8xf32>
    %91 = vector.multi_reduction <add>, %90, %cst_33 [2] : vector<2x8x8xf32> to vector<2x8xf32>
    %92 = vector.shape_cast %91 : vector<2x8xf32> to vector<2x8x1xf32>
    %93 = tpu.reciprocal %92 {approx = true} : vector<2x8x1xf32> -> vector<2x8x1xf32>
    %94 = vector.broadcast %93 : vector<2x8x1xf32> to vector<2x8x8xf32>
    %95 = arith.mulf %90, %94 : vector<2x8x8xf32>
    %96 = arith.truncf %95 : vector<2x8x8xf32> to vector<2x8x8xbf16>
    %97 = arith.truncf %80 : vector<2x8x8xf32> to vector<2x8x8xbf16>
    "tpu.trace_start"() <{level = 10 : i32, message = "bqk,bkd->bqd"}> : () -> ()
    %cst_34 = arith.constant dense<0.000000e+00> : vector<2x8x8xf32>
    %98 = tpu.matmul %96, %97, %cst_34 {dimension_numbers = #tpu.dot_dimension_numbers<[2], [1], [1], [2], [0, 0, 0, 1, 1, 2], [0], [0]>} : vector<2x8x8xbf16>, vector<2x8x8xbf16>, vector<2x8x8xf32> -> vector<2x8x8xf32>
    "tpu.trace_stop"() : () -> ()
    %99 = vector.shape_cast %98 : vector<2x8x8xf32> to vector<16x8xf32>
    %100 = vector.extract_strided_slice %24 {offsets = [0, 24], sizes = [16, 8], strides = [1, 1]} : vector<16x96xf32> to vector<16x8xf32>
    %101 = vector.shape_cast %100 : vector<16x8xf32> to vector<2x8x8xf32>
    %102 = vector.extract_strided_slice %24 {offsets = [0, 56], sizes = [16, 8], strides = [1, 1]} : vector<16x96xf32> to vector<16x8xf32>
    %103 = vector.shape_cast %102 : vector<16x8xf32> to vector<2x8x8xf32>
    %104 = vector.extract_strided_slice %24 {offsets = [0, 88], sizes = [16, 8], strides = [1, 1]} : vector<16x96xf32> to vector<16x8xf32>
    %105 = vector.shape_cast %104 : vector<16x8xf32> to vector<2x8x8xf32>
    %106 = arith.truncf %101 : vector<2x8x8xf32> to vector<2x8x8xbf16>
    %107 = arith.truncf %103 : vector<2x8x8xf32> to vector<2x8x8xbf16>
    "tpu.trace_start"() <{level = 10 : i32, message = "bqd,bkd->bqk"}> : () -> ()
    %cst_35 = arith.constant dense<0.000000e+00> : vector<2x8x8xf32>
    %108 = tpu.matmul %106, %107, %cst_35 {dimension_numbers = #tpu.dot_dimension_numbers<[2], [2], [1], [1], [0, 0, 0, 1, 1, 1], [0], [0]>} : vector<2x8x8xbf16>, vector<2x8x8xbf16>, vector<2x8x8xf32> -> vector<2x8x8xf32>
    "tpu.trace_stop"() : () -> ()
    %cst_36 = arith.constant 0.353553385 : f32
    %109 = vector.broadcast %cst_36 : f32 to vector<2x8x8xf32>
    %110 = arith.mulf %108, %109 : vector<2x8x8xf32>
    %cst_37 = arith.constant dense<0xFF800000> : vector<2x8xf32>
    %111 = vector.multi_reduction <maximumf>, %110, %cst_37 [2] : vector<2x8x8xf32> to vector<2x8xf32>
    %112 = vector.shape_cast %111 : vector<2x8xf32> to vector<2x8x1xf32>
    %113 = vector.broadcast %112 : vector<2x8x1xf32> to vector<2x8x8xf32>
    %114 = arith.subf %110, %113 : vector<2x8x8xf32>
    %115 = math.exp %114 : vector<2x8x8xf32>
    %cst_38 = arith.constant dense<0.000000e+00> : vector<2x8xf32>
    %116 = vector.multi_reduction <add>, %115, %cst_38 [2] : vector<2x8x8xf32> to vector<2x8xf32>
    %117 = vector.shape_cast %116 : vector<2x8xf32> to vector<2x8x1xf32>
    %118 = tpu.reciprocal %117 {approx = true} : vector<2x8x1xf32> -> vector<2x8x1xf32>
    %119 = vector.broadcast %118 : vector<2x8x1xf32> to vector<2x8x8xf32>
    %120 = arith.mulf %115, %119 : vector<2x8x8xf32>
    %121 = arith.truncf %120 : vector<2x8x8xf32> to vector<2x8x8xbf16>
    %122 = arith.truncf %105 : vector<2x8x8xf32> to vector<2x8x8xbf16>
    "tpu.trace_start"() <{level = 10 : i32, message = "bqk,bkd->bqd"}> : () -> ()
    %cst_39 = arith.constant dense<0.000000e+00> : vector<2x8x8xf32>
    %123 = tpu.matmul %121, %122, %cst_39 {dimension_numbers = #tpu.dot_dimension_numbers<[2], [1], [1], [2], [0, 0, 0, 1, 1, 2], [0], [0]>} : vector<2x8x8xbf16>, vector<2x8x8xbf16>, vector<2x8x8xf32> -> vector<2x8x8xf32>
    "tpu.trace_stop"() : () -> ()
    %124 = vector.shape_cast %123 : vector<2x8x8xf32> to vector<16x8xf32>
    %125 = tpu.concatenate %49, %74, %99, %124 in 1 : vector<16x8xf32>, vector<16x8xf32>, vector<16x8xf32>, vector<16x8xf32> -> vector<16x32xf32>
    %126 = arith.truncf %125 : vector<16x32xf32> to vector<16x32xbf16>
    %c0_40 = arith.constant 0 : index
    %c0_41 = arith.constant 0 : index
    %c0_42 = arith.constant 0 : index
    %c0_43 = arith.constant 0 : index
    %127 = vector.load %arg7[%c0_40, %c0_41, %c0_42, %c0_43] : memref<1x2x32x32xbf16, #tpu.memory_space<vmem>>, vector<1x1x32x32xbf16>
    %128 = vector.shape_cast %127 : vector<1x1x32x32xbf16> to vector<32x32xbf16>
    %cst_44 = arith.constant dense<0.000000e+00> : vector<16x32xf32>
    %129 = tpu.matmul %126, %128, %cst_44 {dimension_numbers = #tpu.dot_dimension_numbers<[1], [0], [0], [1], [0, 0, 1, 1], [], []>} : vector<16x32xbf16>, vector<32x32xbf16>, vector<16x32xf32> -> vector<16x32xf32>
    %c0_45 = arith.constant 0 : index
    %c0_46 = arith.constant 0 : index
    %c0_47 = arith.constant 0 : index
    %c0_48 = arith.constant 0 : index
    %130 = vector.load %arg8[%c0_45, %c0_46, %c0_47, %c0_48] : memref<1x2x1x32xf32, #tpu.memory_space<vmem>>, vector<1x1x1x32xf32>
    %131 = vector.shape_cast %130 : vector<1x1x1x32xf32> to vector<1x32xf32>
    %132 = vector.broadcast %131 : vector<1x32xf32> to vector<16x32xf32>
    %133 = arith.addf %129, %132 : vector<16x32xf32>
    %134 = arith.addf %16, %133 : vector<16x32xf32>
    %c0_49 = arith.constant 0 : index
    %c0_50 = arith.constant 0 : index
    %c0_51 = arith.constant 0 : index
    %c0_52 = arith.constant 0 : index
    %135 = vector.load %arg9[%c0_49, %c0_50, %c0_51, %c0_52] : memref<1x2x1x32xf32, #tpu.memory_space<vmem>>, vector<1x1x1x32xf32>
    %136 = vector.shape_cast %135 : vector<1x1x1x32xf32> to vector<1x32xf32>
    %c0_53 = arith.constant 0 : index
    %c0_54 = arith.constant 0 : index
    %c0_55 = arith.constant 0 : index
    %c0_56 = arith.constant 0 : index
    %137 = vector.load %arg10[%c0_53, %c0_54, %c0_55, %c0_56] : memref<1x2x1x32xf32, #tpu.memory_space<vmem>>, vector<1x1x1x32xf32>
    %138 = vector.shape_cast %137 : vector<1x1x1x32xf32> to vector<1x32xf32>
    %cst_57 = arith.constant dense<0.000000e+00> : vector<16xf32>
    %139 = vector.multi_reduction <add>, %134, %cst_57 [1] : vector<16x32xf32> to vector<16xf32>
    %140 = vector.shape_cast %139 : vector<16xf32> to vector<16x1xf32>
    %cst_58 = arith.constant 3.200000e+01 : f32
    %141 = vector.broadcast %cst_58 : f32 to vector<16x1xf32>
    %142 = arith.divf %140, %141 : vector<16x1xf32>
    %143 = vector.broadcast %142 : vector<16x1xf32> to vector<16x32xf32>
    %144 = arith.subf %134, %143 : vector<16x32xf32>
    %145 = vector.broadcast %142 : vector<16x1xf32> to vector<16x32xf32>
    %146 = arith.subf %134, %145 : vector<16x32xf32>
    %147 = arith.mulf %144, %146 : vector<16x32xf32>
    %cst_59 = arith.constant dense<0.000000e+00> : vector<16xf32>
    %148 = vector.multi_reduction <add>, %147, %cst_59 [1] : vector<16x32xf32> to vector<16xf32>
    %149 = vector.shape_cast %148 : vector<16xf32> to vector<16x1xf32>
    %cst_60 = arith.constant 3.200000e+01 : f32
    %150 = vector.broadcast %cst_60 : f32 to vector<16x1xf32>
    %151 = arith.divf %149, %150 : vector<16x1xf32>
    %152 = vector.broadcast %142 : vector<16x1xf32> to vector<16x32xf32>
    %153 = arith.subf %134, %152 : vector<16x32xf32>
    %cst_61 = arith.constant 9.99999974E-6 : f32
    %154 = vector.broadcast %cst_61 : f32 to vector<16x1xf32>
    %155 = arith.addf %151, %154 : vector<16x1xf32>
    %156 = math.rsqrt %155 : vector<16x1xf32>
    %157 = vector.broadcast %156 : vector<16x1xf32> to vector<16x32xf32>
    %158 = arith.mulf %153, %157 : vector<16x32xf32>
    %159 = vector.broadcast %136 : vector<1x32xf32> to vector<16x32xf32>
    %160 = arith.mulf %158, %159 : vector<16x32xf32>
    %161 = vector.broadcast %138 : vector<1x32xf32> to vector<16x32xf32>
    %162 = arith.addf %160, %161 : vector<16x32xf32>
    %163 = arith.truncf %162 : vector<16x32xf32> to vector<16x32xbf16>
    %c0_62 = arith.constant 0 : index
    %c0_63 = arith.constant 0 : index
    %c0_64 = arith.constant 0 : index
    %c0_65 = arith.constant 0 : index
    %164 = vector.load %arg11[%c0_62, %c0_63, %c0_64, %c0_65] : memref<1x2x32x2048xbf16, #tpu.memory_space<vmem>>, vector<1x1x32x2048xbf16>
    %165 = vector.shape_cast %164 : vector<1x1x32x2048xbf16> to vector<32x2048xbf16>
    %cst_66 = arith.constant dense<0.000000e+00> : vector<16x2048xf32>
    %166 = tpu.matmul %163, %165, %cst_66 {dimension_numbers = #tpu.dot_dimension_numbers<[1], [0], [0], [1], [0, 0, 1, 1], [], []>} : vector<16x32xbf16>, vector<32x2048xbf16>, vector<16x2048xf32> -> vector<16x2048xf32>
    %c0_67 = arith.constant 0 : index
    %c0_68 = arith.constant 0 : index
    %c0_69 = arith.constant 0 : index
    %c0_70 = arith.constant 0 : index
    %167 = vector.load %arg12[%c0_67, %c0_68, %c0_69, %c0_70] : memref<1x2x1x2048xf32, #tpu.memory_space<vmem>>, vector<1x1x1x2048xf32>
    %168 = vector.shape_cast %167 : vector<1x1x1x2048xf32> to vector<1x2048xf32>
    %169 = vector.broadcast %168 : vector<1x2048xf32> to vector<16x2048xf32>
    %170 = arith.addf %166, %169 : vector<16x2048xf32>
    %cst_71 = arith.constant 0.000000e+00 : f32
    %171 = vector.broadcast %cst_71 : f32 to vector<16x2048xf32>
    %172 = arith.maximumf %170, %171 : vector<16x2048xf32>
    %173 = arith.truncf %172 : vector<16x2048xf32> to vector<16x2048xbf16>
    %c0_72 = arith.constant 0 : index
    %c0_73 = arith.constant 0 : index
    %c0_74 = arith.constant 0 : index
    %c0_75 = arith.constant 0 : index
    %174 = vector.load %arg13[%c0_72, %c0_73, %c0_74, %c0_75] : memref<1x2x2048x32xbf16, #tpu.memory_space<vmem>>, vector<1x1x2048x32xbf16>
    %175 = vector.shape_cast %174 : vector<1x1x2048x32xbf16> to vector<2048x32xbf16>
    %cst_76 = arith.constant dense<0.000000e+00> : vector<16x32xf32>
    %176 = tpu.matmul %173, %175, %cst_76 {dimension_numbers = #tpu.dot_dimension_numbers<[1], [0], [0], [1], [0, 0, 1, 1], [], []>} : vector<16x2048xbf16>, vector<2048x32xbf16>, vector<16x32xf32> -> vector<16x32xf32>
    %c0_77 = arith.constant 0 : index
    %c0_78 = arith.constant 0 : index
    %c0_79 = arith.constant 0 : index
    %c0_80 = arith.constant 0 : index
    %177 = vector.load %arg14[%c0_77, %c0_78, %c0_79, %c0_80] : memref<1x2x1x32xf32, #tpu.memory_space<vmem>>, vector<1x1x1x32xf32>
    %178 = vector.shape_cast %177 : vector<1x1x1x32xf32> to vector<1x32xf32>
    %179 = vector.broadcast %178 : vector<1x32xf32> to vector<16x32xf32>
    %180 = arith.addf %176, %179 : vector<16x32xf32>
    %181 = arith.addf %162, %180 : vector<16x32xf32>
    %c0_81 = arith.constant 0 : index
    %c0_82 = arith.constant 0 : index
    %c0_83 = arith.constant 0 : index
    %c0_84 = arith.constant 0 : index
    %182 = vector.load %arg15[%c0_81, %c0_82, %c0_83, %c0_84] : memref<1x2x1x32xf32, #tpu.memory_space<vmem>>, vector<1x1x1x32xf32>
    %183 = vector.shape_cast %182 : vector<1x1x1x32xf32> to vector<1x32xf32>
    %c0_85 = arith.constant 0 : index
    %c0_86 = arith.constant 0 : index
    %c0_87 = arith.constant 0 : index
    %c0_88 = arith.constant 0 : index
    %184 = vector.load %arg16[%c0_85, %c0_86, %c0_87, %c0_88] : memref<1x2x1x32xf32, #tpu.memory_space<vmem>>, vector<1x1x1x32xf32>
    %185 = vector.shape_cast %184 : vector<1x1x1x32xf32> to vector<1x32xf32>
    %cst_89 = arith.constant dense<0.000000e+00> : vector<16xf32>
    %186 = vector.multi_reduction <add>, %181, %cst_89 [1] : vector<16x32xf32> to vector<16xf32>
    %187 = vector.shape_cast %186 : vector<16xf32> to vector<16x1xf32>
    %cst_90 = arith.constant 3.200000e+01 : f32
    %188 = vector.broadcast %cst_90 : f32 to vector<16x1xf32>
    %189 = arith.divf %187, %188 : vector<16x1xf32>
    %190 = vector.broadcast %189 : vector<16x1xf32> to vector<16x32xf32>
    %191 = arith.subf %181, %190 : vector<16x32xf32>
    %192 = vector.broadcast %189 : vector<16x1xf32> to vector<16x32xf32>
    %193 = arith.subf %181, %192 : vector<16x32xf32>
    %194 = arith.mulf %191, %193 : vector<16x32xf32>
    %cst_91 = arith.constant dense<0.000000e+00> : vector<16xf32>
    %195 = vector.multi_reduction <add>, %194, %cst_91 [1] : vector<16x32xf32> to vector<16xf32>
    %196 = vector.shape_cast %195 : vector<16xf32> to vector<16x1xf32>
    %cst_92 = arith.constant 3.200000e+01 : f32
    %197 = vector.broadcast %cst_92 : f32 to vector<16x1xf32>
    %198 = arith.divf %196, %197 : vector<16x1xf32>
    %199 = vector.broadcast %189 : vector<16x1xf32> to vector<16x32xf32>
    %200 = arith.subf %181, %199 : vector<16x32xf32>
    %cst_93 = arith.constant 9.99999974E-6 : f32
    %201 = vector.broadcast %cst_93 : f32 to vector<16x1xf32>
    %202 = arith.addf %198, %201 : vector<16x1xf32>
    %203 = math.rsqrt %202 : vector<16x1xf32>
    %204 = vector.broadcast %203 : vector<16x1xf32> to vector<16x32xf32>
    %205 = arith.mulf %200, %204 : vector<16x32xf32>
    %206 = vector.broadcast %183 : vector<1x32xf32> to vector<16x32xf32>
    %207 = arith.mulf %205, %206 : vector<16x32xf32>
    %208 = vector.broadcast %185 : vector<1x32xf32> to vector<16x32xf32>
    %209 = arith.addf %207, %208 : vector<16x32xf32>
    %210 = arith.truncf %209 : vector<16x32xf32> to vector<16x32xbf16>
    %c0_94 = arith.constant 0 : index
    %c1 = arith.constant 1 : index
    %c0_95 = arith.constant 0 : index
    %c0_96 = arith.constant 0 : index
    %211 = vector.load %arg5[%c0_94, %c1, %c0_95, %c0_96] : memref<1x2x32x96xbf16, #tpu.memory_space<vmem>>, vector<1x1x32x96xbf16>
    %212 = vector.shape_cast %211 : vector<1x1x32x96xbf16> to vector<32x96xbf16>
    %cst_97 = arith.constant dense<0.000000e+00> : vector<16x96xf32>
    %213 = tpu.matmul %210, %212, %cst_97 {dimension_numbers = #tpu.dot_dimension_numbers<[1], [0], [0], [1], [0, 0, 1, 1], [], []>} : vector<16x32xbf16>, vector<32x96xbf16>, vector<16x96xf32> -> vector<16x96xf32>
    %c0_98 = arith.constant 0 : index
    %c1_99 = arith.constant 1 : index
    %c0_100 = arith.constant 0 : index
    %c0_101 = arith.constant 0 : index
    %214 = vector.load %arg6[%c0_98, %c1_99, %c0_100, %c0_101] : memref<1x2x1x96xf32, #tpu.memory_space<vmem>>, vector<1x1x1x96xf32>
    %215 = vector.shape_cast %214 : vector<1x1x1x96xf32> to vector<1x96xf32>
    %216 = vector.broadcast %215 : vector<1x96xf32> to vector<16x96xf32>
    %217 = arith.addf %213, %216 : vector<16x96xf32>
    %218 = vector.extract_strided_slice %217 {offsets = [0, 0], sizes = [16, 8], strides = [1, 1]} : vector<16x96xf32> to vector<16x8xf32>
    %219 = vector.shape_cast %218 : vector<16x8xf32> to vector<2x8x8xf32>
    %220 = vector.extract_strided_slice %217 {offsets = [0, 32], sizes = [16, 8], strides = [1, 1]} : vector<16x96xf32> to vector<16x8xf32>
    %221 = vector.shape_cast %220 : vector<16x8xf32> to vector<2x8x8xf32>
    %222 = vector.extract_strided_slice %217 {offsets = [0, 64], sizes = [16, 8], strides = [1, 1]} : vector<16x96xf32> to vector<16x8xf32>
    %223 = vector.shape_cast %222 : vector<16x8xf32> to vector<2x8x8xf32>
    %224 = arith.truncf %219 : vector<2x8x8xf32> to vector<2x8x8xbf16>
    %225 = arith.truncf %221 : vector<2x8x8xf32> to vector<2x8x8xbf16>
    "tpu.trace_start"() <{level = 10 : i32, message = "bqd,bkd->bqk"}> : () -> ()
    %cst_102 = arith.constant dense<0.000000e+00> : vector<2x8x8xf32>
    %226 = tpu.matmul %224, %225, %cst_102 {dimension_numbers = #tpu.dot_dimension_numbers<[2], [2], [1], [1], [0, 0, 0, 1, 1, 1], [0], [0]>} : vector<2x8x8xbf16>, vector<2x8x8xbf16>, vector<2x8x8xf32> -> vector<2x8x8xf32>
    "tpu.trace_stop"() : () -> ()
    %cst_103 = arith.constant 0.353553385 : f32
    %227 = vector.broadcast %cst_103 : f32 to vector<2x8x8xf32>
    %228 = arith.mulf %226, %227 : vector<2x8x8xf32>
    %cst_104 = arith.constant dense<0xFF800000> : vector<2x8xf32>
    %229 = vector.multi_reduction <maximumf>, %228, %cst_104 [2] : vector<2x8x8xf32> to vector<2x8xf32>
    %230 = vector.shape_cast %229 : vector<2x8xf32> to vector<2x8x1xf32>
    %231 = vector.broadcast %230 : vector<2x8x1xf32> to vector<2x8x8xf32>
    %232 = arith.subf %228, %231 : vector<2x8x8xf32>
    %233 = math.exp %232 : vector<2x8x8xf32>
    %cst_105 = arith.constant dense<0.000000e+00> : vector<2x8xf32>
    %234 = vector.multi_reduction <add>, %233, %cst_105 [2] : vector<2x8x8xf32> to vector<2x8xf32>
    %235 = vector.shape_cast %234 : vector<2x8xf32> to vector<2x8x1xf32>
    %236 = tpu.reciprocal %235 {approx = true} : vector<2x8x1xf32> -> vector<2x8x1xf32>
    %237 = vector.broadcast %236 : vector<2x8x1xf32> to vector<2x8x8xf32>
    %238 = arith.mulf %233, %237 : vector<2x8x8xf32>
    %239 = arith.truncf %238 : vector<2x8x8xf32> to vector<2x8x8xbf16>
    %240 = arith.truncf %223 : vector<2x8x8xf32> to vector<2x8x8xbf16>
    "tpu.trace_start"() <{level = 10 : i32, message = "bqk,bkd->bqd"}> : () -> ()
    %cst_106 = arith.constant dense<0.000000e+00> : vector<2x8x8xf32>
    %241 = tpu.matmul %239, %240, %cst_106 {dimension_numbers = #tpu.dot_dimension_numbers<[2], [1], [1], [2], [0, 0, 0, 1, 1, 2], [0], [0]>} : vector<2x8x8xbf16>, vector<2x8x8xbf16>, vector<2x8x8xf32> -> vector<2x8x8xf32>
    "tpu.trace_stop"() : () -> ()
    %242 = vector.shape_cast %241 : vector<2x8x8xf32> to vector<16x8xf32>
    %243 = vector.extract_strided_slice %217 {offsets = [0, 8], sizes = [16, 8], strides = [1, 1]} : vector<16x96xf32> to vector<16x8xf32>
    %244 = vector.shape_cast %243 : vector<16x8xf32> to vector<2x8x8xf32>
    %245 = vector.extract_strided_slice %217 {offsets = [0, 40], sizes = [16, 8], strides = [1, 1]} : vector<16x96xf32> to vector<16x8xf32>
    %246 = vector.shape_cast %245 : vector<16x8xf32> to vector<2x8x8xf32>
    %247 = vector.extract_strided_slice %217 {offsets = [0, 72], sizes = [16, 8], strides = [1, 1]} : vector<16x96xf32> to vector<16x8xf32>
    %248 = vector.shape_cast %247 : vector<16x8xf32> to vector<2x8x8xf32>
    %249 = arith.truncf %244 : vector<2x8x8xf32> to vector<2x8x8xbf16>
    %250 = arith.truncf %246 : vector<2x8x8xf32> to vector<2x8x8xbf16>
    "tpu.trace_start"() <{level = 10 : i32, message = "bqd,bkd->bqk"}> : () -> ()
    %cst_107 = arith.constant dense<0.000000e+00> : vector<2x8x8xf32>
    %251 = tpu.matmul %249, %250, %cst_107 {dimension_numbers = #tpu.dot_dimension_numbers<[2], [2], [1], [1], [0, 0, 0, 1, 1, 1], [0], [0]>} : vector<2x8x8xbf16>, vector<2x8x8xbf16>, vector<2x8x8xf32> -> vector<2x8x8xf32>
    "tpu.trace_stop"() : () -> ()
    %cst_108 = arith.constant 0.353553385 : f32
    %252 = vector.broadcast %cst_108 : f32 to vector<2x8x8xf32>
    %253 = arith.mulf %251, %252 : vector<2x8x8xf32>
    %cst_109 = arith.constant dense<0xFF800000> : vector<2x8xf32>
    %254 = vector.multi_reduction <maximumf>, %253, %cst_109 [2] : vector<2x8x8xf32> to vector<2x8xf32>
    %255 = vector.shape_cast %254 : vector<2x8xf32> to vector<2x8x1xf32>
    %256 = vector.broadcast %255 : vector<2x8x1xf32> to vector<2x8x8xf32>
    %257 = arith.subf %253, %256 : vector<2x8x8xf32>
    %258 = math.exp %257 : vector<2x8x8xf32>
    %cst_110 = arith.constant dense<0.000000e+00> : vector<2x8xf32>
    %259 = vector.multi_reduction <add>, %258, %cst_110 [2] : vector<2x8x8xf32> to vector<2x8xf32>
    %260 = vector.shape_cast %259 : vector<2x8xf32> to vector<2x8x1xf32>
    %261 = tpu.reciprocal %260 {approx = true} : vector<2x8x1xf32> -> vector<2x8x1xf32>
    %262 = vector.broadcast %261 : vector<2x8x1xf32> to vector<2x8x8xf32>
    %263 = arith.mulf %258, %262 : vector<2x8x8xf32>
    %264 = arith.truncf %263 : vector<2x8x8xf32> to vector<2x8x8xbf16>
    %265 = arith.truncf %248 : vector<2x8x8xf32> to vector<2x8x8xbf16>
    "tpu.trace_start"() <{level = 10 : i32, message = "bqk,bkd->bqd"}> : () -> ()
    %cst_111 = arith.constant dense<0.000000e+00> : vector<2x8x8xf32>
    %266 = tpu.matmul %264, %265, %cst_111 {dimension_numbers = #tpu.dot_dimension_numbers<[2], [1], [1], [2], [0, 0, 0, 1, 1, 2], [0], [0]>} : vector<2x8x8xbf16>, vector<2x8x8xbf16>, vector<2x8x8xf32> -> vector<2x8x8xf32>
    "tpu.trace_stop"() : () -> ()
    %267 = vector.shape_cast %266 : vector<2x8x8xf32> to vector<16x8xf32>
    %268 = vector.extract_strided_slice %217 {offsets = [0, 16], sizes = [16, 8], strides = [1, 1]} : vector<16x96xf32> to vector<16x8xf32>
    %269 = vector.shape_cast %268 : vector<16x8xf32> to vector<2x8x8xf32>
    %270 = vector.extract_strided_slice %217 {offsets = [0, 48], sizes = [16, 8], strides = [1, 1]} : vector<16x96xf32> to vector<16x8xf32>
    %271 = vector.shape_cast %270 : vector<16x8xf32> to vector<2x8x8xf32>
    %272 = vector.extract_strided_slice %217 {offsets = [0, 80], sizes = [16, 8], strides = [1, 1]} : vector<16x96xf32> to vector<16x8xf32>
    %273 = vector.shape_cast %272 : vector<16x8xf32> to vector<2x8x8xf32>
    %274 = arith.truncf %269 : vector<2x8x8xf32> to vector<2x8x8xbf16>
    %275 = arith.truncf %271 : vector<2x8x8xf32> to vector<2x8x8xbf16>
    "tpu.trace_start"() <{level = 10 : i32, message = "bqd,bkd->bqk"}> : () -> ()
    %cst_112 = arith.constant dense<0.000000e+00> : vector<2x8x8xf32>
    %276 = tpu.matmul %274, %275, %cst_112 {dimension_numbers = #tpu.dot_dimension_numbers<[2], [2], [1], [1], [0, 0, 0, 1, 1, 1], [0], [0]>} : vector<2x8x8xbf16>, vector<2x8x8xbf16>, vector<2x8x8xf32> -> vector<2x8x8xf32>
    "tpu.trace_stop"() : () -> ()
    %cst_113 = arith.constant 0.353553385 : f32
    %277 = vector.broadcast %cst_113 : f32 to vector<2x8x8xf32>
    %278 = arith.mulf %276, %277 : vector<2x8x8xf32>
    %cst_114 = arith.constant dense<0xFF800000> : vector<2x8xf32>
    %279 = vector.multi_reduction <maximumf>, %278, %cst_114 [2] : vector<2x8x8xf32> to vector<2x8xf32>
    %280 = vector.shape_cast %279 : vector<2x8xf32> to vector<2x8x1xf32>
    %281 = vector.broadcast %280 : vector<2x8x1xf32> to vector<2x8x8xf32>
    %282 = arith.subf %278, %281 : vector<2x8x8xf32>
    %283 = math.exp %282 : vector<2x8x8xf32>
    %cst_115 = arith.constant dense<0.000000e+00> : vector<2x8xf32>
    %284 = vector.multi_reduction <add>, %283, %cst_115 [2] : vector<2x8x8xf32> to vector<2x8xf32>
    %285 = vector.shape_cast %284 : vector<2x8xf32> to vector<2x8x1xf32>
    %286 = tpu.reciprocal %285 {approx = true} : vector<2x8x1xf32> -> vector<2x8x1xf32>
    %287 = vector.broadcast %286 : vector<2x8x1xf32> to vector<2x8x8xf32>
    %288 = arith.mulf %283, %287 : vector<2x8x8xf32>
    %289 = arith.truncf %288 : vector<2x8x8xf32> to vector<2x8x8xbf16>
    %290 = arith.truncf %273 : vector<2x8x8xf32> to vector<2x8x8xbf16>
    "tpu.trace_start"() <{level = 10 : i32, message = "bqk,bkd->bqd"}> : () -> ()
    %cst_116 = arith.constant dense<0.000000e+00> : vector<2x8x8xf32>
    %291 = tpu.matmul %289, %290, %cst_116 {dimension_numbers = #tpu.dot_dimension_numbers<[2], [1], [1], [2], [0, 0, 0, 1, 1, 2], [0], [0]>} : vector<2x8x8xbf16>, vector<2x8x8xbf16>, vector<2x8x8xf32> -> vector<2x8x8xf32>
    "tpu.trace_stop"() : () -> ()
    %292 = vector.shape_cast %291 : vector<2x8x8xf32> to vector<16x8xf32>
    %293 = vector.extract_strided_slice %217 {offsets = [0, 24], sizes = [16, 8], strides = [1, 1]} : vector<16x96xf32> to vector<16x8xf32>
    %294 = vector.shape_cast %293 : vector<16x8xf32> to vector<2x8x8xf32>
    %295 = vector.extract_strided_slice %217 {offsets = [0, 56], sizes = [16, 8], strides = [1, 1]} : vector<16x96xf32> to vector<16x8xf32>
    %296 = vector.shape_cast %295 : vector<16x8xf32> to vector<2x8x8xf32>
    %297 = vector.extract_strided_slice %217 {offsets = [0, 88], sizes = [16, 8], strides = [1, 1]} : vector<16x96xf32> to vector<16x8xf32>
    %298 = vector.shape_cast %297 : vector<16x8xf32> to vector<2x8x8xf32>
    %299 = arith.truncf %294 : vector<2x8x8xf32> to vector<2x8x8xbf16>
    %300 = arith.truncf %296 : vector<2x8x8xf32> to vector<2x8x8xbf16>
    "tpu.trace_start"() <{level = 10 : i32, message = "bqd,bkd->bqk"}> : () -> ()
    %cst_117 = arith.constant dense<0.000000e+00> : vector<2x8x8xf32>
    %301 = tpu.matmul %299, %300, %cst_117 {dimension_numbers = #tpu.dot_dimension_numbers<[2], [2], [1], [1], [0, 0, 0, 1, 1, 1], [0], [0]>} : vector<2x8x8xbf16>, vector<2x8x8xbf16>, vector<2x8x8xf32> -> vector<2x8x8xf32>
    "tpu.trace_stop"() : () -> ()
    %cst_118 = arith.constant 0.353553385 : f32
    %302 = vector.broadcast %cst_118 : f32 to vector<2x8x8xf32>
    %303 = arith.mulf %301, %302 : vector<2x8x8xf32>
    %cst_119 = arith.constant dense<0xFF800000> : vector<2x8xf32>
    %304 = vector.multi_reduction <maximumf>, %303, %cst_119 [2] : vector<2x8x8xf32> to vector<2x8xf32>
    %305 = vector.shape_cast %304 : vector<2x8xf32> to vector<2x8x1xf32>
    %306 = vector.broadcast %305 : vector<2x8x1xf32> to vector<2x8x8xf32>
    %307 = arith.subf %303, %306 : vector<2x8x8xf32>
    %308 = math.exp %307 : vector<2x8x8xf32>
    %cst_120 = arith.constant dense<0.000000e+00> : vector<2x8xf32>
    %309 = vector.multi_reduction <add>, %308, %cst_120 [2] : vector<2x8x8xf32> to vector<2x8xf32>
    %310 = vector.shape_cast %309 : vector<2x8xf32> to vector<2x8x1xf32>
    %311 = tpu.reciprocal %310 {approx = true} : vector<2x8x1xf32> -> vector<2x8x1xf32>
    %312 = vector.broadcast %311 : vector<2x8x1xf32> to vector<2x8x8xf32>
    %313 = arith.mulf %308, %312 : vector<2x8x8xf32>
    %314 = arith.truncf %313 : vector<2x8x8xf32> to vector<2x8x8xbf16>
    %315 = arith.truncf %298 : vector<2x8x8xf32> to vector<2x8x8xbf16>
    "tpu.trace_start"() <{level = 10 : i32, message = "bqk,bkd->bqd"}> : () -> ()
    %cst_121 = arith.constant dense<0.000000e+00> : vector<2x8x8xf32>
    %316 = tpu.matmul %314, %315, %cst_121 {dimension_numbers = #tpu.dot_dimension_numbers<[2], [1], [1], [2], [0, 0, 0, 1, 1, 2], [0], [0]>} : vector<2x8x8xbf16>, vector<2x8x8xbf16>, vector<2x8x8xf32> -> vector<2x8x8xf32>
    "tpu.trace_stop"() : () -> ()
    %317 = vector.shape_cast %316 : vector<2x8x8xf32> to vector<16x8xf32>
    %318 = tpu.concatenate %242, %267, %292, %317 in 1 : vector<16x8xf32>, vector<16x8xf32>, vector<16x8xf32>, vector<16x8xf32> -> vector<16x32xf32>
    %319 = arith.truncf %318 : vector<16x32xf32> to vector<16x32xbf16>
    %c0_122 = arith.constant 0 : index
    %c1_123 = arith.constant 1 : index
    %c0_124 = arith.constant 0 : index
    %c0_125 = arith.constant 0 : index
    %320 = vector.load %arg7[%c0_122, %c1_123, %c0_124, %c0_125] : memref<1x2x32x32xbf16, #tpu.memory_space<vmem>>, vector<1x1x32x32xbf16>
    %321 = vector.shape_cast %320 : vector<1x1x32x32xbf16> to vector<32x32xbf16>
    %cst_126 = arith.constant dense<0.000000e+00> : vector<16x32xf32>
    %322 = tpu.matmul %319, %321, %cst_126 {dimension_numbers = #tpu.dot_dimension_numbers<[1], [0], [0], [1], [0, 0, 1, 1], [], []>} : vector<16x32xbf16>, vector<32x32xbf16>, vector<16x32xf32> -> vector<16x32xf32>
    %c0_127 = arith.constant 0 : index
    %c1_128 = arith.constant 1 : index
    %c0_129 = arith.constant 0 : index
    %c0_130 = arith.constant 0 : index
    %323 = vector.load %arg8[%c0_127, %c1_128, %c0_129, %c0_130] : memref<1x2x1x32xf32, #tpu.memory_space<vmem>>, vector<1x1x1x32xf32>
    %324 = vector.shape_cast %323 : vector<1x1x1x32xf32> to vector<1x32xf32>
    %325 = vector.broadcast %324 : vector<1x32xf32> to vector<16x32xf32>
    %326 = arith.addf %322, %325 : vector<16x32xf32>
    %327 = arith.addf %209, %326 : vector<16x32xf32>
    %c0_131 = arith.constant 0 : index
    %c1_132 = arith.constant 1 : index
    %c0_133 = arith.constant 0 : index
    %c0_134 = arith.constant 0 : index
    %328 = vector.load %arg9[%c0_131, %c1_132, %c0_133, %c0_134] : memref<1x2x1x32xf32, #tpu.memory_space<vmem>>, vector<1x1x1x32xf32>
    %329 = vector.shape_cast %328 : vector<1x1x1x32xf32> to vector<1x32xf32>
    %c0_135 = arith.constant 0 : index
    %c1_136 = arith.constant 1 : index
    %c0_137 = arith.constant 0 : index
    %c0_138 = arith.constant 0 : index
    %330 = vector.load %arg10[%c0_135, %c1_136, %c0_137, %c0_138] : memref<1x2x1x32xf32, #tpu.memory_space<vmem>>, vector<1x1x1x32xf32>
    %331 = vector.shape_cast %330 : vector<1x1x1x32xf32> to vector<1x32xf32>
    %cst_139 = arith.constant dense<0.000000e+00> : vector<16xf32>
    %332 = vector.multi_reduction <add>, %327, %cst_139 [1] : vector<16x32xf32> to vector<16xf32>
    %333 = vector.shape_cast %332 : vector<16xf32> to vector<16x1xf32>
    %cst_140 = arith.constant 3.200000e+01 : f32
    %334 = vector.broadcast %cst_140 : f32 to vector<16x1xf32>
    %335 = arith.divf %333, %334 : vector<16x1xf32>
    %336 = vector.broadcast %335 : vector<16x1xf32> to vector<16x32xf32>
    %337 = arith.subf %327, %336 : vector<16x32xf32>
    %338 = vector.broadcast %335 : vector<16x1xf32> to vector<16x32xf32>
    %339 = arith.subf %327, %338 : vector<16x32xf32>
    %340 = arith.mulf %337, %339 : vector<16x32xf32>
    %cst_141 = arith.constant dense<0.000000e+00> : vector<16xf32>
    %341 = vector.multi_reduction <add>, %340, %cst_141 [1] : vector<16x32xf32> to vector<16xf32>
    %342 = vector.shape_cast %341 : vector<16xf32> to vector<16x1xf32>
    %cst_142 = arith.constant 3.200000e+01 : f32
    %343 = vector.broadcast %cst_142 : f32 to vector<16x1xf32>
    %344 = arith.divf %342, %343 : vector<16x1xf32>
    %345 = vector.broadcast %335 : vector<16x1xf32> to vector<16x32xf32>
    %346 = arith.subf %327, %345 : vector<16x32xf32>
    %cst_143 = arith.constant 9.99999974E-6 : f32
    %347 = vector.broadcast %cst_143 : f32 to vector<16x1xf32>
    %348 = arith.addf %344, %347 : vector<16x1xf32>
    %349 = math.rsqrt %348 : vector<16x1xf32>
    %350 = vector.broadcast %349 : vector<16x1xf32> to vector<16x32xf32>
    %351 = arith.mulf %346, %350 : vector<16x32xf32>
    %352 = vector.broadcast %329 : vector<1x32xf32> to vector<16x32xf32>
    %353 = arith.mulf %351, %352 : vector<16x32xf32>
    %354 = vector.broadcast %331 : vector<1x32xf32> to vector<16x32xf32>
    %355 = arith.addf %353, %354 : vector<16x32xf32>
    %356 = arith.truncf %355 : vector<16x32xf32> to vector<16x32xbf16>
    %c0_144 = arith.constant 0 : index
    %c1_145 = arith.constant 1 : index
    %c0_146 = arith.constant 0 : index
    %c0_147 = arith.constant 0 : index
    %357 = vector.load %arg11[%c0_144, %c1_145, %c0_146, %c0_147] : memref<1x2x32x2048xbf16, #tpu.memory_space<vmem>>, vector<1x1x32x2048xbf16>
    %358 = vector.shape_cast %357 : vector<1x1x32x2048xbf16> to vector<32x2048xbf16>
    %cst_148 = arith.constant dense<0.000000e+00> : vector<16x2048xf32>
    %359 = tpu.matmul %356, %358, %cst_148 {dimension_numbers = #tpu.dot_dimension_numbers<[1], [0], [0], [1], [0, 0, 1, 1], [], []>} : vector<16x32xbf16>, vector<32x2048xbf16>, vector<16x2048xf32> -> vector<16x2048xf32>
    %c0_149 = arith.constant 0 : index
    %c1_150 = arith.constant 1 : index
    %c0_151 = arith.constant 0 : index
    %c0_152 = arith.constant 0 : index
    %360 = vector.load %arg12[%c0_149, %c1_150, %c0_151, %c0_152] : memref<1x2x1x2048xf32, #tpu.memory_space<vmem>>, vector<1x1x1x2048xf32>
    %361 = vector.shape_cast %360 : vector<1x1x1x2048xf32> to vector<1x2048xf32>
    %362 = vector.broadcast %361 : vector<1x2048xf32> to vector<16x2048xf32>
    %363 = arith.addf %359, %362 : vector<16x2048xf32>
    %cst_153 = arith.constant 0.000000e+00 : f32
    %364 = vector.broadcast %cst_153 : f32 to vector<16x2048xf32>
    %365 = arith.maximumf %363, %364 : vector<16x2048xf32>
    %366 = arith.truncf %365 : vector<16x2048xf32> to vector<16x2048xbf16>
    %c0_154 = arith.constant 0 : index
    %c1_155 = arith.constant 1 : index
    %c0_156 = arith.constant 0 : index
    %c0_157 = arith.constant 0 : index
    %367 = vector.load %arg13[%c0_154, %c1_155, %c0_156, %c0_157] : memref<1x2x2048x32xbf16, #tpu.memory_space<vmem>>, vector<1x1x2048x32xbf16>
    %368 = vector.shape_cast %367 : vector<1x1x2048x32xbf16> to vector<2048x32xbf16>
    %cst_158 = arith.constant dense<0.000000e+00> : vector<16x32xf32>
    %369 = tpu.matmul %366, %368, %cst_158 {dimension_numbers = #tpu.dot_dimension_numbers<[1], [0], [0], [1], [0, 0, 1, 1], [], []>} : vector<16x2048xbf16>, vector<2048x32xbf16>, vector<16x32xf32> -> vector<16x32xf32>
    %c0_159 = arith.constant 0 : index
    %c1_160 = arith.constant 1 : index
    %c0_161 = arith.constant 0 : index
    %c0_162 = arith.constant 0 : index
    %370 = vector.load %arg14[%c0_159, %c1_160, %c0_161, %c0_162] : memref<1x2x1x32xf32, #tpu.memory_space<vmem>>, vector<1x1x1x32xf32>
    %371 = vector.shape_cast %370 : vector<1x1x1x32xf32> to vector<1x32xf32>
    %372 = vector.broadcast %371 : vector<1x32xf32> to vector<16x32xf32>
    %373 = arith.addf %369, %372 : vector<16x32xf32>
    %374 = arith.addf %355, %373 : vector<16x32xf32>
    %c0_163 = arith.constant 0 : index
    %c1_164 = arith.constant 1 : index
    %c0_165 = arith.constant 0 : index
    %c0_166 = arith.constant 0 : index
    %375 = vector.load %arg15[%c0_163, %c1_164, %c0_165, %c0_166] : memref<1x2x1x32xf32, #tpu.memory_space<vmem>>, vector<1x1x1x32xf32>
    %376 = vector.shape_cast %375 : vector<1x1x1x32xf32> to vector<1x32xf32>
    %c0_167 = arith.constant 0 : index
    %c1_168 = arith.constant 1 : index
    %c0_169 = arith.constant 0 : index
    %c0_170 = arith.constant 0 : index
    %377 = vector.load %arg16[%c0_167, %c1_168, %c0_169, %c0_170] : memref<1x2x1x32xf32, #tpu.memory_space<vmem>>, vector<1x1x1x32xf32>
    %378 = vector.shape_cast %377 : vector<1x1x1x32xf32> to vector<1x32xf32>
    %cst_171 = arith.constant dense<0.000000e+00> : vector<16xf32>
    %379 = vector.multi_reduction <add>, %374, %cst_171 [1] : vector<16x32xf32> to vector<16xf32>
    %380 = vector.shape_cast %379 : vector<16xf32> to vector<16x1xf32>
    %cst_172 = arith.constant 3.200000e+01 : f32
    %381 = vector.broadcast %cst_172 : f32 to vector<16x1xf32>
    %382 = arith.divf %380, %381 : vector<16x1xf32>
    %383 = vector.broadcast %382 : vector<16x1xf32> to vector<16x32xf32>
    %384 = arith.subf %374, %383 : vector<16x32xf32>
    %385 = vector.broadcast %382 : vector<16x1xf32> to vector<16x32xf32>
    %386 = arith.subf %374, %385 : vector<16x32xf32>
    %387 = arith.mulf %384, %386 : vector<16x32xf32>
    %cst_173 = arith.constant dense<0.000000e+00> : vector<16xf32>
    %388 = vector.multi_reduction <add>, %387, %cst_173 [1] : vector<16x32xf32> to vector<16xf32>
    %389 = vector.shape_cast %388 : vector<16xf32> to vector<16x1xf32>
    %cst_174 = arith.constant 3.200000e+01 : f32
    %390 = vector.broadcast %cst_174 : f32 to vector<16x1xf32>
    %391 = arith.divf %389, %390 : vector<16x1xf32>
    %392 = vector.broadcast %382 : vector<16x1xf32> to vector<16x32xf32>
    %393 = arith.subf %374, %392 : vector<16x32xf32>
    %cst_175 = arith.constant 9.99999974E-6 : f32
    %394 = vector.broadcast %cst_175 : f32 to vector<16x1xf32>
    %395 = arith.addf %391, %394 : vector<16x1xf32>
    %396 = math.rsqrt %395 : vector<16x1xf32>
    %397 = vector.broadcast %396 : vector<16x1xf32> to vector<16x32xf32>
    %398 = arith.mulf %393, %397 : vector<16x32xf32>
    %399 = vector.broadcast %376 : vector<1x32xf32> to vector<16x32xf32>
    %400 = arith.mulf %398, %399 : vector<16x32xf32>
    %401 = vector.broadcast %378 : vector<1x32xf32> to vector<16x32xf32>
    %402 = arith.addf %400, %401 : vector<16x32xf32>
    %c0_176 = arith.constant 0 : index
    %c0_177 = arith.constant 0 : index
    %c0_178 = arith.constant 0 : index
    %403 = vector.load %arg17[%c0_176, %c0_177, %c0_178] : memref<1x1x32xf32, #tpu.memory_space<vmem>>, vector<1x1x32xf32>
    %404 = vector.shape_cast %403 : vector<1x1x32xf32> to vector<1x32xf32>
    %c0_179 = arith.constant 0 : index
    %c0_180 = arith.constant 0 : index
    %c0_181 = arith.constant 0 : index
    %405 = vector.load %arg18[%c0_179, %c0_180, %c0_181] : memref<1x1x32xf32, #tpu.memory_space<vmem>>, vector<1x1x32xf32>
    %406 = vector.shape_cast %405 : vector<1x1x32xf32> to vector<1x32xf32>
    %cst_182 = arith.constant dense<0.000000e+00> : vector<16xf32>
    %407 = vector.multi_reduction <add>, %402, %cst_182 [1] : vector<16x32xf32> to vector<16xf32>
    %408 = vector.shape_cast %407 : vector<16xf32> to vector<16x1xf32>
    %cst_183 = arith.constant 3.200000e+01 : f32
    %409 = vector.broadcast %cst_183 : f32 to vector<16x1xf32>
    %410 = arith.divf %408, %409 : vector<16x1xf32>
    %411 = vector.broadcast %410 : vector<16x1xf32> to vector<16x32xf32>
    %412 = arith.subf %402, %411 : vector<16x32xf32>
    %413 = vector.broadcast %410 : vector<16x1xf32> to vector<16x32xf32>
    %414 = arith.subf %402, %413 : vector<16x32xf32>
    %415 = arith.mulf %412, %414 : vector<16x32xf32>
    %cst_184 = arith.constant dense<0.000000e+00> : vector<16xf32>
    %416 = vector.multi_reduction <add>, %415, %cst_184 [1] : vector<16x32xf32> to vector<16xf32>
    %417 = vector.shape_cast %416 : vector<16xf32> to vector<16x1xf32>
    %cst_185 = arith.constant 3.200000e+01 : f32
    %418 = vector.broadcast %cst_185 : f32 to vector<16x1xf32>
    %419 = arith.divf %417, %418 : vector<16x1xf32>
    %420 = vector.broadcast %410 : vector<16x1xf32> to vector<16x32xf32>
    %421 = arith.subf %402, %420 : vector<16x32xf32>
    %cst_186 = arith.constant 9.99999974E-6 : f32
    %422 = vector.broadcast %cst_186 : f32 to vector<16x1xf32>
    %423 = arith.addf %419, %422 : vector<16x1xf32>
    %424 = math.rsqrt %423 : vector<16x1xf32>
    %425 = vector.broadcast %424 : vector<16x1xf32> to vector<16x32xf32>
    %426 = arith.mulf %421, %425 : vector<16x32xf32>
    %427 = vector.broadcast %404 : vector<1x32xf32> to vector<16x32xf32>
    %428 = arith.mulf %426, %427 : vector<16x32xf32>
    %429 = vector.broadcast %406 : vector<1x32xf32> to vector<16x32xf32>
    %430 = arith.addf %428, %429 : vector<16x32xf32>
    %431 = vector.shape_cast %430 : vector<16x32xf32> to vector<2x8x32xf32>
    %432 = vector.extract_strided_slice %431 {offsets = [0, 0, 0], sizes = [2, 1, 32], strides = [1, 1, 1]} : vector<2x8x32xf32> to vector<2x1x32xf32>
    %433 = vector.shape_cast %432 : vector<2x1x32xf32> to vector<2x32xf32>
    %434 = vector.extract_strided_slice %431 {offsets = [0, 1, 0], sizes = [2, 1, 32], strides = [1, 1, 1]} : vector<2x8x32xf32> to vector<2x1x32xf32>
    %435 = vector.shape_cast %434 : vector<2x1x32xf32> to vector<2x32xf32>
    %436 = vector.extract_strided_slice %431 {offsets = [0, 2, 0], sizes = [2, 1, 32], strides = [1, 1, 1]} : vector<2x8x32xf32> to vector<2x1x32xf32>
    %437 = vector.shape_cast %436 : vector<2x1x32xf32> to vector<2x32xf32>
    %438 = vector.extract_strided_slice %431 {offsets = [0, 3, 0], sizes = [2, 1, 32], strides = [1, 1, 1]} : vector<2x8x32xf32> to vector<2x1x32xf32>
    %439 = vector.shape_cast %438 : vector<2x1x32xf32> to vector<2x32xf32>
    %440 = vector.extract_strided_slice %431 {offsets = [0, 4, 0], sizes = [2, 1, 32], strides = [1, 1, 1]} : vector<2x8x32xf32> to vector<2x1x32xf32>
    %441 = vector.shape_cast %440 : vector<2x1x32xf32> to vector<2x32xf32>
    %442 = vector.extract_strided_slice %431 {offsets = [0, 5, 0], sizes = [2, 1, 32], strides = [1, 1, 1]} : vector<2x8x32xf32> to vector<2x1x32xf32>
    %443 = vector.shape_cast %442 : vector<2x1x32xf32> to vector<2x32xf32>
    %444 = vector.extract_strided_slice %431 {offsets = [0, 6, 0], sizes = [2, 1, 32], strides = [1, 1, 1]} : vector<2x8x32xf32> to vector<2x1x32xf32>
    %445 = vector.shape_cast %444 : vector<2x1x32xf32> to vector<2x32xf32>
    %446 = vector.extract_strided_slice %431 {offsets = [0, 7, 0], sizes = [2, 1, 32], strides = [1, 1, 1]} : vector<2x8x32xf32> to vector<2x1x32xf32>
    %447 = vector.shape_cast %446 : vector<2x1x32xf32> to vector<2x32xf32>
    %448 = tpu.concatenate %433, %435, %437, %439, %441, %443, %445, %447 in 1 : vector<2x32xf32>, vector<2x32xf32>, vector<2x32xf32>, vector<2x32xf32>, vector<2x32xf32>, vector<2x32xf32>, vector<2x32xf32>, vector<2x32xf32> -> vector<2x256xf32>
    %c0_187 = arith.constant 0 : index
    %c0_188 = arith.constant 0 : index
    %c0_189 = arith.constant 0 : index
    %449 = vector.load %arg19[%c0_187, %c0_188, %c0_189] : memref<1x1x256xf32, #tpu.memory_space<vmem>>, vector<1x1x256xf32>
    %450 = vector.shape_cast %449 : vector<1x1x256xf32> to vector<1x256xf32>
    %451 = vector.broadcast %450 : vector<1x256xf32> to vector<2x256xf32>
    %452 = arith.mulf %448, %451 : vector<2x256xf32>
    %c0_190 = arith.constant 0 : index
    %c0_191 = arith.constant 0 : index
    %c0_192 = arith.constant 0 : index
    %453 = vector.load %arg20[%c0_190, %c0_191, %c0_192] : memref<1x1x256xf32, #tpu.memory_space<vmem>>, vector<1x1x256xf32>
    %454 = vector.shape_cast %453 : vector<1x1x256xf32> to vector<1x256xf32>
    %455 = vector.broadcast %454 : vector<1x256xf32> to vector<2x256xf32>
    %456 = arith.addf %452, %455 : vector<2x256xf32>
    %457 = arith.truncf %456 : vector<2x256xf32> to vector<2x256xbf16>
    %c0_193 = arith.constant 0 : index
    %c0_194 = arith.constant 0 : index
    %c0_195 = arith.constant 0 : index
    %458 = vector.load %arg21[%c0_193, %c0_194, %c0_195] : memref<1x256x32xbf16, #tpu.memory_space<vmem>>, vector<1x256x32xbf16>
    %459 = vector.shape_cast %458 : vector<1x256x32xbf16> to vector<256x32xbf16>
    %cst_196 = arith.constant dense<0.000000e+00> : vector<2x32xf32>
    %460 = tpu.matmul %457, %459, %cst_196 {dimension_numbers = #tpu.dot_dimension_numbers<[1], [0], [0], [1], [0, 0, 1, 1], [], []>} : vector<2x256xbf16>, vector<256x32xbf16>, vector<2x32xf32> -> vector<2x32xf32>
    %c0_197 = arith.constant 0 : index
    %c0_198 = arith.constant 0 : index
    %c0_199 = arith.constant 0 : index
    %461 = vector.load %arg22[%c0_197, %c0_198, %c0_199] : memref<1x1x32xf32, #tpu.memory_space<vmem>>, vector<1x1x32xf32>
    %462 = vector.shape_cast %461 : vector<1x1x32xf32> to vector<1x32xf32>
    %463 = vector.broadcast %462 : vector<1x32xf32> to vector<2x32xf32>
    %464 = arith.addf %460, %463 : vector<2x32xf32>
    %c0_200 = arith.constant 0 : index
    %c0_201 = arith.constant 0 : index
    %c0_202 = arith.constant 0 : index
    %465 = vector.load %arg23[%c0_200, %c0_201, %c0_202] : memref<1x2x32xf32, #tpu.memory_space<vmem>>, vector<1x2x32xf32>
    %466 = vector.shape_cast %465 : vector<1x2x32xf32> to vector<2x32xf32>
    %467 = vector.shape_cast %464 : vector<2x32xf32> to vector<1x2x32xf32>
    tpu.vector_store %arg23[%c0_200, %c0_201, %c0_202], %467 {strides = array<i32>} : memref<1x2x32xf32, #tpu.memory_space<vmem>>, vector<1x2x32xf32>,
    return
  }
  func.func @transform_0(%arg0: i32) -> (i32, i32, i32) {
    %c0_i32 = arith.constant 0 : i32
    %c0_i32_0 = arith.constant 0 : i32
    %c0_i32_1 = arith.constant 0 : i32
    return %arg0, %c0_i32, %c0_i32_0 : i32, i32, i32
  }
  func.func @transform_1(%arg0: i32) -> (i32, i32, i32) {
    %c0_i32 = arith.constant 0 : i32
    %c0_i32_0 = arith.constant 0 : i32
    %c0_i32_1 = arith.constant 0 : i32
    return %arg0, %c0_i32, %c0_i32_0 : i32, i32, i32
  }
  func.func @transform_2(%arg0: i32) -> (i32, i32, i32) {
    %c0_i32 = arith.constant 0 : i32
    %c0_i32_0 = arith.constant 0 : i32
    %c0_i32_1 = arith.constant 0 : i32
    return %arg0, %c0_i32, %c0_i32_0 : i32, i32, i32
  }
  func.func @transform_3(%arg0: i32) -> (i32, i32, i32) {
    %c0_i32 = arith.constant 0 : i32
    %c0_i32_0 = arith.constant 0 : i32
    %c0_i32_1 = arith.constant 0 : i32
    return %arg0, %c0_i32, %c0_i32_0 : i32, i32, i32
  }
  func.func @transform_4(%arg0: i32) -> (i32, i32, i32, i32) {
    %c0_i32 = arith.constant 0 : i32
    %c0_i32_0 = arith.constant 0 : i32
    %c0_i32_1 = arith.constant 0 : i32
    %c0_i32_2 = arith.constant 0 : i32
    return %arg0, %c0_i32, %c0_i32_0, %c0_i32_1 : i32, i32, i32, i32
  }
  func.func @transform_5(%arg0: i32) -> (i32, i32, i32, i32) {
    %c0_i32 = arith.constant 0 : i32
    %c0_i32_0 = arith.constant 0 : i32
    %c0_i32_1 = arith.constant 0 : i32
    %c0_i32_2 = arith.constant 0 : i32
    return %arg0, %c0_i32, %c0_i32_0, %c0_i32_1 : i32, i32, i32, i32
  }
  func.func @transform_6(%arg0: i32) -> (i32, i32, i32, i32) {
    %c0_i32 = arith.constant 0 : i32
    %c0_i32_0 = arith.constant 0 : i32
    %c0_i32_1 = arith.constant 0 : i32
    %c0_i32_2 = arith.constant 0 : i32
    return %arg0, %c0_i32, %c0_i32_0, %c0_i32_1 : i32, i32, i32, i32
  }
  func.func @transform_7(%arg0: i32) -> (i32, i32, i32, i32) {
    %c0_i32 = arith.constant 0 : i32
    %c0_i32_0 = arith.constant 0 : i32
    %c0_i32_1 = arith.constant 0 : i32
    %c0_i32_2 = arith.constant 0 : i32
    return %arg0, %c0_i32, %c0_i32_0, %c0_i32_1 : i32, i32, i32, i32
  }
  func.func @transform_8(%arg0: i32) -> (i32, i32, i32, i32) {
    %c0_i32 = arith.constant 0 : i32
    %c0_i32_0 = arith.constant 0 : i32
    %c0_i32_1 = arith.constant 0 : i32
    %c0_i32_2 = arith.constant 0 : i32
    return %arg0, %c0_i32, %c0_i32_0, %c0_i32_1 : i32, i32, i32, i32
  }
  func.func @transform_9(%arg0: i32) -> (i32, i32, i32, i32) {
    %c0_i32 = arith.constant 0 : i32
    %c0_i32_0 = arith.constant 0 : i32
    %c0_i32_1 = arith.constant 0 : i32
    %c0_i32_2 = arith.constant 0 : i32
    return %arg0, %c0_i32, %c0_i32_0, %c0_i32_1 : i32, i32, i32, i32
  }
  func.func @transform_10(%arg0: i32) -> (i32, i32, i32, i32) {
    %c0_i32 = arith.constant 0 : i32
    %c0_i32_0 = arith.constant 0 : i32
    %c0_i32_1 = arith.constant 0 : i32
    %c0_i32_2 = arith.constant 0 : i32
    return %arg0, %c0_i32, %c0_i32_0, %c0_i32_1 : i32, i32, i32, i32
  }
  func.func @transform_11(%arg0: i32) -> (i32, i32, i32, i32) {
    %c0_i32 = arith.constant 0 : i32
    %c0_i32_0 = arith.constant 0 : i32
    %c0_i32_1 = arith.constant 0 : i32
    %c0_i32_2 = arith.constant 0 : i32
    return %arg0, %c0_i32, %c0_i32_0, %c0_i32_1 : i32, i32, i32, i32
  }
  func.func @transform_12(%arg0: i32) -> (i32, i32, i32, i32) {
    %c0_i32 = arith.constant 0 : i32
    %c0_i32_0 = arith.constant 0 : i32
    %c0_i32_1 = arith.constant 0 : i32
    %c0_i32_2 = arith.constant 0 : i32
    return %arg0, %c0_i32, %c0_i32_0, %c0_i32_1 : i32, i32, i32, i32
  }
  func.func @transform_13(%arg0: i32) -> (i32, i32, i32, i32) {
    %c0_i32 = arith.constant 0 : i32
    %c0_i32_0 = arith.constant 0 : i32
    %c0_i32_1 = arith.constant 0 : i32
    %c0_i32_2 = arith.constant 0 : i32
    return %arg0, %c0_i32, %c0_i32_0, %c0_i32_1 : i32, i32, i32, i32
  }
  func.func @transform_14(%arg0: i32) -> (i32, i32, i32, i32) {
    %c0_i32 = arith.constant 0 : i32
    %c0_i32_0 = arith.constant 0 : i32
    %c0_i32_1 = arith.constant 0 : i32
    %c0_i32_2 = arith.constant 0 : i32
    return %arg0, %c0_i32, %c0_i32_0, %c0_i32_1 : i32, i32, i32, i32
  }
  func.func @transform_15(%arg0: i32) -> (i32, i32, i32, i32) {
    %c0_i32 = arith.constant 0 : i32
    %c0_i32_0 = arith.constant 0 : i32
    %c0_i32_1 = arith.constant 0 : i32
    %c0_i32_2 = arith.constant 0 : i32
    return %arg0, %c0_i32, %c0_i32_0, %c0_i32_1 : i32, i32, i32, i32
  }
  func.func @transform_16(%arg0: i32) -> (i32, i32, i32) {
    %c0_i32 = arith.constant 0 : i32
    %c0_i32_0 = arith.constant 0 : i32
    %c0_i32_1 = arith.constant 0 : i32
    return %arg0, %c0_i32, %c0_i32_0 : i32, i32, i32
  }
  func.func @transform_17(%arg0: i32) -> (i32, i32, i32) {
    %c0_i32 = arith.constant 0 : i32
    %c0_i32_0 = arith.constant 0 : i32
    %c0_i32_1 = arith.constant 0 : i32
    return %arg0, %c0_i32, %c0_i32_0 : i32, i32, i32
  }
  func.func @transform_18(%arg0: i32) -> (i32, i32, i32) {
    %c0_i32 = arith.constant 0 : i32
    %c0_i32_0 = arith.constant 0 : i32
    %c0_i32_1 = arith.constant 0 : i32
    return %arg0, %c0_i32, %c0_i32_0 : i32, i32, i32
  }
  func.func @transform_19(%arg0: i32) -> (i32, i32, i32) {
    %c0_i32 = arith.constant 0 : i32
    %c0_i32_0 = arith.constant 0 : i32
    %c0_i32_1 = arith.constant 0 : i32
    return %arg0, %c0_i32, %c0_i32_0 : i32, i32, i32
  }
  func.func @transform_20(%arg0: i32) -> (i32, i32, i32) {
    %c0_i32 = arith.constant 0 : i32
    %c0_i32_0 = arith.constant 0 : i32
    %c0_i32_1 = arith.constant 0 : i32
    return %arg0, %c0_i32, %c0_i32_0 : i32, i32, i32
  }
  func.func @transform_21(%arg0: i32) -> (i32, i32, i32) {
    %c0_i32 = arith.constant 0 : i32
    %c0_i32_0 = arith.constant 0 : i32
    %c0_i32_1 = arith.constant 0 : i32
    return %arg0, %c0_i32, %c0_i32_0 : i32, i32, i32
  }
  func.func @transform_22(%arg0: i32) -> (i32, i32, i32) {
    %c0_i32 = arith.constant 0 : i32
    %c0_i32_0 = arith.constant 0 : i32
    %c0_i32_1 = arith.constant 0 : i32
    return %arg0, %c0_i32, %c0_i32_0 : i32, i32, i32
  }
}

</mosaic_0001>

<bundles_post_ra>
// kernel: dual_transformer_forward.3
= control target key start
LH: loop header
LB: loop body
LE: loop exit
PB: predicated region body
PF: predicated region fallthrough
CT: control target
= control target key end

     0   :  { %v183_v2 = vmov 0.0   ;;  %vm184_vm0 = vmmov 0   ;;  %s260_s0 = inlined_call_operand.vmem [shape: f32[2,2,32], index: 0, kind: input, shape index: {}]   ;;  %s261_s1 = inlined_call_operand.<no memory space> [shape: f32[1,1], index: 1, kind: input, shape index: {}]   ;;  %s262_s2 = inlined_call_operand.vmem [shape: f32[1,32], index: 2, kind: input, shape index: {}]   ;;  %s263_s3 = inlined_call_operand.vmem [shape: f32[1,32], index: 3, kind: input, shape index: {}]   ;;  %s264_s4 = inlined_call_operand.vmem [shape: bf16[32,5], index: 4, kind: input, shape index: {}]   ;;  %s265_s5 = inlined_call_operand.vmem [shape: f32[1,5], index: 5, kind: input, shape index: {}]   ;;  %s266_s6 = inlined_call_operand.hbm [shape: f32[2,5], index: 6, kind: output, shape index: {}]  }
   0x1   :  { %v157_v0 = vld [vmem:[%s264_s4] sm:$0xff]   ;;  %v28_v1 = vstv %s261_s1  ;;  %146 = vmatprep.subr.bf16.mxu0 %v183_v2  ;;  %v158_v3 = vld [vmem:[%s264_s4 + $0x8] sm:$0xff]   ;;  %150 = vmatprep.mubr.msk.bf16.mxu0 %vm184_vm0, %v183_v2  ;;  %s30_s7 = ssub.f32 1.0, %s261_s1 }
   0x2   :  { %147 = vmatpush3.bf16.msra.mxu0 %v157_v0  ;;  %v27_v4 = vld [vmem:[%s260_s0] sm:$0x3]  ;;  %v136_v5 = vld [vmem:[%s260_s0 + $0x2] sm:$0x3] }
   0x3   :  { %148 = vmatprep.subr.bf16.mxu0 %v183_v2  ;;  %v29_v6 = vmul.f32 %v28_v1, %v27_v4  ;;  %v33_v7 = vstv %s30_s7 }
   0x4   :  { %12 = vsyncpa [#allocation4], 0  ;;  %v34_v8 = vmul.f32 %v136_v5, %v33_v7  ;;  %v137_v9 = vld [vmem:[%s262_s2] ss:$0 sm:$0xff]  ;;  %vm76_vm1 = vcmask 261120   ;;  %s185_s13 = smov [#allocation3]  }
   0x5   :  { %v138_v11 = vld [vmem:[%s263_s3] ss:$0 sm:$0xff]  ;;  %s128_s14 = sshll.u32 %s185_s13, 4  ;;  %vm120_vm2 = vcmask 33792   ;;  %s129_s14 = int_to_ptr.vmem [resolvable:$true] %s128_s14 }
   0x6   :  { %149 = vmatpush3.bf16.msra.mxu0 %v158_v3  ;;  %v35_v10 = vadd.f32 %v34_v8, %v29_v6  ;;  %v139_v15 = vld [vmem:[%s265_s5] ss:$0 sm:$0xff]  ;;  %s159_s2 = scalar_lea.vmem %s129_s14, 32  ;;  %p164_p1 = scmp.lt.s32.totalorder %s129_s14, %s129_s14 }
   0x7   :  { %p160_p0 = scmp.ne.s32.totalorder %s129_s14, %s159_s2  ;;  %p165_p2 = scmp.lt.s32.totalorder %s159_s2, %s159_s2 }
   0x8   :  { %v43_v12 = vmul.f32 %v137_v9, %v35_v10 }
   0x9   :  { %p166_p3 = por %p165_p2, %p164_p1 }
   0xa   :  { %v51_v13 = vadd.f32 %v138_v11, %v43_v12 }
   0xb   :  { %p167_p4 = pnand %p166_p3, %p160_p0 }
   0xc   :  { %v52_v14 = vpack.c.bf16 %v51_v13, %v51_v13 }
   0xe   :  { %151 = vmatmul.mubr.msk.bf16.vlgmr.msra.gmra.mrb[0].mxu0 %vm76_vm1, %v52_v14 }
  0xe1   :  { %v114_v16 = vpop.f32.mrb[0].mxu0 }
  0xe2   :  { %v115_v17 = vadd.f32 %v139_v15, %v114_v16  ;;  %v152_v18 = vpop.f32.mrb[1].mxu0 }
  0xe3   :  { %v117_v19 = vpop.f32.mrb[2].mxu0 }
  0xe4   :  { %v153_v20 = vpop.f32.mrb[3].mxu0  ;;  %121 = vst.msk [vmem:[#allocation3] sm:$0x3] %vm120_vm2, %v115_v17 }
  0xe5   :  { %170 = shalt.err (!%p167_p4)
}
  0xe6   :  { %s171_s5 = scalar_lea.hbm %s266_s6, 32 }
  0xe7   :  { %p172_p5 = scmp.ne.s32.totalorder %s266_s6, %s171_s5  ;;  %p175_p6 = scmp.lt.u32.totalorder %s171_s5, %s266_s6 }
  0xe9   :  { %p177_p7 = pnand %p175_p6, %p172_p5 }
  0xeb   :  { %180 = shalt.err (!%p177_p7)
}
  0xec   :  { %131 = dma.vmem_to_hbm [thread:$0]  %s129_s14, 32, %s266_s6, [#allocation4]  }
  0xed   :  { %181 = dma.done.wait [#allocation4], 32  }
  0xee   :  { %182 = vsyncadd [#allocation4], 4294967264 }
  0xef   :  { %135 = vsyncpa [#allocation4], 1 }

// kernel: dual_transformer_forward.2
= control target key start
LH: loop header
LB: loop body
LE: loop exit
PB: predicated region body
PF: predicated region fallthrough
CT: control target
= control target key end

     0   :  { %s11202_s0 = inlined_call_operand.vmem [shape: f32[2,16,16], index: 0, kind: input, shape index: {}]   ;;  %s11203_s1 = inlined_call_operand.vmem [shape: bf16[2,16,32], index: 1, kind: input, shape index: {}]   ;;  %s11204_s2 = inlined_call_operand.vmem [shape: f32[2,1,32], index: 2, kind: input, shape index: {}]   ;;  %s11205_s3 = inlined_call_operand.vmem [shape: f32[2,8,32], index: 3, kind: input, shape index: {}]   ;;  %s11206_s4 = inlined_call_operand.vmem [shape: bf16[2,2,32,96], index: 4, kind: input, shape index: {}]   ;;  %s11207_s5 = inlined_call_operand.vmem [shape: f32[2,2,1,96], index: 5, kind: input, shape index: {}]   ;;  %s11208_s6 = inlined_call_operand.vmem [shape: bf16[2,2,32,32], index: 6, kind: input, shape index: {}]   ;;  %s11209_s7 = inlined_call_operand.vmem [shape: f32[2,2,1,32], index: 7, kind: input, shape index: {}]   ;;  %s11210_s8 = inlined_call_operand.vmem [shape: f32[2,2,1,32], index: 8, kind: input, shape index: {}]   ;;  %s11211_s9 = inlined_call_operand.vmem [shape: f32[2,2,1,32], index: 9, kind: input, shape index: {}]   ;;  %s11212_s10 = inlined_call_operand.vmem [shape: bf16[2,2,32,2048], index: 10, kind: input, shape index: {}]   ;;  %s11213_s11 = inlined_call_operand.vmem [shape: f32[2,2,1,2048], index: 11, kind: input, shape index: {}]   ;;  %s11214_s12 = inlined_call_operand.vmem [shape: bf16[2,2,2048,32], index: 12, kind: input, shape index: {}]   ;;  %s11215_s13 = inlined_call_operand.vmem [shape: f32[2,2,1,32], index: 13, kind: input, shape index: {}]   ;;  %s11216_s14 = inlined_call_operand.vmem [shape: f32[2,2,1,32], index: 14, kind: input, shape index: {}]   ;;  %s11217_s15 = inlined_call_operand.vmem [shape: f32[2,2,1,32], index: 15, kind: input, shape index: {}]   ;;  %s11218_s16 = inlined_call_operand.vmem [shape: f32[2,1,32], index: 16, kind: input, shape index: {}]   ;;  %s11219_s17 = inlined_call_operand.vmem [shape: f32[2,1,32], index: 17, kind: input, shape index: {}]   ;;  %s11220_s18 = inlined_call_operand.vmem [shape: f32[2,1,256], index: 18, kind: input, shape index: {}]   ;;  %s11221_s19 = inlined_call_operand.vmem [shape: f32[2,1,256], index: 19, kind: input, shape index: {}]   ;;  %s11222_s20 = inlined_call_operand.vmem [shape: bf16[2,256,32], index: 20, kind: input, shape index: {}]   ;;  %s11223_s21 = inlined_call_operand.vmem [shape: f32[2,1,32], index: 21, kind: input, shape index: {}]   ;;  %s11224_s22 = inlined_call_operand.vmem [shape: f32[2,2,32], index: 22, kind: output, shape index: {}]  }
   0x1   :  { %11251 = sst [smem:[#allocation3_spill]] %s11202_s0 }
   0x2   :  { %11252 = sst [smem:[#allocation4_spill]] %s11203_s1 }
   0x3   :  { %11253 = sst [smem:[#allocation5_spill]] %s11204_s2 }
   0x4   :  { %11254 = sst [smem:[#allocation6_spill]] %s11205_s3  ;;  %s10086_s3 = smov 0  }
   0x5   :  { %11255 = sst [smem:[#allocation7_spill]] %s11206_s4 }
   0x6   :  { %11256 = sst [smem:[#allocation8_spill]] %s11207_s5 }
   0x7   :  { %11257 = sst [smem:[#allocation9_spill]] %s11208_s6 }
   0x8   :  { %11258 = sst [smem:[#allocation10_spill]] %s11209_s7 }
   0x9   :  { %11259 = sst [smem:[#allocation11_spill]] %s11214_s12 }
   0xa   :  { %11260 = sst [smem:[#allocation12_spill]] %s11224_s22 }
   0xb LB: > { %11261 = sst [smem:[#allocation2_spill]] %s9951_s3  ;;  %s8081_s28 = sadd.s32 4294967295, %s9951_s3   ;;  %s9951_s3 = sphi %s10086_s3, %s32_s3  }
   0xc   : > { %p8085_p0 = scmp.ge.s32.totalorder %s9951_s3, 1  ;;  %p803_p1 = scmp.lt.s32.totalorder %s9951_s3, 3 }
   0xe   : > { %p804_p2 = pnand %p8085_p0, %p803_p1 }
   0xf   : > { %p950_p3 = scmp.lt.s32.totalorder (!%p804_p2), %s8081_s28, 1  ;;  %v9953_v0 = vmov (!%p804_p2), 0.0   ;;  %vm9954_vm0 = vmmov (!%p804_p2), 0   ;;  %s11262_s0 = sld [smem:[#allocation4_spill]] (!%p804_p2)  ;;  %vm1057_vm1 = vcmask (!%p804_p2), 130048   ;;  %vm1137_vm2 = vcmask (!%p804_p2), 261120  }
  0x10   : > { %807 = sbr.rel (%p804_p2) target bundleno = 9339 (0x247b), region = 108  ;;  %9294 = vmatprep.subr.bf16.mxu0 (!%p804_p2), %v9953_v0  ;;  %9296 = vmatprep.mubr.msk.bf16.mxu0 (!%p804_p2), %vm9954_vm0, %v9953_v0  ;;  %s11263_s12 = sld [smem:[#allocation11_spill]] (!%p804_p2)  ;;  %vm1187_vm3 = vcmask (!%p804_p2), 64512   ;;  %vm1314_vm4 = vcmask (!%p804_p2), 1043456   ;;  %vm2100_vm5 = vcmask (!%p804_p2), 195584   ;;  %vm7531_vm6 = vcmask (!%p804_p2), 1041409  }
  0x11   : > { %9326 = vmatprep.subr.bf16.mxu1 (!%p804_p2), %v9953_v0  ;;  %9328 = vmatprep.mubr.msk.bf16.mxu1 (!%p804_p2), %vm9954_vm0, %v9953_v0  ;;  %s11264_s27 = sld [smem:[#allocation3_spill]] (!%p804_p2)  ;;  %s11249_s24 = smov (!%p804_p2), 96   ;;  %vm7574_vm7 = vcmask (!%p804_p2), 523264   ;;  %vm7576_vm8 = vcmask (!%p804_p2), 785408   ;;  %vm7786_vm9 = vcmask (!%p804_p2), 254976  }
  0x12   : > { %s11247_s26 = smov (!%p804_p2), 64   ;;  %s11245_s2 = smov (!%p804_p2), 88  }
  0x13   : > { %s11270_s7 = sld [smem:[#allocation10_spill]] (!%p804_p2) }
  0x17   : > { %s11288_s28 = smov (!%p950_p3, %s8081_s28), 1 }
  0x18   : > { %s8836_s29 = sshll.u32 %s11288_s28, 3  ;;  %s8840_s1 = sshll.u32 %s11288_s28, 11 }
  0x19   : > { %s959_s23 = scalar_lea.vmem %s11262_s0, %s8836_s29  ;;  %s10110_s6 = scalar_lea.vmem %s11263_s12, %s8840_s1 }
  0x1a   : > { %v9580_v1 = vld [vmem:[%s959_s23] sm:$0xff]   ;;  %s8835_s25 = sshll.u32 %s11288_s28, 4  ;;  %s10121_s30 = sshll.u32 %s11288_s28, 5 }
  0x1b   : > { %9295 = vmatpush3.bf16.msra.mxu0 %v9580_v1  ;;  %s954_s3 = scalar_lea.vmem %s11264_s27, %s8835_s25  ;;  %s11265_s23 = sld [smem:[#allocation7_spill]] }
  0x1c   : > { %v1046_v2 = vld [vmem:[%s954_s3] sm:$0xff]  ;;  %v1047_v3 = vld [vmem:[%s954_s3 + $0x8] sm:$0xff]  ;;  %9300 = vmatprep.subr.bf16.mxu0 %v9953_v0  ;;  %s8841_s3 = sshll.u32 %s11288_s28, 7  ;;  %s11266_s27 = sld [smem:[#allocation5_spill]] }
  0x1d   : > { %v1048_v4 = vpack.c.bf16 %v1047_v3, %v1046_v2  ;;  %s10137_s25 = scalar_lea.vmem %s11222_s20, %s8841_s3  ;;  %s11267_s12 = sld [smem:[#allocation6_spill]] }
  0x1e   : > { %s11268_s3 = sld [smem:[#allocation8_spill]]  ;;  %s11239_s0 = smov 80  }
  0x1f   : > { %9297 = vmatmul.mubr.msk.bf16.vlgmr.msra.gmra.mrb[0].mxu0 %vm1057_vm1, %v1048_v4 }
  0x20   : > { %9304 = vmatprep.mubr.msk.bf16.mxu0 %vm9954_vm0, %v9953_v0 }
  0x21   : > { %s10127_s1 = scalar_lea.vmem %s11265_s23, %s10121_s30  ;;  %s11236_s23 = smov 112  }
  0x22   : > { %v9581_v5 = vld [vmem:[%s10127_s1] sm:$0xff]   ;;  %v9582_v6 = vld [vmem:[%s10127_s1 + $0x8] sm:$0xff]   ;;  %s962_s4 = scalar_lea.vmem %s11266_s27, %s11288_s28  ;;  %s11243_s27 = smov 120  }
  0x23   : > { %9301 = vmatpush3.bf16.msra.mxu0 %v9581_v5  ;;  %s966_s22 = scalar_lea.vmem %s11267_s12, %s8836_s29  ;;  %v8114_v8 = vld [vmem:[%s962_s4] ss:$0 sm:$0xff]  ;;  %s10156_s12 = sshll.u32 %s11288_s28, 1 }
  0x24   : > { %9302 = vmatprep.subr.bf16.mxu0 %v9953_v0  ;;  %v1102_v7 = vld [vmem:[%s966_s22] sm:$0xff]  ;;  %s10162_s5 = scalar_lea.vmem %s11268_s3, %s10156_s12  ;;  %s11241_s4 = smov 56  }
  0x25   : > { %v1110_v9 = vadd.f32 %v8114_v8, %v1102_v7  ;;  %v8115_v17 = vld [vmem:[%s10162_s5] ss:$0 sm:$0xff]  ;;  %s11230_s22 = smov 48   ;;  %s11228_s29 = smov 72  }
  0x26   : > { %s11226_s3 = smov 104  }
  0x27   : > { %9303 = vmatpush3.bf16.msra.mxu0 %v9582_v6 }
  0x28   : > { %9308 = vmatprep.subr.bf16.mxu0 %v9953_v0 }
  0xf2   : > { %v1095_v10 = vpop.f32.mrb[0].mxu0 }
  0xf3   : > { %v10146_v11 = vadd.f32 %v1110_v9, %v1095_v10  ;;  %v9298_v12 = vpop.f32.mrb[1].mxu0 }
  0xf4   : > { %v1098_v13 = vpop.f32.mrb[2].mxu0 }
  0xf5   : > { %v10148_v14 = vadd.f32 %v1110_v9, %v1098_v13  ;;  %v9299_v15 = vpop.f32.mrb[3].mxu0 }
  0xf7   : > { %v1113_v16 = vpack.c.bf16 %v10148_v14, %v10146_v11 }
  0xf9   : > { %9305 = vmatmul.mubr.msk.bf16.vlgmr.msra.gmra.mrb[4].mxu0 %vm1137_vm2, %v1113_v16 }
  0xfa   : > { %9310 = vmatprep.mubr.msk.bf16.mxu0 %vm9954_vm0, %v9953_v0 }
 0x1cc   : > { %v1175_v18 = vpop.f32.mrb[4].mxu0 }
 0x1cd   : > { %v1176_v19 = vadd.f32 %v8115_v17, %v1175_v18  ;;  %v9306_v20 = vpop.f32.mrb[5].mxu0 }
 0x1ce   : > { %v1178_v21 = vpop.f32.mrb[6].mxu0 }
 0x1cf   : > { %v10165_v22 = vpack.c.bf16 %v1176_v19, %v1176_v19  ;;  %v1179_v23 = vadd.f32 %v8115_v17, %v1178_v21  ;;  %v9307_v24 = vpop.f32.mrb[7].mxu0 }
 0x1d1   : > { %1185 = vrot.lane.b32.xlu0 %v10165_v22, %s11249_s24  ;;  %v10169_v25 = vpack.c.bf16 %v1179_v23, %v1179_v23 }
 0x1d5   : > { %1235 = vrot.lane.b32.xlu0 %v10169_v25, %s11249_s24  ;;  %s11271_s24 = smov 96  }
 0x243   : > { %v1186_v26 = vpop.permute.xlu0 %1185 }
 0x244   : > { %v1192_v27 = vsel %vm1187_vm3, %v1186_v26, 0 }
 0x245   : > { %9309 = vmatpush3.bf16.xpose.msra.mxu0 %v1192_v27 }
 0x246   : > { %9314 = vmatprep.subr.bf16.mxu0 %v9953_v0 }
 0x247   : > { %v1236_v28 = vpop.permute.xlu0 %1235 }
 0x248   : > { %v1241_v29 = vsel %vm1187_vm3, %v1236_v28, 0 }
 0x24c   : > { %9311 = vmatmul.mubr.msk.bf16.vlgmr.msra.gmra.mrb[8].mxu0 %vm1187_vm3, %v10165_v22 }
 0x24d   : > { %9315 = vmatpush3.bf16.xpose.msra.mxu0 %v1241_v29  ;;  %9316 = vmatprep.mubr.msk.bf16.mxu0 %vm9954_vm0, %v9953_v0 }
 0x24e   : > { %9320 = vmatprep.subr.bf16.mxu0 %v9953_v0 }
 0x254   : > { %9317 = vmatmul.mubr.msk.bf16.vlgmr.msra.gmra.mrb[12].mxu0 %vm1187_vm3, %v10169_v25 }
 0x255   : > { %9322 = vmatprep.mubr.msk.bf16.mxu0 %vm9954_vm0, %v9953_v0 }
 0x31f   : > { %v1228_v30 = vpop.f32.mrb[8].mxu0 }
 0x320   : > { %v1283_v31 = vmul.f32 0.35355338, %v1228_v30  ;;  %v9312_v32 = vpop.f32.mrb[9].mxu0 }
 0x321   : > { %v1231_v33 = vpop.f32.mrb[10].mxu0 }
 0x322   : > { %v9313_v34 = vpop.f32.mrb[11].mxu0  ;;  %v1285_v35 = vsel %vm1187_vm3, %v1283_v31, -inf }
 0x323   : > { %1286 = vmax.xlane.f32.xlu1 %v1285_v35 }
 0x327   : > { %v1277_v36 = vpop.f32.mrb[12].mxu0 }
 0x328   : > { %v1284_v37 = vmul.f32 0.35355338, %v1277_v36  ;;  %v9318_v38 = vpop.f32.mrb[13].mxu0 }
 0x329   : > { %v1280_v39 = vpop.f32.mrb[14].mxu0 }
 0x32a   : > { %v9319_v40 = vpop.f32.mrb[15].mxu0  ;;  %v1288_v41 = vsel %vm1187_vm3, %v1284_v37, -inf }
 0x32b   : > { %1289 = vmax.xlane.f32.xlu1 %v1288_v41 }
 0x33c   : > { %1309 = vrot.lane.b32.xlu1 %v10165_v22, %s11247_s26 }
 0x340   : > { %1358 = vrot.lane.b32.xlu1 %v10169_v25, %s11247_s26  ;;  %s10386_s26 = scalar_lea.vmem %s11211_s9, %s10156_s12 }
 0x344   : > { %1408 = vrot.lane.b32.xlu1 %v10165_v22, %s11245_s2 }
 0x3b0   : > { %v1287_v42 = vpop.xlane.xlu1 %1286 }
 0x3b1   : > { %v1291_v43 = vsub.f32 %v1283_v31, %v1287_v42 }
 0x3b3   : > { %v1293_v44 = vmul.f32 1.442695, %v1291_v43 }
 0x3b5   : > { %9861 = vpow2.f32 %v1293_v44 }
 0x3b8   : > { %v1290_v45 = vpop.xlane.xlu1 %1289 }
 0x3b9   : > { %v1292_v46 = vsub.f32 %v1284_v37, %v1290_v45 }
 0x3bb   : > { %v1295_v47 = vmul.f32 1.442695, %v1292_v46 }
 0x3bc   : > { %v1310_v48 = vpop.permute.xlu1 %1309 }
 0x3bd   : > { %9863 = vpow2.f32 %v1295_v47  ;;  %v1316_v49 = vsel %vm1314_vm4, %v1310_v48, 0 }
 0x3be   : > { %9321 = vmatpush3.bf16.msra.mxu0 %v1316_v49 }
 0x3bf   : > { %v9862_v50 = vpop.eup %9861  ;;  %9332 = vmatprep.subr.bf16.mxu0 %v9953_v0 }
 0x3c0   : > { %v1359_v51 = vpop.permute.xlu1 %1358  ;;  %v1297_v52 = vsel %vm1187_vm3, %v9862_v50, 0.0 }
 0x3c1   : > { %1298 = vadd.xlane.f32.xlu0 %v1297_v52  ;;  %v1364_v53 = vsel %vm1314_vm4, %v1359_v51, 0 }
 0x3c2   : > { %9327 = vmatpush3.bf16.msra.mxu1 %v1364_v53 }
 0x3c3   : > { %9338 = vmatprep.subr.bf16.mxu1 %v9953_v0 }
 0x3c4   : > { %v1409_v57 = vpop.permute.xlu1 %1408 }
 0x3c5   : > { %v1414_v62 = vsel %vm1187_vm3, %v1409_v57, 0 }
 0x3c7   : > { %v9864_v54 = vpop.eup %9863 }
 0x3c8   : > { %v1300_v55 = vsel %vm1187_vm3, %v9864_v54, 0.0 }
 0x3c9   : > { %1301 = vadd.xlane.f32.xlu1 %v1300_v55 }
 0x3d7   : > { %1406 = vrot.lane.b32.xlu0 %v10165_v22, %s11243_s27 }
 0x3da   : > { %1458 = vrot.lane.b32.xlu1 %v10169_v25, %s11245_s2  ;;  %s10657_s2 = scalar_lea.vmem %s11215_s13, %s10156_s12 }
 0x3de   : > { %1456 = vrot.lane.b32.xlu1 %v10169_v25, %s11243_s27  ;;  %s11273_s27 = smov 88  }
 0x44e   : > { %v1299_v56 = vpop.xlane.xlu0 %1298 }
 0x44f   : > { %9865 = vrcp.f32 %v1299_v56 }
 0x452   : > { %v1407_v4 = vpop.permute.xlu0 %1406 }
 0x456   : > { %v1302_v58 = vpop.xlane.xlu1 %1301 }
 0x457   : > { %9867 = vrcp.f32 %v1302_v58 }
 0x459   : > { %v9866_v59 = vpop.eup %9865 }
 0x45a   : > { %v1305_v60 = vmul.f32 %v9866_v59, %v9862_v50  ;;  %v1459_v2 = vpop.permute.xlu1 %1458 }
 0x45b   : > { %v1464_v5 = vsel %vm1187_vm3, %v1459_v2, 0 }
 0x45c   : > { %v1307_v61 = vpack.c.bf16 %v1305_v60, %v1305_v60 }
 0x45e   : > { %9323 = vmatmul.mubr.msk.bf16.vlgmr.msra.gmra.mrb[16].mxu0 %vm1187_vm3, %v1307_v61  ;;  %v1457_v6 = vpop.permute.xlu1 %1456 }
 0x45f   : > { %9333 = vmatpush3.bf16.xpose.msra.mxu0 %v1414_v62  ;;  %9334 = vmatprep.mubr.msk.bf16.mxu0 %vm9954_vm0, %v9953_v0 }
 0x460   : > { %9344 = vmatprep.subr.bf16.mxu0 %v9953_v0 }
 0x461   : > { %v9868_v63 = vpop.eup %9867 }
 0x462   : > { %v1306_v1 = vmul.f32 %v9868_v63, %v9864_v54 }
 0x464   : > { %v1308_v3 = vpack.c.bf16 %v1306_v1, %v1306_v1 }
 0x466   : > { %9329 = vmatmul.mubr.msk.bf16.vlgmr.msra.gmra.mrb[0].mxu1 %vm1187_vm3, %v1308_v3  ;;  %9335 = vmatmul.mubr.msk.bf16.vlgmr.msra.gmra.mrb[20].mxu0 %vm1187_vm3, %v1407_v4 }
 0x467   : > { %9339 = vmatpush3.bf16.xpose.msra.mxu1 %v1464_v5  ;;  %9340 = vmatprep.mubr.msk.bf16.mxu1 %vm9954_vm0, %v9953_v0 }
 0x468   : > { %9350 = vmatprep.subr.bf16.mxu1 %v9953_v0  ;;  %9346 = vmatprep.mubr.msk.bf16.mxu0 %vm9954_vm0, %v9953_v0 }
 0x46e   : > { %9341 = vmatmul.mubr.msk.bf16.vlgmr.msra.gmra.mrb[4].mxu1 %vm1187_vm3, %v1457_v6 }
 0x46f   : > { %9352 = vmatprep.mubr.msk.bf16.mxu1 %vm9954_vm0, %v9953_v0 }
 0x531   : > { %v10221_v7 = vpop.f32.mrb[16].mxu0 }
 0x532   : > { %v9324_v8 = vpop.f32.mrb[17].mxu0 }
 0x533   : > { %v1355_v9 = vpop.f32.mrb[18].mxu0 }
 0x534   : > { %v9325_v10 = vpop.f32.mrb[19].mxu0 }
 0x539   : > { %v10223_v12 = vpop.f32.mrb[0].mxu1  ;;  %v1450_v13 = vpop.f32.mrb[20].mxu0 }
 0x53a   : > { %v1506_v15 = vmul.f32 0.35355338, %v1450_v13  ;;  %v9330_v16 = vpop.f32.mrb[1].mxu1  ;;  %v9336_v17 = vpop.f32.mrb[21].mxu0 }
 0x53b   : > { %v1403_v18 = vpop.f32.mrb[2].mxu1  ;;  %v1453_v19 = vpop.f32.mrb[22].mxu0 }
 0x53c   : > { %v9331_v20 = vpop.f32.mrb[3].mxu1  ;;  %v9337_v21 = vpop.f32.mrb[23].mxu0  ;;  %v1508_v23 = vsel %vm1187_vm3, %v1506_v15, -inf }
 0x53d   : > { %1509 = vmax.xlane.f32.xlu1 %v1508_v23 }
 0x541   : > { %v1500_v24 = vpop.f32.mrb[4].mxu1 }
 0x542   : > { %v1507_v26 = vmul.f32 0.35355338, %v1500_v24  ;;  %v9342_v27 = vpop.f32.mrb[5].mxu1 }
 0x543   : > { %v1503_v28 = vpop.f32.mrb[6].mxu1 }
 0x544   : > { %v9343_v29 = vpop.f32.mrb[7].mxu1  ;;  %v1511_v30 = vsel %vm1187_vm3, %v1507_v26, -inf }
 0x545   : > { %1512 = vmax.xlane.f32.xlu0 %v1511_v30 }
 0x54e   : > { %1532 = vrot.lane.b32.xlu1 %v10165_v22, %s11241_s4 }
 0x552   : > { %1630 = vrot.lane.b32.xlu1 %v10165_v22, %s11239_s0 }
 0x55b   : > { %1580 = vrot.lane.b32.xlu0 %v10169_v25, %s11241_s4 }
 0x55f   : > { %1628 = vrot.lane.b32.xlu0 %v10165_v22, %s11236_s23 }
 0x5ca   : > { %v1510_v31 = vpop.xlane.xlu1 %1509 }
 0x5cb   : > { %v1514_v32 = vsub.f32 %v1506_v15, %v1510_v31 }
 0x5cd   : > { %v1516_v33 = vmul.f32 1.442695, %v1514_v32 }
 0x5ce   : > { %v1533_v34 = vpop.permute.xlu1 %1532 }
 0x5cf   : > { %9869 = vpow2.f32 %v1516_v33  ;;  %v1538_v35 = vsel %vm1314_vm4, %v1533_v34, 0 }
 0x5d0   : > { %9345 = vmatpush3.bf16.msra.mxu0 %v1538_v35 }
 0x5d1   : > { %9356 = vmatprep.subr.bf16.mxu0 %v9953_v0 }
 0x5d2   : > { %v1513_v36 = vpop.xlane.xlu0 %1512  ;;  %v1631_v45 = vpop.permute.xlu1 %1630 }
 0x5d3   : > { %v1515_v37 = vsub.f32 %v1507_v26, %v1513_v36  ;;  %v1636_v51 = vsel %vm1187_vm3, %v1631_v45, 0 }
 0x5d5   : > { %v1518_v38 = vmul.f32 1.442695, %v1515_v37 }
 0x5d6   : > { %v1581_v39 = vpop.permute.xlu0 %1580 }
 0x5d7   : > { %9871 = vpow2.f32 %v1518_v38  ;;  %v1586_v40 = vsel %vm1314_vm4, %v1581_v39, 0 }
 0x5d8   : > { %9351 = vmatpush3.bf16.msra.mxu1 %v1586_v40 }
 0x5d9   : > { %v9870_v41 = vpop.eup %9869  ;;  %9362 = vmatprep.subr.bf16.mxu1 %v9953_v0 }
 0x5da   : > { %v1520_v42 = vsel %vm1187_vm3, %v9870_v41, 0.0  ;;  %v1629_v56 = vpop.permute.xlu0 %1628 }
 0x5db   : > { %1521 = vadd.xlane.f32.xlu1 %v1520_v42 }
 0x5e1   : > { %v9872_v43 = vpop.eup %9871 }
 0x5e2   : > { %v1523_v44 = vsel %vm1187_vm3, %v9872_v43, 0.0 }
 0x5e3   : > { %1524 = vadd.xlane.f32.xlu1 %v1523_v44 }
 0x5f4   : > { %1680 = vrot.lane.b32.xlu1 %v10169_v25, %s11239_s0  ;;  %s10477_s0 = scalar_lea.vmem %s11213_s11, %s10121_s30 }
 0x5f8   : > { %1678 = vrot.lane.b32.xlu1 %v10169_v25, %s11236_s23 }
 0x668   : > { %v1522_v46 = vpop.xlane.xlu1 %1521 }
 0x669   : > { %9873 = vrcp.f32 %v1522_v46 }
 0x670   : > { %v1525_v47 = vpop.xlane.xlu1 %1524 }
 0x671   : > { %9875 = vrcp.f32 %v1525_v47 }
 0x673   : > { %v9874_v48 = vpop.eup %9873 }
 0x674   : > { %v1528_v49 = vmul.f32 %v9874_v48, %v9870_v41  ;;  %v1681_v54 = vpop.permute.xlu1 %1680 }
 0x675   : > { %v1686_v57 = vsel %vm1187_vm3, %v1681_v54, 0 }
 0x676   : > { %v1530_v50 = vpack.c.bf16 %v1528_v49, %v1528_v49 }
 0x678   : > { %9347 = vmatmul.mubr.msk.bf16.vlgmr.msra.gmra.mrb[24].mxu0 %vm1187_vm3, %v1530_v50  ;;  %v1679_v58 = vpop.permute.xlu1 %1678 }
 0x679   : > { %9357 = vmatpush3.bf16.xpose.msra.mxu0 %v1636_v51  ;;  %9358 = vmatprep.mubr.msk.bf16.mxu0 %vm9954_vm0, %v9953_v0 }
 0x67a   : > { %9368 = vmatprep.subr.bf16.mxu0 %v9953_v0 }
 0x67b   : > { %v9876_v52 = vpop.eup %9875 }
 0x67c   : > { %v1529_v53 = vmul.f32 %v9876_v52, %v9872_v43 }
 0x67e   : > { %v1531_v55 = vpack.c.bf16 %v1529_v53, %v1529_v53 }
 0x680   : > { %9353 = vmatmul.mubr.msk.bf16.vlgmr.msra.gmra.mrb[8].mxu1 %vm1187_vm3, %v1531_v55  ;;  %9359 = vmatmul.mubr.msk.bf16.vlgmr.msra.gmra.mrb[28].mxu0 %vm1187_vm3, %v1629_v56 }
 0x681   : > { %9363 = vmatpush3.bf16.xpose.msra.mxu1 %v1686_v57  ;;  %9364 = vmatprep.mubr.msk.bf16.mxu1 %vm9954_vm0, %v9953_v0 }
 0x682   : > { %9374 = vmatprep.subr.bf16.mxu1 %v9953_v0  ;;  %9370 = vmatprep.mubr.msk.bf16.mxu0 %vm9954_vm0, %v9953_v0 }
 0x688   : > { %9365 = vmatmul.mubr.msk.bf16.vlgmr.msra.gmra.mrb[12].mxu1 %vm1187_vm3, %v1679_v58 }
 0x689   : > { %9376 = vmatprep.mubr.msk.bf16.mxu1 %vm9954_vm0, %v9953_v0 }
 0x74b   : > { %v10261_v59 = vpop.f32.mrb[24].mxu0 }
 0x74c   : > { %v9348_v60 = vpop.f32.mrb[25].mxu0 }
 0x74d   : > { %v1577_v61 = vpop.f32.mrb[26].mxu0 }
 0x74e   : > { %v9349_v62 = vpop.f32.mrb[27].mxu0 }
 0x753   : > { %v10263_v63 = vpop.f32.mrb[8].mxu1  ;;  %v1672_v1 = vpop.f32.mrb[28].mxu0 }
 0x754   : > { %v9550_v2 = vpack.i.bf16 %v10263_v63, %v10261_v59  ;;  %v1728_v3 = vmul.f32 0.35355338, %v1672_v1  ;;  %v9354_v4 = vpop.f32.mrb[9].mxu1  ;;  %v9360_v5 = vpop.f32.mrb[29].mxu0 }
 0x755   : > { %v1625_v6 = vpop.f32.mrb[10].mxu1  ;;  %v1675_v8 = vpop.f32.mrb[30].mxu0 }
 0x756   : > { %v9355_v9 = vpop.f32.mrb[11].mxu1  ;;  %v9361_v10 = vpop.f32.mrb[31].mxu0  ;;  %v1730_v13 = vsel %vm1187_vm3, %v1728_v3, -inf }
 0x757   : > { %1731 = vmax.xlane.f32.xlu0 %v1730_v13 }
 0x75b   : > { %v1722_v15 = vpop.f32.mrb[12].mxu1 }
 0x75c   : > { %v1729_v16 = vmul.f32 0.35355338, %v1722_v15  ;;  %v9366_v17 = vpop.f32.mrb[13].mxu1 }
 0x75d   : > { %v1725_v18 = vpop.f32.mrb[14].mxu1 }
 0x75e   : > { %v9367_v19 = vpop.f32.mrb[15].mxu1  ;;  %v1733_v20 = vsel %vm1187_vm3, %v1729_v16, -inf }
 0x75f   : > { %1734 = vmax.xlane.f32.xlu1 %v1733_v20 }
 0x770   : > { %1754 = vrot.lane.b32.xlu1 %v10165_v22, %s11230_s22 }
 0x774   : > { %1852 = vrot.lane.b32.xlu1 %v10165_v22, %s11228_s29 }
 0x778   : > { %1902 = vrot.lane.b32.xlu1 %v10169_v25, %s11228_s29  ;;  %s11233_s29 = smov 8  }
 0x77c   : > { %1900 = vrot.lane.b32.xlu1 %v10169_v25, %s11226_s3 }
 0x7e4   : > { %v1732_v21 = vpop.xlane.xlu0 %1731 }
 0x7e5   : > { %v1736_v23 = vsub.f32 %v1728_v3, %v1732_v21 }
 0x7e7   : > { %v1738_v24 = vmul.f32 1.442695, %v1736_v23 }
 0x7e9   : > { %9877 = vpow2.f32 %v1738_v24 }
 0x7ec   : > { %v1735_v26 = vpop.xlane.xlu1 %1734 }
 0x7ed   : > { %v1737_v27 = vsub.f32 %v1729_v16, %v1735_v26 }
 0x7ef   : > { %v1740_v28 = vmul.f32 1.442695, %v1737_v27 }
 0x7f0   : > { %v1755_v29 = vpop.permute.xlu1 %1754 }
 0x7f1   : > { %9879 = vpow2.f32 %v1740_v28  ;;  %v1760_v30 = vsel %vm1314_vm4, %v1755_v29, 0 }
 0x7f2   : > { %9369 = vmatpush3.bf16.msra.mxu0 %v1760_v30 }
 0x7f3   : > { %v9878_v31 = vpop.eup %9877  ;;  %9380 = vmatprep.subr.bf16.mxu0 %v9953_v0 }
 0x7f4   : > { %v1742_v32 = vsel %vm1187_vm3, %v9878_v31, 0.0  ;;  %v1853_v40 = vpop.permute.xlu1 %1852 }
 0x7f5   : > { %1743 = vadd.xlane.f32.xlu0 %v1742_v32  ;;  %v1858_v43 = vsel %vm1187_vm3, %v1853_v40, 0 }
 0x7f8   : > { %v1903_v46 = vpop.permute.xlu1 %1902 }
 0x7f9   : > { %v1908_v49 = vsel %vm1187_vm3, %v1903_v46, 0 }
 0x7fb   : > { %v9880_v33 = vpop.eup %9879 }
 0x7fc   : > { %v1745_v34 = vsel %vm1187_vm3, %v9880_v33, 0.0  ;;  %v1901_v50 = vpop.permute.xlu1 %1900 }
 0x7fd   : > { %1746 = vadd.xlane.f32.xlu0 %v1745_v34 }
 0x813   : > { %1802 = vrot.lane.b32.xlu0 %v10169_v25, %s11230_s22  ;;  %s11232_s22 = smov 16  }
 0x817   : > { %1850 = vrot.lane.b32.xlu0 %v10165_v22, %s11226_s3  ;;  %s11234_s3 = smov 40  }
 0x882   : > { %v1744_v35 = vpop.xlane.xlu0 %1743 }
 0x883   : > { %9881 = vrcp.f32 %v1744_v35 }
 0x88a   : > { %v1747_v36 = vpop.xlane.xlu0 %1746 }
 0x88b   : > { %9883 = vrcp.f32 %v1747_v36 }
 0x88d   : > { %v9882_v37 = vpop.eup %9881 }
 0x88e   : > { %v1750_v38 = vmul.f32 %v9882_v37, %v9878_v31  ;;  %v1803_v39 = vpop.permute.xlu0 %1802 }
 0x88f   : > { %v1808_v41 = vsel %vm1314_vm4, %v1803_v39, 0 }
 0x890   : > { %9375 = vmatpush3.bf16.msra.mxu1 %v1808_v41  ;;  %v1752_v42 = vpack.c.bf16 %v1750_v38, %v1750_v38 }
 0x891   : > { %9386 = vmatprep.subr.bf16.mxu1 %v9953_v0 }
 0x892   : > { %9371 = vmatmul.mubr.msk.bf16.vlgmr.msra.gmra.mrb[32].mxu0 %vm1187_vm3, %v1752_v42  ;;  %v1851_v48 = vpop.permute.xlu0 %1850 }
 0x893   : > { %9381 = vmatpush3.bf16.xpose.msra.mxu0 %v1858_v43  ;;  %9382 = vmatprep.mubr.msk.bf16.mxu0 %vm9954_vm0, %v9953_v0 }
 0x894   : > { %9392 = vmatprep.subr.bf16.mxu0 %v9953_v0 }
 0x895   : > { %v9884_v44 = vpop.eup %9883 }
 0x896   : > { %v1751_v45 = vmul.f32 %v9884_v44, %v9880_v33 }
 0x898   : > { %v1753_v47 = vpack.c.bf16 %v1751_v45, %v1751_v45 }
 0x89a   : > { %9377 = vmatmul.mubr.msk.bf16.vlgmr.msra.gmra.mrb[16].mxu1 %vm1187_vm3, %v1753_v47  ;;  %9383 = vmatmul.mubr.msk.bf16.vlgmr.msra.gmra.mrb[36].mxu0 %vm1187_vm3, %v1851_v48 }
 0x89b   : > { %9387 = vmatpush3.bf16.xpose.msra.mxu1 %v1908_v49  ;;  %9388 = vmatprep.mubr.msk.bf16.mxu1 %vm9954_vm0, %v9953_v0 }
 0x89c   : > { %9398 = vmatprep.subr.bf16.mxu1 %v9953_v0  ;;  %9394 = vmatprep.mubr.msk.bf16.mxu0 %vm9954_vm0, %v9953_v0 }
 0x8a2   : > { %9389 = vmatmul.mubr.msk.bf16.vlgmr.msra.gmra.mrb[20].mxu1 %vm1187_vm3, %v1901_v50 }
 0x8a3   : > { %9400 = vmatprep.mubr.msk.bf16.mxu1 %vm9954_vm0, %v9953_v0 }
 0x965   : > { %v1796_v51 = vpop.f32.mrb[32].mxu0 }
 0x966   : > { %v9372_v52 = vpop.f32.mrb[33].mxu0 }
 0x967   : > { %v1799_v53 = vpop.f32.mrb[34].mxu0 }
 0x968   : > { %v9373_v54 = vpop.f32.mrb[35].mxu0 }
 0x96d   : > { %v1844_v55 = vpop.f32.mrb[16].mxu1  ;;  %v1894_v56 = vpop.f32.mrb[36].mxu0 }
 0x96e   : > { %v9555_v57 = vpack.i.bf16 %v1844_v55, %v1796_v51  ;;  %v1950_v58 = vmul.f32 0.35355338, %v1894_v56  ;;  %v9378_v60 = vpop.f32.mrb[17].mxu1  ;;  %v9384_v61 = vpop.f32.mrb[37].mxu0 }
 0x96f   : > { %v1847_v62 = vpop.f32.mrb[18].mxu1  ;;  %v1897_v1 = vpop.f32.mrb[38].mxu0 }
 0x970   : > { %v9379_v3 = vpop.f32.mrb[19].mxu1  ;;  %v9385_v4 = vpop.f32.mrb[39].mxu0  ;;  %v1952_v5 = vsel %vm1187_vm3, %v1950_v58, -inf }
 0x971   : > { %1953 = vmax.xlane.f32.xlu0 %v1952_v5 }
 0x975   : > { %v1944_v6 = vpop.f32.mrb[20].mxu1 }
 0x976   : > { %v1951_v8 = vmul.f32 0.35355338, %v1944_v6  ;;  %v9390_v9 = vpop.f32.mrb[21].mxu1 }
 0x977   : > { %v1947_v10 = vpop.f32.mrb[22].mxu1 }
 0x978   : > { %v9391_v13 = vpop.f32.mrb[23].mxu1  ;;  %v1955_v15 = vsel %vm1187_vm3, %v1951_v8, -inf }
 0x979   : > { %1956 = vmax.xlane.f32.xlu1 %v1955_v15 }
 0x98a   : > { %1976 = vrot.lane.b32.xlu1 %v10165_v22, %s11234_s3 }
 0x98e   : > { %9551 = vrot.lane.b32.xlu1 %v9550_v2, %s11233_s29  ;;  %s8839_s29 = sshll.u32 %s11288_s28, 9 }
 0x98f   : > { %s10359_s4 = scalar_lea.vmem %s11212_s10, %s8839_s29  ;;  %s10674_s29 = scalar_lea.vmem %s11216_s14, %s10156_s12 }
 0x992   : > { %9556 = vrot.lane.b32.xlu1 %v9555_v57, %s11232_s22  ;;  %s11238_s22 = smov 24  }
 0x9fe   : > { %v1954_v16 = vpop.xlane.xlu0 %1953 }
 0x9ff   : > { %v1958_v17 = vsub.f32 %v1950_v58, %v1954_v16 }
 0xa01   : > { %v1960_v18 = vmul.f32 1.442695, %v1958_v17 }
 0xa03   : > { %9885 = vpow2.f32 %v1960_v18 }
 0xa06   : > { %v1957_v19 = vpop.xlane.xlu1 %1956 }
 0xa07   : > { %v1959_v20 = vsub.f32 %v1951_v8, %v1957_v19 }
 0xa09   : > { %v1962_v21 = vmul.f32 1.442695, %v1959_v20 }
 0xa0a   : > { %v1977_v23 = vpop.permute.xlu1 %1976 }
 0xa0b   : > { %9887 = vpow2.f32 %v1962_v21  ;;  %v1982_v22 = vsel %vm1314_vm4, %v1977_v23, 0 }
 0xa0c   : > { %9393 = vmatpush3.bf16.msra.mxu0 %v1982_v22 }
 0xa0d   : > { %v9886_v24 = vpop.eup %9885  ;;  %9404 = vmatprep.subr.bf16.mxu0 %v9953_v0 }
 0xa0e   : > { %v1964_v59 = vsel %vm1187_vm3, %v9886_v24, 0.0  ;;  %v9552_v46 = vpop.permute.xlu1 %9551 }
 0xa0f   : > { %1965 = vadd.xlane.f32.xlu0 %v1964_v59  ;;  %v9554_v48 = vunpack.i.h.bf16 %v9552_v46  ;;  %v9553_v49 = vunpack.i.l.bf16 %v9552_v46  ;;  %v2220_v59 = vld [vmem:[%s10359_s4 + $0x8] sm:$0xff] }
 0xa11   : > { %v2097_v53 = vsel %vm1187_vm3, %v10223_v12, %v9554_v48  ;;  %v2096_v54 = vsel %vm1187_vm3, %v10221_v7, %v9553_v49 }
 0xa12   : > { %v9557_v47 = vpop.permute.xlu1 %9556 }
 0xa13   : > { %v9559_v50 = vunpack.i.h.bf16 %v9557_v47  ;;  %v9558_v51 = vunpack.i.l.bf16 %v9557_v47 }
 0xa15   : > { %v9888_v63 = vpop.eup %9887  ;;  %v2099_v57 = vsel %vm1057_vm1, %v2097_v53, %v9559_v50  ;;  %v2098_v58 = vsel %vm1057_vm1, %v2096_v54, %v9558_v51 }
 0xa16   : > { %v1967_v2 = vsel %vm1187_vm3, %v9888_v63, 0.0 }
 0xa17   : > { %1968 = vadd.xlane.f32.xlu0 %v1967_v2  ;;  %v2228_v2 = vld [vmem:[%s10359_s4 + $0x48] sm:$0xff] }
 0xa2d   : > { %2024 = vrot.lane.b32.xlu0 %v10169_v25, %s11234_s3  ;;  %s11269_s3 = sld [smem:[#allocation9_spill]] }
 0xa33   : > { %s10327_s23 = scalar_lea.vmem %s11269_s3, %s10121_s30  ;;  %s10379_s3 = scalar_lea.vmem %s11210_s8, %s10156_s12 }
 0xa34   : > { %v9583_v35 = vld [vmem:[%s10327_s23] sm:$0xff]   ;;  %v9584_v36 = vld [vmem:[%s10327_s23 + $0x8] sm:$0xff]   ;;  %s11274_s30 = smov 120  }
 0xa9c   : > { %v1966_v26 = vpop.xlane.xlu0 %1965 }
 0xa9d   : > { %9889 = vrcp.f32 %v1966_v26 }
 0xaa4   : > { %v1969_v27 = vpop.xlane.xlu0 %1968 }
 0xaa5   : > { %9891 = vrcp.f32 %v1969_v27  ;;  %v8143_v27 = vcombine.low %v2220_v59, %v2228_v2 }
 0xaa7   : > { %v9890_v28 = vpop.eup %9889 }
 0xaa8   : > { %v1972_v29 = vmul.f32 %v9890_v28, %v9886_v24  ;;  %v2025_v30 = vpop.permute.xlu0 %2024  ;;  %v2227_v24 = vld [vmem:[%s10359_s4 + $0x40] sm:$0xff]  ;;  %v8144_v28 = vcombine.high %v2220_v59, %v2228_v2  ;;  %v2233_v59 = vld [vmem:[%s10359_s4 + $0x70] sm:$0xff]  ;;  %v2234_v2 = vld [vmem:[%s10359_s4 + $0x78] sm:$0xff] }
 0xaa9   : > { %v2030_v31 = vsel %vm1314_vm4, %v2025_v30, 0  ;;  %v2243_v30 = vld [vmem:[%s10359_s4 + $0xc0] sm:$0xff] }
 0xaaa   : > { %9399 = vmatpush3.bf16.msra.mxu1 %v2030_v31  ;;  %v1974_v32 = vpack.c.bf16 %v1972_v29, %v1972_v29  ;;  %v2235_v29 = vld [vmem:[%s10359_s4 + $0x80] sm:$0xff]  ;;  %v2236_v31 = vld [vmem:[%s10359_s4 + $0x88] sm:$0xff] }
 0xaac   : > { %9395 = vmatmul.mubr.msk.bf16.vlgmr.msra.gmra.mrb[40].mxu0 %vm1187_vm3, %v1974_v32  ;;  %v8158_v32 = vcombine.high %v2235_v29, %v2243_v30 }
 0xaad   : > { %9408 = vmatprep.mubr.msk.bf16.mxu0 %vm9954_vm0, %v9953_v0  ;;  %9405 = vmatpush3.bf16.msra.mxu0 %v9583_v35 }
 0xaae   : > { %9406 = vmatprep.subr.bf16.mxu0 %v9953_v0 }
 0xaaf   : > { %v9892_v33 = vpop.eup %9891 }
 0xab0   : > { %v1973_v34 = vmul.f32 %v9892_v33, %v9888_v63  ;;  %v2244_v33 = vld [vmem:[%s10359_s4 + $0xc8] sm:$0xff] }
 0xab1   : > { %9407 = vmatpush3.bf16.msra.mxu0 %v9584_v36  ;;  %v8160_v35 = vcombine.high %v2236_v31, %v2244_v33  ;;  %v2221_v36 = vld [vmem:[%s10359_s4 + $0x10] sm:$0xff] }
 0xab2   : > { %v1975_v25 = vpack.c.bf16 %v1973_v34, %v1973_v34  ;;  %2541 = vmatprep.subr.bf16.mxu0 %v8144_v28  ;;  %v8157_v34 = vcombine.low %v2235_v29, %v2243_v30  ;;  %v2241_v30 = vld [vmem:[%s10359_s4 + $0xb0] sm:$0xff] }
 0xab4   : > { %9401 = vmatmul.mubr.msk.bf16.vlgmr.msra.gmra.mrb[24].mxu1 %vm1187_vm3, %v1975_v25  ;;  %v8159_v25 = vcombine.low %v2236_v31, %v2244_v33  ;;  %v2249_v31 = vld [vmem:[%s10359_s4 + $0xf0] sm:$0xff]  ;;  %v2250_v33 = vld [vmem:[%s10359_s4 + $0xf8] sm:$0xff] }
 0xb7f   : > { %v2018_v37 = vpop.f32.mrb[40].mxu0 }
 0xb80   : > { %v9396_v38 = vpop.f32.mrb[41].mxu0 }
 0xb81   : > { %v2021_v39 = vpop.f32.mrb[42].mxu0  ;;  %v2222_v38 = vld [vmem:[%s10359_s4 + $0x18] sm:$0xff] }
 0xb82   : > { %v9397_v40 = vpop.f32.mrb[43].mxu0  ;;  %v9969_v39 = vmov 0  }
 0xb83   : > { %2530 = vmatprep.mubr.bf16.mxu1 %v9969_v39 }
 0xb87   : > { %v2066_v41 = vpop.f32.mrb[24].mxu1 }
 0xb88   : > { %v9560_v42 = vpack.i.bf16 %v2066_v41, %v2018_v37  ;;  %v9402_v43 = vpop.f32.mrb[25].mxu1  ;;  %v2229_v37 = vld [vmem:[%s10359_s4 + $0x50] sm:$0xff]  ;;  %v2230_v41 = vld [vmem:[%s10359_s4 + $0x58] sm:$0xff] }
 0xb89   : > { %v2069_v44 = vpop.f32.mrb[26].mxu1  ;;  %v8146_v40 = vcombine.high %v2221_v36, %v2229_v37  ;;  %v8147_v43 = vcombine.low %v2222_v38, %v2230_v41 }
 0xb8a   : > { %v9403_v45 = vpop.f32.mrb[27].mxu1  ;;  %9561 = vrot.lane.b32.xlu0 %v9560_v42, %s11238_s22  ;;  %s10346_s22 = scalar_lea.vmem %s11270_s7, %s10156_s12  ;;  %v8145_v42 = vcombine.low %v2221_v36, %v2229_v37  ;;  %v8148_v44 = vcombine.high %v2222_v38, %v2230_v41  ;;  %v8169_v37 = vcombine.low %v2241_v30, %v2249_v31  ;;  %v9586_v41 = vld [vmem:[%s10110_s6 + $0xc0] sm:$0xff]   ;;  %s10681_s7 = scalar_lea.vmem %s11217_s15, %s10156_s12 }
 0xb8b   : > { %v8135_v7 = vld [vmem:[%s10346_s22] ss:$0 sm:$0xff] }
 0xbfc   : > { %v9562_v52 = vpop.permute.xlu0 %9561 }
 0xbfd   : > { %v9564_v55 = vunpack.i.h.bf16 %v9562_v52  ;;  %v9563_v56 = vunpack.i.l.bf16 %v9562_v52  ;;  %v8139_v52 = vld [vmem:[%s10379_s3] ss:$0 sm:$0xff] }
 0xbff   : > { %v2102_v60 = vsel %vm2100_vm5, %v2099_v57, %v9564_v55  ;;  %v2101_v61 = vsel %vm2100_vm5, %v2098_v58, %v9563_v56  ;;  %v8140_v57 = vld [vmem:[%s10386_s26] ss:$0 sm:$0xff] }
 0xc00   : > { %v2103_v62 = vpack.c.bf16 %v2102_v60, %v2101_v61  ;;  %v2237_v60 = vld [vmem:[%s10359_s4 + $0x90] sm:$0xff] }
 0xc01   : > { %v2245_v61 = vld [vmem:[%s10359_s4 + $0xd0] sm:$0xff] }
 0xc02   : > { %9409 = vmatmul.mubr.msk.bf16.vlgmr.msra.gmra.mrb[44].mxu0 %vm1137_vm2, %v2103_v62  ;;  %v2238_v62 = vld [vmem:[%s10359_s4 + $0x98] sm:$0xff] }
 0xc03   : > { %2542 = vmatpush1.bf16.msra.mxu0 %v8143_v27  ;;  %2573 = vmatprep.mubr.bf16.mxu0 %v9969_v39 }
 0xc04   : > { %2543 = vmatprep.subr.bf16.mxu0 %v8160_v35  ;;  %v8170_v35 = vcombine.high %v2241_v30, %v2249_v31 }
 0xc07   : > { %2544 = vmatpush1.bf16.msra.mxu0 %v8159_v25 }
 0xc08   : > { %2627 = vmatprep.subr.bf16.mxu0 %v8148_v44  ;;  %v9589_v44 = vld [vmem:[%s10110_s6 + $0x48] sm:$0xff]  }
 0xcd5   : > { %v2164_v12 = vpop.f32.mrb[44].mxu0 }
 0xcd6   : > { %v2165_v1 = vadd.f32 %v8135_v7, %v2164_v12  ;;  %v9410_v3 = vpop.f32.mrb[45].mxu0 }
 0xcd7   : > { %v2167_v4 = vpop.f32.mrb[46].mxu0 }
 0xcd8   : > { %v2168_v5 = vadd.f32 %v8135_v7, %v2167_v4  ;;  %v9411_v6 = vpop.f32.mrb[47].mxu0  ;;  %v2171_v8 = vadd.f32 %v2165_v1, %v10146_v11  ;;  %v2246_v7 = vld [vmem:[%s10359_s4 + $0xd8] sm:$0xff]  ;;  %v8162_v4 = vcombine.high %v2237_v60, %v2245_v61 }
 0xcd9   : > { %v2223_v6 = vld [vmem:[%s10359_s4 + $0x20] sm:$0xff] }
 0xcda   : > { %v2175_v9 = vsel %vm1137_vm2, %v2171_v8, 0.0  ;;  %v2172_v10 = vadd.f32 %v2168_v5, %v10148_v14  ;;  %v2219_v14 = vld [vmem:[%s10359_s4] sm:$0xff]  ;;  %v8164_v5 = vcombine.high %v2238_v62, %v2246_v7 }
 0xcdb   : > { %2176 = vadd.xlane.f32.xlu1 %v2175_v9  ;;  %v8142_v63 = vcombine.high %v2219_v14, %v2227_v24  ;;  %v8141_v26 = vcombine.low %v2219_v14, %v2227_v24  ;;  %v2224_v9 = vld [vmem:[%s10359_s4 + $0x28] sm:$0xff]  ;;  %v2225_v24 = vld [vmem:[%s10359_s4 + $0x30] sm:$0xff] }
 0xcdc   : > { %v2178_v13 = vsel %vm1137_vm2, %v2172_v10, 0.0  ;;  %v8154_v28 = vcombine.high %v2225_v24, %v2233_v59 }
 0xcdd   : > { %2179 = vadd.xlane.f32.xlu0 %v2178_v13  ;;  %2498 = vmatprep.subr.bf16.mxu1 %v8142_v63  ;;  %v8161_v13 = vcombine.low %v2237_v60, %v2245_v61  ;;  %v2226_v63 = vld [vmem:[%s10359_s4 + $0x38] sm:$0xff]  ;;  %v9604_v60 = vld [vmem:[%s10110_s6 + $0xa0] sm:$0xff]   ;;  %v9605_v61 = vld [vmem:[%s10110_s6 + $0x68] sm:$0xff]  }
 0xcde   : > { %2499 = vmatpush1.bf16.msra.mxu1 %v8141_v26  ;;  %v8156_v29 = vcombine.high %v2226_v63, %v2234_v2  ;;  %v8155_v25 = vcombine.low %v2226_v63, %v2234_v2 }
 0xcdf   : > { %2500 = vmatprep.subr.bf16.mxu1 %v8158_v32  ;;  %v2242_v32 = vld [vmem:[%s10359_s4 + $0xb8] sm:$0xff] }
 0xce0   : > { %v8172_v36 = vcombine.high %v2242_v32, %v2250_v33  ;;  %v8171_v38 = vcombine.low %v2242_v32, %v2250_v33 }
 0xce2   : > { %2501 = vmatpush1.bf16.msra.mxu1 %v8157_v34  ;;  %v8153_v34 = vcombine.low %v2225_v24, %v2233_v59 }
 0xce3   : > { %2584 = vmatprep.subr.bf16.mxu1 %v8146_v40  ;;  %v9585_v40 = vld [vmem:[%s10110_s6 + $0x40] sm:$0xff]  }
 0xd68   : > { %v2177_v15 = vpop.xlane.xlu1 %2176 }
 0xd69   : > { %v2182_v16 = vmul.f32 0.03125, %v2177_v15  ;;  %v8163_v15 = vcombine.low %v2238_v62, %v2246_v7  ;;  %v9606_v62 = vld [vmem:[%s10110_s6 + $0xe8] sm:$0xff]  }
 0xd6a   : > { %v2180_v17 = vpop.xlane.xlu0 %2179  ;;  %v9607_v7 = vld [vmem:[%s10110_s6 + $0x28] sm:$0xff]  }
 0xd6b   : > { %v2184_v18 = vsub.f32 %v2171_v8, %v2182_v16  ;;  %v2183_v19 = vmul.f32 0.03125, %v2180_v17  ;;  %v2231_v8 = vld [vmem:[%s10359_s4 + $0x60] sm:$0xff] }
 0xd6c   : > { %v8150_v16 = vcombine.high %v2223_v6, %v2231_v8 }
 0xd6d   : > { %v2185_v20 = vsub.f32 %v2172_v10, %v2183_v19  ;;  %v2186_v21 = vmul.f32 %v2184_v18, %v2184_v18  ;;  %v2232_v10 = vld [vmem:[%s10359_s4 + $0x68] sm:$0xff]  ;;  %v2247_v19 = vld [vmem:[%s10359_s4 + $0xe0] sm:$0xff] }
 0xd6e   : > { %v8152_v17 = vcombine.high %v2224_v9, %v2232_v10 }
 0xd6f   : > { %v2188_v23 = vsel %vm1137_vm2, %v2186_v21, 0.0  ;;  %v2187_v22 = vmul.f32 %v2185_v20, %v2185_v20  ;;  %v2248_v21 = vld [vmem:[%s10359_s4 + $0xe8] sm:$0xff] }
 0xd70   : > { %2189 = vadd.xlane.f32.xlu0 %v2188_v23  ;;  %v8149_v23 = vcombine.low %v2223_v6, %v2231_v8  ;;  %v9611_v6 = vld [vmem:[%s10110_s6 + $0x30] sm:$0xff]  }
 0xd71   : > { %v2191_v11 = vsel %vm1137_vm2, %v2187_v22, 0.0  ;;  %v8151_v22 = vcombine.low %v2224_v9, %v2232_v10  ;;  %v9612_v8 = vld [vmem:[%s10110_s6 + $0xb0] sm:$0xff]   ;;  %v9613_v9 = vld [vmem:[%s10110_s6 + $0x78] sm:$0xff]  }
 0xd72   : > { %2192 = vadd.xlane.f32.xlu1 %v2191_v11  ;;  %v9614_v10 = vld [vmem:[%s10110_s6 + $0xf8] sm:$0xff]  }
 0xdfd   : > { %v2190_v45 = vpop.xlane.xlu0 %2189 }
 0xdfe   : > { %v2194_v46 = vmul.f32 0.03125, %v2190_v45  ;;  %v9590_v45 = vld [vmem:[%s10110_s6 + $0xc8] sm:$0xff]  }
 0xdff   : > { %v2193_v47 = vpop.xlane.xlu1 %2192 }
 0xe00   : > { %v2196_v48 = vadd.f32 1e-05, %v2194_v46  ;;  %v2195_v49 = vmul.f32 0.03125, %v2193_v47  ;;  %v9591_v46 = vld [vmem:[%s10110_s6 + $0x8] sm:$0xff]  }
 0xe01   : > { %v9592_v47 = vld [vmem:[%s10110_s6 + $0x88] sm:$0xff]  }
 0xe02   : > { %9893 = vrsqrt.f32 %v2196_v48  ;;  %v2197_v50 = vadd.f32 1e-05, %v2195_v49  ;;  %v9593_v48 = vld [vmem:[%s10110_s6 + $0x50] sm:$0xff]  }
 0xe03   : > { %v9594_v49 = vld [vmem:[%s10110_s6 + $0xd0] sm:$0xff]  }
 0xe04   : > { %9895 = vrsqrt.f32 %v2197_v50  ;;  %v9595_v50 = vld [vmem:[%s10110_s6 + $0x10] sm:$0xff]  }
 0xe0c   : > { %v9894_v51 = vpop.eup %9893 }
 0xe0d   : > { %v2200_v53 = vmul.f32 %v9894_v51, %v2184_v18  ;;  %v2239_v18 = vld [vmem:[%s10359_s4 + $0xa0] sm:$0xff]  ;;  %v9596_v51 = vld [vmem:[%s10110_s6 + $0x90] sm:$0xff]  }
 0xe0e   : > { %v9896_v54 = vpop.eup %9895  ;;  %v8166_v11 = vcombine.high %v2239_v18, %v2247_v19  ;;  %v8165_v26 = vcombine.low %v2239_v18, %v2247_v19  ;;  %v2255_v18 = vlaneseq }
 0xe0f   : > { %v2208_v55 = vmul.f32 %v8139_v52, %v2200_v53  ;;  %v2201_v56 = vmul.f32 %v9896_v54, %v2185_v20  ;;  %v2240_v20 = vld [vmem:[%s10359_s4 + $0xa8] sm:$0xff]  ;;  %v9598_v53 = vld [vmem:[%s10110_s6 + $0xd8] sm:$0xff]  }
 0xe10   : > { %v8168_v14 = vcombine.high %v2240_v20, %v2248_v21  ;;  %v8167_v27 = vcombine.low %v2240_v20, %v2248_v21  ;;  %v9599_v54 = vld [vmem:[%s10110_s6 + $0x18] sm:$0xff]   ;;  %v2256_v19 = vshrl.u32 %v2255_v18, 7 }
 0xe11   : > { %v2209_v58 = vmul.f32 %v8139_v52, %v2201_v56  ;;  %v10393_v12 = vadd.f32 %v8140_v57, %v2208_v55  ;;  %v9597_v52 = vld [vmem:[%s10110_s6 + $0x58] sm:$0xff]   ;;  %v9601_v56 = vld [vmem:[%s10110_s6 + $0x60] sm:$0xff]  }
 0xe12   : > { %v9600_v55 = vld [vmem:[%s10110_s6 + $0x98] sm:$0xff]   ;;  %v10479_v20 = vsub.s32 0, %v2256_v19  ;;  %v10481_v21 = vsub.s32 2, %v2256_v19  ;;  %v10492_v2 = vsub.s32 4, %v2256_v19  ;;  %v10498_v30 = vsub.s32 7, %v2256_v19 }
 0xe13   : > { %v10395_v1 = vadd.f32 %v8140_v57, %v2209_v58  ;;  %v9602_v57 = vld [vmem:[%s10110_s6 + $0xe0] sm:$0xff]  }
 0xe14   : > { %v9603_v58 = vld [vmem:[%s10110_s6 + $0x20] sm:$0xff]  }
 0xe15   : > { %v10399_v3 = vpack.c.bf16 %v10395_v1, %v10393_v12 }
 0xe17   : > { %8173 = vmatmul.mubr.msk.bf16.vlgmr.msra.gmra.mrb[28].mxu1 %vm1137_vm2, %v10399_v3  ;;  %8174 = vmatmul.mubr.msk.bf16.vlgmr.msra.gmra.mrb[48].mxu0 %vm1137_vm2, %v10399_v3 }
 0xe18   : > { %2585 = vmatpush1.bf16.msra.mxu1 %v8145_v42  ;;  %2628 = vmatpush1.bf16.msra.mxu0 %v8147_v43  ;;  %v9587_v42 = vld [vmem:[%s10110_s6] sm:$0xff]  }
 0xe19   : > { %2586 = vmatprep.subr.bf16.mxu1 %v8162_v4  ;;  %2629 = vmatprep.subr.bf16.mxu0 %v8164_v5  ;;  %v9588_v43 = vld [vmem:[%s10110_s6 + $0x80] sm:$0xff]   ;;  %v9609_v4 = vld [vmem:[%s10110_s6 + $0x70] sm:$0xff]  }
 0xe1a   : > { %2616 = vmatprep.mubr.bf16.mxu1 %v9969_v39  ;;  %2659 = vmatprep.mubr.bf16.mxu0 %v9969_v39  ;;  %v9610_v5 = vld [vmem:[%s10110_s6 + $0xf0] sm:$0xff]  }
 0xe1c   : > { %2587 = vmatpush1.bf16.msra.mxu1 %v8161_v13  ;;  %2630 = vmatpush1.bf16.msra.mxu0 %v8163_v15  ;;  %v9615_v13 = vld [vmem:[%s10110_s6 + $0x38] sm:$0xff]  }
 0xe1d   : > { %2670 = vmatprep.subr.bf16.mxu1 %v8150_v16  ;;  %2713 = vmatprep.subr.bf16.mxu0 %v8152_v17  ;;  %v9616_v15 = vld [vmem:[%s10110_s6 + $0xb8] sm:$0xff]   ;;  %v9617_v16 = vld [vmem:[%s10110_s6 + $0x140] sm:$0xff]  }
 0xe1e   : > { %v9618_v17 = vld [vmem:[%s10110_s6 + $0x1c0] sm:$0xff]  }
 0xe1f   : > { %8175 = vmatmul.mubr.msk.bf16.vlgmr.msra.gmra.mrb[32].mxu1 %vm1137_vm2, %v10399_v3  ;;  %8176 = vmatmul.mubr.msk.bf16.vlgmr.msra.gmra.mrb[52].mxu0 %vm1137_vm2, %v10399_v3 }
 0xe20   : > { %2671 = vmatpush1.bf16.msra.mxu1 %v8149_v23  ;;  %2714 = vmatpush1.bf16.msra.mxu0 %v8151_v22  ;;  %v2251_v23 = vld [vmem:[%s10477_s0] sm:$0xff]  ;;  %v10484_v22 = vsub.s32 1, %v2256_v19 }
 0xe21   : > { %2672 = vmatprep.subr.bf16.mxu1 %v8166_v11  ;;  %2715 = vmatprep.subr.bf16.mxu0 %v8168_v14  ;;  %v10486_v11 = vsub.s32 3, %v2256_v19  ;;  %v2258_v14 = vrot.slane %v2251_v23, %v10479_v20  ;;  %v2266_v24 = vrot.slane %v2251_v23, %v10481_v21 }
 0xe22   : > { %2702 = vmatprep.mubr.bf16.mxu1 %v9969_v39  ;;  %2745 = vmatprep.mubr.bf16.mxu0 %v9969_v39  ;;  %v2262_v59 = vrot.slane %v2251_v23, %v10484_v22 }
 0xe23   : > { %v2270_v63 = vrot.slane %v2251_v23, %v10486_v11 }
 0xe24   : > { %2673 = vmatpush1.bf16.msra.mxu1 %v8165_v26  ;;  %2716 = vmatpush1.bf16.msra.mxu0 %v8167_v27  ;;  %v10494_v26 = vsub.s32 6, %v2256_v19 }
 0xe25   : > { %2756 = vmatprep.subr.bf16.mxu1 %v8154_v28  ;;  %2799 = vmatprep.subr.bf16.mxu0 %v8156_v29  ;;  %v10496_v29 = vsub.s32 5, %v2256_v19 }
 0xe27   : > { %8177 = vmatmul.mubr.msk.bf16.vlgmr.msra.gmra.mrb[36].mxu1 %vm1137_vm2, %v10399_v3  ;;  %8178 = vmatmul.mubr.msk.bf16.vlgmr.msra.gmra.mrb[56].mxu0 %vm1137_vm2, %v10399_v3 }
 0xe28   : > { %2757 = vmatpush1.bf16.msra.mxu1 %v8153_v34  ;;  %2800 = vmatpush1.bf16.msra.mxu0 %v8155_v25 }
 0xe29   : > { %2758 = vmatprep.subr.bf16.mxu1 %v8170_v35  ;;  %2801 = vmatprep.subr.bf16.mxu0 %v8172_v36 }
 0xe2a   : > { %2788 = vmatprep.mubr.bf16.mxu1 %v9969_v39  ;;  %2831 = vmatprep.mubr.bf16.mxu0 %v9969_v39 }
 0xe2c   : > { %2759 = vmatpush1.bf16.msra.mxu1 %v8169_v37  ;;  %2802 = vmatpush1.bf16.msra.mxu0 %v8171_v38 }
 0xe2d   : > { %8882 = vmatprep.subr.bf16.mxu1 %v9585_v40  ;;  %8904 = vmatprep.subr.bf16.mxu0 %v9586_v41 }
 0xe2f   : > { %8179 = vmatmul.mubr.msk.bf16.vlgmr.msra.gmra.mrb[40].mxu1 %vm1137_vm2, %v10399_v3  ;;  %8180 = vmatmul.mubr.msk.bf16.vlgmr.msra.gmra.mrb[60].mxu0 %vm1137_vm2, %v10399_v3  ;;  %v9608_v3 = vld [vmem:[%s10110_s6 + $0xa8] sm:$0xff]  }
 0xe30   : > { %8883 = vmatpush3.bf16.msra.mxu1 %v9587_v42  ;;  %8905 = vmatpush3.bf16.msra.mxu0 %v9588_v43  ;;  %v2274_v43 = vrot.slane %v2251_v23, %v10492_v2 }
 0xe31   : > { %8884 = vmatprep.subr.bf16.mxu1 %v9589_v44  ;;  %8906 = vmatprep.subr.bf16.mxu0 %v9590_v45  ;;  %v2282_v44 = vrot.slane %v2251_v23, %v10494_v26 }
 0xe34   : > { %8885 = vmatpush3.bf16.msra.mxu1 %v9591_v46  ;;  %8907 = vmatpush3.bf16.msra.mxu0 %v9592_v47  ;;  %v2278_v47 = vrot.slane %v2251_v23, %v10496_v29 }
 0xe35   : > { %8886 = vmatprep.subr.bf16.mxu1 %v9593_v48  ;;  %8908 = vmatprep.subr.bf16.mxu0 %v9594_v49  ;;  %v2286_v48 = vrot.slane %v2251_v23, %v10498_v30 }
 0xe38   : > { %8887 = vmatpush3.bf16.msra.mxu1 %v9595_v50  ;;  %8909 = vmatpush3.bf16.msra.mxu0 %v9596_v51 }
 0xe39   : > { %8888 = vmatprep.subr.bf16.mxu1 %v9597_v52  ;;  %8910 = vmatprep.subr.bf16.mxu0 %v9598_v53 }
 0xe3c   : > { %8889 = vmatpush3.bf16.msra.mxu1 %v9599_v54  ;;  %8911 = vmatpush3.bf16.msra.mxu0 %v9600_v55 }
 0xe3d   : > { %8890 = vmatprep.subr.bf16.mxu1 %v9601_v56  ;;  %8912 = vmatprep.subr.bf16.mxu0 %v9602_v57  ;;  %v10505_v57 = vld [vmem:[%s10477_s0 + $0x8] sm:$0xff] }
 0xe40   : > { %8891 = vmatpush3.bf16.msra.mxu1 %v9603_v58  ;;  %8913 = vmatpush3.bf16.msra.mxu0 %v9604_v60 }
 0xe41   : > { %8892 = vmatprep.subr.bf16.mxu1 %v9605_v61  ;;  %8914 = vmatprep.subr.bf16.mxu0 %v9606_v62 }
 0xe44   : > { %8893 = vmatpush3.bf16.msra.mxu1 %v9607_v7  ;;  %8915 = vmatpush3.bf16.msra.mxu0 %v9608_v3 }
 0xe45   : > { %8894 = vmatprep.subr.bf16.mxu1 %v9609_v4  ;;  %8916 = vmatprep.subr.bf16.mxu0 %v9610_v5  ;;  %v9619_v4 = vld [vmem:[%s10110_s6 + $0x100] sm:$0xff]  }
 0xe46   : > { %v9620_v5 = vld [vmem:[%s10110_s6 + $0x180] sm:$0xff]  }
 0xe48   : > { %8895 = vmatpush3.bf16.msra.mxu1 %v9611_v6  ;;  %8917 = vmatpush3.bf16.msra.mxu0 %v9612_v8 }
 0xe49   : > { %8896 = vmatprep.subr.bf16.mxu1 %v9613_v9  ;;  %8918 = vmatprep.subr.bf16.mxu0 %v9614_v10 }
 0xe4c   : > { %8897 = vmatpush3.bf16.msra.mxu1 %v9615_v13  ;;  %8919 = vmatpush3.bf16.msra.mxu0 %v9616_v15  ;;  %v9621_v13 = vld [vmem:[%s10110_s6 + $0x148] sm:$0xff]  }
 0xe4d   : > { %8926 = vmatprep.subr.bf16.mxu1 %v9617_v16  ;;  %8948 = vmatprep.subr.bf16.mxu0 %v9618_v17  ;;  %v9622_v15 = vld [vmem:[%s10110_s6 + $0x1c8] sm:$0xff]   ;;  %v2290_v16 = vrot.slane %v10505_v57, %v10479_v20 }
 0xeea   : > { %v2532_v27 = vpop.f32.mrb[28].mxu1  ;;  %v2575_v28 = vpop.f32.mrb[48].mxu0 }
 0xeeb   : > { %v2533_v31 = vadd.f32 %v2532_v27, %v2258_v14  ;;  %v2576_v32 = vadd.f32 %v2575_v28, %v2266_v24  ;;  %v2534_v33 = vpop.f32.mrb[29].mxu1  ;;  %v2577_v34 = vpop.f32.mrb[49].mxu0  ;;  %v2294_v28 = vrot.slane %v10505_v57, %v10484_v22 }
 0xeec   : > { %v2535_v25 = vadd.f32 %v2534_v33, %v2262_v59  ;;  %v2578_v35 = vadd.f32 %v2577_v34, %v2270_v63  ;;  %v2536_v36 = vpop.f32.mrb[30].mxu1  ;;  %v2579_v37 = vpop.f32.mrb[50].mxu0  ;;  %v9623_v33 = vld [vmem:[%s10110_s6 + $0x108] sm:$0xff]  }
 0xeed   : > { %v2537_v38 = vadd.f32 %v2536_v36, %v2258_v14  ;;  %v2580_v40 = vadd.f32 %v2579_v37, %v2266_v24  ;;  %v2538_v41 = vpop.f32.mrb[31].mxu1  ;;  %v2581_v42 = vpop.f32.mrb[51].mxu0  ;;  %v2842_v49 = vmax.f32 %v2533_v31, 0.0  ;;  %v2844_v50 = vmax.f32 %v2576_v32, 0.0  ;;  %v9624_v34 = vld [vmem:[%s10110_s6 + $0x188] sm:$0xff]  }
 0xeee   : > { %v2539_v45 = vadd.f32 %v2538_v41, %v2262_v59  ;;  %v2582_v46 = vadd.f32 %v2581_v42, %v2270_v63  ;;  %v2843_v53 = vmax.f32 %v2535_v25, 0.0  ;;  %v2845_v54 = vmax.f32 %v2578_v35, 0.0  ;;  %v9626_v41 = vld [vmem:[%s10110_s6 + $0x1d0] sm:$0xff]  }
 0xeef   : > { %v2858_v51 = vmax.f32 %v2537_v38, 0.0  ;;  %v2860_v52 = vmax.f32 %v2580_v40, 0.0  ;;  %v2298_v14 = vrot.slane %v10505_v57, %v10481_v21  ;;  %v2302_v25 = vrot.slane %v10505_v57, %v10486_v11  ;;  %v9625_v40 = vld [vmem:[%s10110_s6 + $0x150] sm:$0xff]  }
 0xef0   : > { %v2859_v55 = vmax.f32 %v2539_v45, 0.0  ;;  %v2861_v56 = vmax.f32 %v2582_v46, 0.0 }
 0xef1   : > { %v2874_v58 = vpack.c.bf16 %v2858_v51, %v2842_v49  ;;  %v2876_v60 = vpack.c.bf16 %v2860_v52, %v2844_v50  ;;  %v9627_v52 = vld [vmem:[%s10110_s6 + $0x110] sm:$0xff]  }
 0xef2   : > { %v2875_v61 = vpack.c.bf16 %v2859_v55, %v2843_v53  ;;  %v2877_v62 = vpack.c.bf16 %v2861_v56, %v2845_v54  ;;  %v2618_v7 = vpop.f32.mrb[32].mxu1  ;;  %v2661_v3 = vpop.f32.mrb[52].mxu0  ;;  %v9628_v53 = vld [vmem:[%s10110_s6 + $0x190] sm:$0xff]  }
 0xef3   : > { %v2619_v6 = vadd.f32 %v2618_v7, %v2274_v43  ;;  %v2662_v8 = vadd.f32 %v2661_v3, %v2282_v44  ;;  %v2620_v9 = vpop.f32.mrb[33].mxu1  ;;  %v2663_v10 = vpop.f32.mrb[53].mxu0 }
 0xef4   : > { %v2621_v17 = vadd.f32 %v2620_v9, %v2278_v47  ;;  %v2664_v18 = vadd.f32 %v2663_v10, %v2286_v48  ;;  %v2622_v19 = vpop.f32.mrb[34].mxu1  ;;  %v2665_v23 = vpop.f32.mrb[54].mxu0  ;;  %3953 = vmatprep.mubr.bf16.mxu1 %v2875_v61  ;;  %3994 = vmatprep.mubr.bf16.mxu0 %v2877_v62  ;;  %v9630_v61 = vld [vmem:[%s10110_s6 + $0x1d8] sm:$0xff]  }
 0xef5   : > { %v2623_v24 = vadd.f32 %v2622_v19, %v2274_v43  ;;  %v2666_v59 = vadd.f32 %v2665_v23, %v2282_v44  ;;  %v2624_v63 = vpop.f32.mrb[35].mxu1  ;;  %v2667_v27 = vpop.f32.mrb[55].mxu0  ;;  %3954 = vmatmul.mubr.bf16.vlgmr.msra.gmra.mrb[44].mxu1 %v2874_v58  ;;  %3995 = vmatmul.mubr.bf16.vlgmr.msra.gmra.mrb[64].mxu0 %v2876_v60  ;;  %v2846_v35 = vmax.f32 %v2619_v6, 0.0  ;;  %v2848_v36 = vmax.f32 %v2662_v8, 0.0  ;;  %v9629_v60 = vld [vmem:[%s10110_s6 + $0x158] sm:$0xff]  }
 0xef6   : > { %v2625_v31 = vadd.f32 %v2624_v63, %v2278_v47  ;;  %v2668_v32 = vadd.f32 %v2667_v27, %v2286_v48  ;;  %8927 = vmatpush3.bf16.msra.mxu1 %v9619_v4  ;;  %8949 = vmatpush3.bf16.msra.mxu0 %v9620_v5  ;;  %v2847_v42 = vmax.f32 %v2621_v17, 0.0  ;;  %v2849_v43 = vmax.f32 %v2664_v18, 0.0  ;;  %v9631_v19 = vld [vmem:[%s10110_s6 + $0x118] sm:$0xff]   ;;  %v9633_v27 = vld [vmem:[%s10110_s6 + $0x160] sm:$0xff]  }
 0xef7   : > { %v2862_v37 = vmax.f32 %v2623_v24, 0.0  ;;  %v2864_v38 = vmax.f32 %v2666_v59, 0.0  ;;  %8928 = vmatprep.subr.bf16.mxu1 %v9621_v13  ;;  %8950 = vmatprep.subr.bf16.mxu0 %v9622_v15  ;;  %v2306_v5 = vrot.slane %v10505_v57, %v10492_v2  ;;  %v2314_v13 = vrot.slane %v10505_v57, %v10494_v26  ;;  %v9632_v23 = vld [vmem:[%s10110_s6 + $0x198] sm:$0xff]  }
 0xef8   : > { %v2863_v44 = vmax.f32 %v2625_v31, 0.0  ;;  %v2865_v45 = vmax.f32 %v2668_v32, 0.0  ;;  %v2310_v15 = vrot.slane %v10505_v57, %v10496_v29  ;;  %v9634_v31 = vld [vmem:[%s10110_s6 + $0x1e0] sm:$0xff]  }
 0xef9   : > { %v10523_v46 = vpack.c.bf16 %v2862_v37, %v2846_v35  ;;  %v10525_v47 = vpack.c.bf16 %v2864_v38, %v2848_v36 }
 0xefa   : > { %v2879_v48 = vpack.c.bf16 %v2863_v44, %v2847_v42  ;;  %v2881_v49 = vpack.c.bf16 %v2865_v45, %v2849_v43  ;;  %8929 = vmatpush3.bf16.msra.mxu1 %v9623_v33  ;;  %8951 = vmatpush3.bf16.msra.mxu0 %v9624_v34  ;;  %v2704_v50 = vpop.f32.mrb[36].mxu1  ;;  %v2747_v51 = vpop.f32.mrb[56].mxu0 }
 0xefb   : > { %v2705_v54 = vadd.f32 %v2704_v50, %v2290_v16  ;;  %v2748_v55 = vadd.f32 %v2747_v51, %v2298_v14  ;;  %v2706_v56 = vpop.f32.mrb[37].mxu1  ;;  %v2749_v58 = vpop.f32.mrb[57].mxu0  ;;  %8930 = vmatprep.subr.bf16.mxu1 %v9625_v40  ;;  %8952 = vmatprep.subr.bf16.mxu0 %v9626_v41  ;;  %v9635_v40 = vld [vmem:[%s10110_s6 + $0x120] sm:$0xff]  }
 0xefc   : > { %v2707_v62 = vadd.f32 %v2706_v56, %v2294_v28  ;;  %v2750_v7 = vadd.f32 %v2749_v58, %v2302_v25  ;;  %v2708_v3 = vpop.f32.mrb[38].mxu1  ;;  %v2751_v4 = vpop.f32.mrb[58].mxu0  ;;  %4035 = vmatprep.mubr.bf16.mxu1 %v2879_v48  ;;  %4076 = vmatprep.mubr.bf16.mxu0 %v2881_v49  ;;  %v9636_v41 = vld [vmem:[%s10110_s6 + $0x1a0] sm:$0xff]   ;;  %v9637_v48 = vld [vmem:[%s10110_s6 + $0x168] sm:$0xff]  }
 0xefd   : > { %v2709_v6 = vadd.f32 %v2708_v3, %v2290_v16  ;;  %v2752_v8 = vadd.f32 %v2751_v4, %v2298_v14  ;;  %v2710_v9 = vpop.f32.mrb[39].mxu1  ;;  %v2753_v10 = vpop.f32.mrb[59].mxu0  ;;  %v2318_v16 = vrot.slane %v10505_v57, %v10498_v30  ;;  %v2850_v14 = vmax.f32 %v2705_v54, 0.0  ;;  %v9638_v49 = vld [vmem:[%s10110_s6 + $0x1e8] sm:$0xff]  }
 0xefe   : > { %v2711_v17 = vadd.f32 %v2710_v9, %v2294_v28  ;;  %v2754_v18 = vadd.f32 %v2753_v10, %v2302_v25  ;;  %8931 = vmatpush3.bf16.msra.mxu1 %v9627_v52  ;;  %8953 = vmatpush3.bf16.msra.mxu0 %v9628_v53  ;;  %v2852_v24 = vmax.f32 %v2748_v55, 0.0  ;;  %v2851_v32 = vmax.f32 %v2707_v62, 0.0  ;;  %v9639_v62 = vld [vmem:[%s10110_s6 + $0x128] sm:$0xff]   ;;  %v9642_v9 = vld [vmem:[%s10110_s6 + $0x1f0] sm:$0xff]  }
 0xeff   : > { %v2866_v59 = vmax.f32 %v2709_v6, 0.0  ;;  %v2868_v63 = vmax.f32 %v2752_v8, 0.0  ;;  %8932 = vmatprep.subr.bf16.mxu1 %v9629_v60  ;;  %8954 = vmatprep.subr.bf16.mxu0 %v9630_v61  ;;  %v2853_v28 = vmax.f32 %v2750_v7, 0.0  ;;  %v9640_v7 = vld [vmem:[%s10110_s6 + $0x1a8] sm:$0xff]  }
 0xf00   : > { %v2867_v33 = vmax.f32 %v2711_v17, 0.0  ;;  %v2869_v34 = vmax.f32 %v2754_v18, 0.0 }
 0xf01   : > { %v10543_v25 = vpack.c.bf16 %v2866_v59, %v2850_v14  ;;  %v10545_v35 = vpack.c.bf16 %v2868_v63, %v2852_v24  ;;  %v9643_v14 = vld [vmem:[%s10110_s6 + $0x130] sm:$0xff]   ;;  %v9645_v59 = vld [vmem:[%s10110_s6 + $0x178] sm:$0xff]  }
 0xf02   : > { %v10547_v57 = vpack.c.bf16 %v2867_v33, %v2851_v32  ;;  %v10549_v36 = vpack.c.bf16 %v2869_v34, %v2853_v28  ;;  %8933 = vmatpush3.bf16.msra.mxu1 %v9631_v19  ;;  %8955 = vmatpush3.bf16.msra.mxu0 %v9632_v23  ;;  %v2790_v37 = vpop.f32.mrb[40].mxu1  ;;  %v2833_v38 = vpop.f32.mrb[60].mxu0  ;;  %v9644_v24 = vld [vmem:[%s10110_s6 + $0x1b0] sm:$0xff]   ;;  %v9646_v63 = vld [vmem:[%s10110_s6 + $0x1f8] sm:$0xff]   ;;  %v9649_v32 = vld [vmem:[%s10110_s6 + $0x240] sm:$0xff]  }
 0xf03   : > { %v2791_v42 = vadd.f32 %v2790_v37, %v2306_v5  ;;  %v2834_v43 = vadd.f32 %v2833_v38, %v2314_v13  ;;  %v2792_v44 = vpop.f32.mrb[41].mxu1  ;;  %v2835_v45 = vpop.f32.mrb[61].mxu0  ;;  %8934 = vmatprep.subr.bf16.mxu1 %v9633_v27  ;;  %8956 = vmatprep.subr.bf16.mxu0 %v9634_v31  ;;  %v9647_v27 = vld [vmem:[%s10110_s6 + $0x138] sm:$0xff]   ;;  %v9650_v28 = vld [vmem:[%s10110_s6 + $0x2c0] sm:$0xff]   ;;  %v9653_v37 = vld [vmem:[%s10110_s6 + $0x248] sm:$0xff]  }
 0xf04   : > { %v2793_v50 = vadd.f32 %v2792_v44, %v2310_v15  ;;  %v2836_v51 = vadd.f32 %v2835_v45, %v2318_v16  ;;  %v2794_v52 = vpop.f32.mrb[42].mxu1  ;;  %v2837_v53 = vpop.f32.mrb[62].mxu0  ;;  %v9648_v31 = vld [vmem:[%s10110_s6 + $0x1b8] sm:$0xff]   ;;  %v9651_v33 = vld [vmem:[%s10110_s6 + $0x200] sm:$0xff]   ;;  %v9654_v38 = vld [vmem:[%s10110_s6 + $0x2c8] sm:$0xff]  }
 0xf05   : > { %v2795_v54 = vadd.f32 %v2794_v52, %v2306_v5  ;;  %v2838_v55 = vadd.f32 %v2837_v53, %v2314_v13  ;;  %v2796_v56 = vpop.f32.mrb[43].mxu1  ;;  %v2839_v58 = vpop.f32.mrb[63].mxu0  ;;  %v2854_v3 = vmax.f32 %v2791_v42, 0.0  ;;  %v2856_v4 = vmax.f32 %v2834_v43, 0.0  ;;  %v9641_v5 = vld [vmem:[%s10110_s6 + $0x170] sm:$0xff]   ;;  %v9652_v34 = vld [vmem:[%s10110_s6 + $0x280] sm:$0xff]  }
 0xf06   : > { %v2797_v60 = vadd.f32 %v2796_v56, %v2310_v15  ;;  %v2840_v61 = vadd.f32 %v2839_v58, %v2318_v16  ;;  %8935 = vmatpush3.bf16.msra.mxu1 %v9635_v40  ;;  %8957 = vmatpush3.bf16.msra.mxu0 %v9636_v41  ;;  %v2855_v10 = vmax.f32 %v2793_v50, 0.0  ;;  %v2857_v13 = vmax.f32 %v2836_v51, 0.0  ;;  %v9655_v40 = vld [vmem:[%s10110_s6 + $0x208] sm:$0xff]   ;;  %v9657_v42 = vld [vmem:[%s10110_s6 + $0x250] sm:$0xff]   ;;  %v9661_v43 = vld [vmem:[%s10110_s6 + $0x258] sm:$0xff]  }
 0xf07   : > { %v2870_v6 = vmax.f32 %v2795_v54, 0.0  ;;  %v2872_v8 = vmax.f32 %v2838_v55, 0.0  ;;  %8936 = vmatprep.subr.bf16.mxu1 %v9637_v48  ;;  %8958 = vmatprep.subr.bf16.mxu0 %v9638_v49  ;;  %v9656_v41 = vld [vmem:[%s10110_s6 + $0x288] sm:$0xff]   ;;  %v9662_v44 = vld [vmem:[%s10110_s6 + $0x2d8] sm:$0xff]   ;;  %v9665_v48 = vld [vmem:[%s10110_s6 + $0x260] sm:$0xff]  }
 0xf08   : > { %v2871_v15 = vmax.f32 %v2797_v60, 0.0  ;;  %v2873_v17 = vmax.f32 %v2840_v61, 0.0  ;;  %v9664_v45 = vld [vmem:[%s10110_s6 + $0x298] sm:$0xff]   ;;  %v9666_v49 = vld [vmem:[%s10110_s6 + $0x2e0] sm:$0xff]   ;;  %v9669_v52 = vld [vmem:[%s10110_s6 + $0x268] sm:$0xff]  }
 0xf09   : > { %v10559_v18 = vpack.c.bf16 %v2870_v6, %v2854_v3  ;;  %v10561_v19 = vpack.c.bf16 %v2872_v8, %v2856_v4  ;;  %v9667_v50 = vld [vmem:[%s10110_s6 + $0x220] sm:$0xff]   ;;  %v9670_v53 = vld [vmem:[%s10110_s6 + $0x2e8] sm:$0xff]   ;;  %v9673_v56 = vld [vmem:[%s10110_s6 + $0x270] sm:$0xff]  }
 0xf0a   : > { %v10563_v23 = vpack.c.bf16 %v2871_v15, %v2855_v10  ;;  %v10565_v16 = vpack.c.bf16 %v2873_v17, %v2857_v13  ;;  %8937 = vmatpush3.bf16.msra.mxu1 %v9639_v62  ;;  %8959 = vmatpush3.bf16.msra.mxu0 %v9640_v7  ;;  %v9668_v51 = vld [vmem:[%s10110_s6 + $0x2a0] sm:$0xff]   ;;  %v9671_v54 = vld [vmem:[%s10110_s6 + $0x228] sm:$0xff]   ;;  %v9674_v58 = vld [vmem:[%s10110_s6 + $0x2f0] sm:$0xff]  }
 0xf0b   : > { %8938 = vmatprep.subr.bf16.mxu1 %v9641_v5  ;;  %8960 = vmatprep.subr.bf16.mxu0 %v9642_v9  ;;  %v9672_v55 = vld [vmem:[%s10110_s6 + $0x2a8] sm:$0xff]   ;;  %v9675_v60 = vld [vmem:[%s10110_s6 + $0x230] sm:$0xff]   ;;  %v9677_v62 = vld [vmem:[%s10110_s6 + $0x278] sm:$0xff]  }
 0xf0c   : > { %v9676_v61 = vld [vmem:[%s10110_s6 + $0x2b0] sm:$0xff]   ;;  %v9678_v7 = vld [vmem:[%s10110_s6 + $0x2f8] sm:$0xff]   ;;  %v9681_v6 = vld [vmem:[%s10110_s6 + $0x340] sm:$0xff]  }
 0xf0d   : > { %v9679_v3 = vld [vmem:[%s10110_s6 + $0x238] sm:$0xff]   ;;  %v9682_v8 = vld [vmem:[%s10110_s6 + $0x3c0] sm:$0xff]   ;;  %v9685_v10 = vld [vmem:[%s10110_s6 + $0x348] sm:$0xff]  }
 0xf0e   : > { %8939 = vmatpush3.bf16.msra.mxu1 %v9643_v14  ;;  %8961 = vmatpush3.bf16.msra.mxu0 %v9644_v24  ;;  %v9680_v4 = vld [vmem:[%s10110_s6 + $0x2b8] sm:$0xff]   ;;  %v9683_v5 = vld [vmem:[%s10110_s6 + $0x300] sm:$0xff]   ;;  %v9686_v13 = vld [vmem:[%s10110_s6 + $0x3c8] sm:$0xff]  }
 0xf0f   : > { %8940 = vmatprep.subr.bf16.mxu1 %v9645_v59  ;;  %8962 = vmatprep.subr.bf16.mxu0 %v9646_v63  ;;  %v9684_v9 = vld [vmem:[%s10110_s6 + $0x380] sm:$0xff]   ;;  %v9687_v15 = vld [vmem:[%s10110_s6 + $0x308] sm:$0xff]   ;;  %v9689_v14 = vld [vmem:[%s10110_s6 + $0x350] sm:$0xff]  }
 0xf10   : > { %v9688_v17 = vld [vmem:[%s10110_s6 + $0x388] sm:$0xff]   ;;  %v9692_v24 = vld [vmem:[%s10110_s6 + $0x390] sm:$0xff]   ;;  %v9694_v59 = vld [vmem:[%s10110_s6 + $0x3d8] sm:$0xff]  }
 0xf11   : > { %v9696_v63 = vld [vmem:[%s10110_s6 + $0x398] sm:$0xff]  }
 0xf12   : > { %8941 = vmatpush3.bf16.msra.mxu1 %v9647_v27  ;;  %8963 = vmatpush3.bf16.msra.mxu0 %v9648_v31  ;;  %v9697_v27 = vld [vmem:[%s10110_s6 + $0x360] sm:$0xff]  }
 0xf13   : > { %8970 = vmatprep.subr.bf16.mxu1 %v9649_v32  ;;  %8992 = vmatprep.subr.bf16.mxu0 %v9650_v28  ;;  %v9698_v31 = vld [vmem:[%s10110_s6 + $0x3e0] sm:$0xff]  }
 0xf14   : > { %v9699_v32 = vld [vmem:[%s10110_s6 + $0x320] sm:$0xff]  }
 0xf15   : > { %4036 = vmatmul.mubr.bf16.vlgmr.msra.gmra.mrb[48].mxu1 %v10523_v46  ;;  %4077 = vmatmul.mubr.bf16.vlgmr.msra.gmra.mrb[68].mxu0 %v10525_v47  ;;  %v9658_v46 = vld [vmem:[%s10110_s6 + $0x2d0] sm:$0xff]   ;;  %v9700_v28 = vld [vmem:[%s10110_s6 + $0x3a0] sm:$0xff]  }
 0xf16   : > { %8971 = vmatpush3.bf16.msra.mxu1 %v9651_v33  ;;  %4117 = vmatprep.mubr.bf16.mxu1 %v10547_v57  ;;  %v9659_v47 = vld [vmem:[%s10110_s6 + $0x210] sm:$0xff]   ;;  %v9701_v33 = vld [vmem:[%s10110_s6 + $0x368] sm:$0xff]  }
 0xf17   : > { %8993 = vmatpush3.bf16.msra.mxu0 %v9652_v34  ;;  %4158 = vmatprep.mubr.bf16.mxu0 %v10549_v36  ;;  %v9660_v57 = vld [vmem:[%s10110_s6 + $0x290] sm:$0xff]   ;;  %v9663_v36 = vld [vmem:[%s10110_s6 + $0x218] sm:$0xff]   ;;  %v9702_v34 = vld [vmem:[%s10110_s6 + $0x3e8] sm:$0xff]  }
 0xf18   : > { %8972 = vmatprep.subr.bf16.mxu1 %v9653_v37  ;;  %8994 = vmatprep.subr.bf16.mxu0 %v9654_v38  ;;  %v9703_v37 = vld [vmem:[%s10110_s6 + $0x328] sm:$0xff]  }
 0xf19   : > { %v9704_v38 = vld [vmem:[%s10110_s6 + $0x3a8] sm:$0xff]  }
 0xf1a   : > { %8973 = vmatpush3.bf16.msra.mxu1 %v9655_v40  ;;  %v9705_v40 = vld [vmem:[%s10110_s6 + $0x370] sm:$0xff]  }
 0xf1b   : > { %8995 = vmatpush3.bf16.msra.mxu0 %v9656_v41  ;;  %8974 = vmatprep.subr.bf16.mxu1 %v9657_v42  ;;  %v9706_v41 = vld [vmem:[%s10110_s6 + $0x3f0] sm:$0xff]  }
 0xf1c   : > { %8996 = vmatprep.subr.bf16.mxu0 %v9658_v46  ;;  %v9707_v42 = vld [vmem:[%s10110_s6 + $0x330] sm:$0xff]  }
 0xf1d   : > { %v9708_v46 = vld [vmem:[%s10110_s6 + $0x3b0] sm:$0xff]  }
 0xf1e   : > { %8975 = vmatpush3.bf16.msra.mxu1 %v9659_v47  ;;  %v9709_v47 = vld [vmem:[%s10110_s6 + $0x378] sm:$0xff]  }
 0xf1f   : > { %8997 = vmatpush3.bf16.msra.mxu0 %v9660_v57  ;;  %8976 = vmatprep.subr.bf16.mxu1 %v9661_v43  ;;  %v9710_v57 = vld [vmem:[%s10110_s6 + $0x3f8] sm:$0xff]  }
 0xf20   : > { %8998 = vmatprep.subr.bf16.mxu0 %v9662_v44  ;;  %v9711_v43 = vld [vmem:[%s10110_s6 + $0x338] sm:$0xff]  }
 0xf21   : > { %v9712_v44 = vld [vmem:[%s10110_s6 + $0x3b8] sm:$0xff]  }
 0xf22   : > { %8977 = vmatpush3.bf16.msra.mxu1 %v9663_v36 }
 0xf23   : > { %8999 = vmatpush3.bf16.msra.mxu0 %v9664_v45  ;;  %8978 = vmatprep.subr.bf16.mxu1 %v9665_v48  ;;  %v8181_v48 = vld [vmem:[%s10657_s2] ss:$0 sm:$0xff] }
 0xf24   : > { %9000 = vmatprep.subr.bf16.mxu0 %v9666_v49 }
 0xf26   : > { %8979 = vmatpush3.bf16.msra.mxu1 %v9667_v50 }
 0xf27   : > { %9001 = vmatpush3.bf16.msra.mxu0 %v9668_v51  ;;  %8980 = vmatprep.subr.bf16.mxu1 %v9669_v52 }
 0xf28   : > { %9002 = vmatprep.subr.bf16.mxu0 %v9670_v53 }
 0xf2a   : > { %8981 = vmatpush3.bf16.msra.mxu1 %v9671_v54 }
 0xf2b   : > { %9003 = vmatpush3.bf16.msra.mxu0 %v9672_v55  ;;  %8982 = vmatprep.subr.bf16.mxu1 %v9673_v56 }
 0xf2c   : > { %9004 = vmatprep.subr.bf16.mxu0 %v9674_v58 }
 0xf2e   : > { %8983 = vmatpush3.bf16.msra.mxu1 %v9675_v60 }
 0xf2f   : > { %9005 = vmatpush3.bf16.msra.mxu0 %v9676_v61  ;;  %8984 = vmatprep.subr.bf16.mxu1 %v9677_v62 }
 0xf30   : > { %9006 = vmatprep.subr.bf16.mxu0 %v9678_v7 }
 0xf32   : > { %8985 = vmatpush3.bf16.msra.mxu1 %v9679_v3 }
 0xf33   : > { %9007 = vmatpush3.bf16.msra.mxu0 %v9680_v4  ;;  %9014 = vmatprep.subr.bf16.mxu1 %v9681_v6 }
 0xf34   : > { %9036 = vmatprep.subr.bf16.mxu0 %v9682_v8 }
 0xf35   : > { %4118 = vmatmul.mubr.bf16.vlgmr.msra.gmra.mrb[52].mxu1 %v10543_v25  ;;  %v9690_v25 = vld [vmem:[%s10110_s6 + $0x3d0] sm:$0xff]  }
 0xf36   : > { %4159 = vmatmul.mubr.bf16.vlgmr.msra.gmra.mrb[72].mxu0 %v10545_v35  ;;  %9015 = vmatpush3.bf16.msra.mxu1 %v9683_v5  ;;  %v9691_v35 = vld [vmem:[%s10110_s6 + $0x310] sm:$0xff]  }
 0xf37   : > { %4199 = vmatprep.mubr.bf16.mxu1 %v10563_v23  ;;  %9037 = vmatpush3.bf16.msra.mxu0 %v9684_v9  ;;  %v9693_v23 = vld [vmem:[%s10110_s6 + $0x358] sm:$0xff]  }
 0xf38   : > { %4240 = vmatprep.mubr.bf16.mxu0 %v10565_v16  ;;  %9016 = vmatprep.subr.bf16.mxu1 %v9685_v10  ;;  %v9695_v16 = vld [vmem:[%s10110_s6 + $0x318] sm:$0xff]  }
 0xf39   : > { %9038 = vmatprep.subr.bf16.mxu0 %v9686_v13 }
 0xf3a   : > { %9017 = vmatpush3.bf16.msra.mxu1 %v9687_v15 }
 0xf3b   : > { %9039 = vmatpush3.bf16.msra.mxu0 %v9688_v17  ;;  %9018 = vmatprep.subr.bf16.mxu1 %v9689_v14 }
 0xf3c   : > { %9040 = vmatprep.subr.bf16.mxu0 %v9690_v25 }
 0xf3e   : > { %9019 = vmatpush3.bf16.msra.mxu1 %v9691_v35 }
 0xf3f   : > { %9041 = vmatpush3.bf16.msra.mxu0 %v9692_v24  ;;  %9020 = vmatprep.subr.bf16.mxu1 %v9693_v23 }
 0xf40   : > { %9042 = vmatprep.subr.bf16.mxu0 %v9694_v59 }
 0xf42   : > { %9021 = vmatpush3.bf16.msra.mxu1 %v9695_v16 }
 0xf43   : > { %9043 = vmatpush3.bf16.msra.mxu0 %v9696_v63  ;;  %9022 = vmatprep.subr.bf16.mxu1 %v9697_v27 }
 0xf44   : > { %9044 = vmatprep.subr.bf16.mxu0 %v9698_v31 }
 0xf46   : > { %9023 = vmatpush3.bf16.msra.mxu1 %v9699_v32 }
 0xf47   : > { %9045 = vmatpush3.bf16.msra.mxu0 %v9700_v28  ;;  %9024 = vmatprep.subr.bf16.mxu1 %v9701_v33 }
 0xf48   : > { %9046 = vmatprep.subr.bf16.mxu0 %v9702_v34 }
 0xf4a   : > { %9025 = vmatpush3.bf16.msra.mxu1 %v9703_v37 }
 0xf4b   : > { %9047 = vmatpush3.bf16.msra.mxu0 %v9704_v38  ;;  %9026 = vmatprep.subr.bf16.mxu1 %v9705_v40 }
 0xf4c   : > { %9048 = vmatprep.subr.bf16.mxu0 %v9706_v41 }
 0xf4e   : > { %9027 = vmatpush3.bf16.msra.mxu1 %v9707_v42 }
 0xf4f   : > { %9049 = vmatpush3.bf16.msra.mxu0 %v9708_v46  ;;  %9028 = vmatprep.subr.bf16.mxu1 %v9709_v47 }
 0xf50   : > { %9050 = vmatprep.subr.bf16.mxu0 %v9710_v57 }
 0xf52   : > { %9029 = vmatpush3.bf16.msra.mxu1 %v9711_v43 }
 0xf53   : > { %9051 = vmatpush3.bf16.msra.mxu0 %v9712_v44  ;;  %9412 = vmatprep.subr.bf16.mxu1 %v9953_v0 }
 0xf54   : > { %9420 = vmatprep.subr.bf16.mxu0 %v9953_v0 }
 0xf55   : > { %4200 = vmatmul.mubr.bf16.vlgmr.msra.gmra.mrb[56].mxu1 %v10559_v18 }
 0xf56   : > { %4241 = vmatmul.mubr.bf16.vlgmr.msra.gmra.mrb[76].mxu0 %v10561_v19  ;;  %9416 = vmatprep.mubr.msk.bf16.mxu1 %vm9954_vm0, %v9953_v0 }
 0xf57   : > { %9422 = vmatprep.mubr.msk.bf16.mxu0 %vm9954_vm0, %v9953_v0 }
 0xfc8   : > { %v8898_v36 = vpop.f32.mrb[44].mxu1  ;;  %v8920_v45 = vpop.f32.mrb[64].mxu0 }
 0xfc9   : > { %v8899_v49 = vpop.f32.mrb[45].mxu1  ;;  %v8921_v50 = vpop.f32.mrb[65].mxu0 }
 0xfca   : > { %v8900_v18 = vadd.f32 %v8899_v49, %v8898_v36  ;;  %v8922_v51 = vadd.f32 %v8921_v50, %v8920_v45  ;;  %v8901_v19 = vpop.f32.mrb[46].mxu1  ;;  %v8923_v52 = vpop.f32.mrb[66].mxu0 }
 0xfcb   : > { %v8902_v53 = vpop.f32.mrb[47].mxu1  ;;  %v8924_v54 = vpop.f32.mrb[67].mxu0 }
 0xfcc   : > { %v3956_v55 = vadd.f32 %v8900_v18, %v8181_v48  ;;  %v8903_v56 = vadd.f32 %v8902_v53, %v8901_v19  ;;  %v8925_v58 = vadd.f32 %v8924_v54, %v8923_v52 }
 0xfce   : > { %v3997_v60 = vadd.f32 %v8922_v51, %v3956_v55  ;;  %v3959_v61 = vadd.f32 %v8903_v56, %v8181_v48 }
 0xfd0   : > { %v4000_v62 = vadd.f32 %v8925_v58, %v3959_v61 }
 0xfe8   : > { %v8942_v7 = vpop.f32.mrb[48].mxu1  ;;  %v8964_v3 = vpop.f32.mrb[68].mxu0 }
 0xfe9   : > { %v8943_v4 = vpop.f32.mrb[49].mxu1  ;;  %v8965_v6 = vpop.f32.mrb[69].mxu0 }
 0xfea   : > { %v8944_v8 = vadd.f32 %v8943_v4, %v8942_v7  ;;  %v8966_v5 = vadd.f32 %v8965_v6, %v8964_v3  ;;  %v8945_v9 = vpop.f32.mrb[50].mxu1  ;;  %v8967_v10 = vpop.f32.mrb[70].mxu0 }
 0xfeb   : > { %v8946_v13 = vpop.f32.mrb[51].mxu1  ;;  %v8968_v15 = vpop.f32.mrb[71].mxu0 }
 0xfec   : > { %v4038_v17 = vadd.f32 %v8944_v8, %v3997_v60  ;;  %v8947_v14 = vadd.f32 %v8946_v13, %v8945_v9  ;;  %v8969_v25 = vadd.f32 %v8968_v15, %v8967_v10  ;;  %v9714_v15 = vld [vmem:[%s10127_s1 + $0x18] sm:$0xff]  }
 0xfee   : > { %v4079_v35 = vadd.f32 %v8966_v5, %v4038_v17  ;;  %v4041_v24 = vadd.f32 %v8947_v14, %v4000_v62 }
 0xff0   : > { %v4082_v23 = vadd.f32 %v8969_v25, %v4041_v24 }
0x1008   : > { %v8986_v59 = vpop.f32.mrb[52].mxu1 }
0x1009   : > { %v9008_v16 = vpop.f32.mrb[72].mxu0  ;;  %v8987_v63 = vpop.f32.mrb[53].mxu1 }
0x100a   : > { %v8988_v27 = vadd.f32 %v8987_v63, %v8986_v59  ;;  %v9009_v31 = vpop.f32.mrb[73].mxu0  ;;  %v8989_v32 = vpop.f32.mrb[54].mxu1 }
0x100b   : > { %v9010_v28 = vadd.f32 %v9009_v31, %v9008_v16  ;;  %v9011_v33 = vpop.f32.mrb[74].mxu0  ;;  %v8990_v34 = vpop.f32.mrb[55].mxu1  ;;  %v8310_v16 = vld [vmem:[%s10674_s29] ss:$0 sm:$0xff] }
0x100c   : > { %v4120_v37 = vadd.f32 %v8988_v27, %v4079_v35  ;;  %v8991_v38 = vadd.f32 %v8990_v34, %v8989_v32  ;;  %v9012_v40 = vpop.f32.mrb[75].mxu0 }
0x100d   : > { %v9013_v41 = vadd.f32 %v9012_v40, %v9011_v33  ;;  %v8317_v40 = vld [vmem:[%s10162_s5 + $0x1] ss:$0 sm:$0xff]  ;;  %s11272_s5 = smov 64  }
0x100e   : > { %v4161_v42 = vadd.f32 %v9010_v28, %v4120_v37  ;;  %v4123_v46 = vadd.f32 %v8991_v38, %v4082_v23  ;;  %v8311_v28 = vld [vmem:[%s10681_s7] ss:$0 sm:$0xff] }
0x1010   : > { %v4164_v47 = vadd.f32 %v9013_v41, %v4123_v46 }
0x1028   : > { %v9030_v57 = vpop.f32.mrb[56].mxu1 }
0x1029   : > { %v9052_v43 = vpop.f32.mrb[76].mxu0  ;;  %v9031_v44 = vpop.f32.mrb[57].mxu1 }
0x102a   : > { %v9032_v36 = vadd.f32 %v9031_v44, %v9030_v57  ;;  %v9053_v45 = vpop.f32.mrb[77].mxu0  ;;  %v9033_v48 = vpop.f32.mrb[58].mxu1 }
0x102b   : > { %v9054_v49 = vadd.f32 %v9053_v45, %v9052_v43  ;;  %v9055_v50 = vpop.f32.mrb[78].mxu0  ;;  %v9034_v18 = vpop.f32.mrb[59].mxu1 }
0x102c   : > { %v4202_v51 = vadd.f32 %v9032_v36, %v4161_v42  ;;  %v9035_v19 = vadd.f32 %v9034_v18, %v9033_v48  ;;  %v9056_v52 = vpop.f32.mrb[79].mxu0 }
0x102d   : > { %v9057_v53 = vadd.f32 %v9056_v52, %v9055_v50 }
0x102e   : > { %v4243_v54 = vadd.f32 %v9054_v49, %v4202_v51  ;;  %v4205_v55 = vadd.f32 %v9035_v19, %v4164_v47 }
0x1030   : > { %v4246_v56 = vadd.f32 %v9057_v53, %v4205_v55  ;;  %v4249_v58 = vadd.f32 %v4243_v54, %v10393_v12 }
0x1032   : > { %v4253_v60 = vsel %vm1137_vm2, %v4249_v58, 0.0  ;;  %v4250_v61 = vadd.f32 %v4246_v56, %v10395_v1  ;;  %v9713_v1 = vld [vmem:[%s10127_s1 + $0x10] sm:$0xff]   ;;  %s11275_s1 = smov 56  }
0x1033   : > { %4254 = vadd.xlane.f32.xlu0 %v4253_v60  ;;  %9413 = vmatpush3.bf16.msra.mxu1 %v9713_v1 }
0x1034   : > { %v4256_v62 = vsel %vm1137_vm2, %v4250_v61, 0.0  ;;  %9414 = vmatprep.subr.bf16.mxu1 %v9953_v0 }
0x1035   : > { %4257 = vadd.xlane.f32.xlu1 %v4256_v62 }
0x1037   : > { %9415 = vmatpush3.bf16.msra.mxu1 %v9714_v15 }
0x1038   : > { %9426 = vmatprep.subr.bf16.mxu1 %v9953_v0 }
0x10c0   : > { %v4255_v7 = vpop.xlane.xlu0 %4254 }
0x10c1   : > { %v4259_v3 = vmul.f32 0.03125, %v4255_v7 }
0x10c2   : > { %v4258_v4 = vpop.xlane.xlu1 %4257 }
0x10c3   : > { %v4261_v6 = vsub.f32 %v4249_v58, %v4259_v3  ;;  %v4260_v8 = vmul.f32 0.03125, %v4258_v4 }
0x10c5   : > { %v4262_v5 = vsub.f32 %v4250_v61, %v4260_v8  ;;  %v4263_v9 = vmul.f32 %v4261_v6, %v4261_v6 }
0x10c7   : > { %v4265_v10 = vsel %vm1137_vm2, %v4263_v9, 0.0  ;;  %v4264_v12 = vmul.f32 %v4262_v5, %v4262_v5 }
0x10c8   : > { %4266 = vadd.xlane.f32.xlu0 %v4265_v10 }
0x10c9   : > { %v4268_v13 = vsel %vm1137_vm2, %v4264_v12, 0.0 }
0x10ca   : > { %4269 = vadd.xlane.f32.xlu1 %v4268_v13 }
0x1155   : > { %v4267_v17 = vpop.xlane.xlu0 %4266 }
0x1156   : > { %v4271_v14 = vmul.f32 0.03125, %v4267_v17 }
0x1157   : > { %v4270_v25 = vpop.xlane.xlu1 %4269 }
0x1158   : > { %v4273_v35 = vadd.f32 1e-05, %v4271_v14  ;;  %v4272_v24 = vmul.f32 0.03125, %v4270_v25 }
0x115a   : > { %9897 = vrsqrt.f32 %v4273_v35  ;;  %v4274_v23 = vadd.f32 1e-05, %v4272_v24 }
0x115c   : > { %9899 = vrsqrt.f32 %v4274_v23 }
0x1164   : > { %v9898_v59 = vpop.eup %9897 }
0x1165   : > { %v4277_v63 = vmul.f32 %v9898_v59, %v4261_v6 }
0x1166   : > { %v9900_v27 = vpop.eup %9899 }
0x1167   : > { %v4285_v31 = vmul.f32 %v8310_v16, %v4277_v63  ;;  %v4278_v32 = vmul.f32 %v9900_v27, %v4262_v5 }
0x1169   : > { %v4286_v33 = vmul.f32 %v8310_v16, %v4278_v32  ;;  %v10684_v34 = vadd.f32 %v8311_v28, %v4285_v31 }
0x116b   : > { %v10686_v37 = vadd.f32 %v8311_v28, %v4286_v33 }
0x116d   : > { %v4295_v38 = vpack.c.bf16 %v10686_v37, %v10684_v34 }
0x116f   : > { %9417 = vmatmul.mubr.msk.bf16.vlgmr.msra.gmra.mrb[60].mxu1 %vm1137_vm2, %v4295_v38 }
0x1170   : > { %9428 = vmatprep.mubr.msk.bf16.mxu1 %vm9954_vm0, %v9953_v0 }
0x1242   : > { %v4358_v41 = vpop.f32.mrb[60].mxu1 }
0x1243   : > { %v4359_v42 = vadd.f32 %v8317_v40, %v4358_v41  ;;  %v9418_v46 = vpop.f32.mrb[61].mxu1 }
0x1244   : > { %v4361_v47 = vpop.f32.mrb[62].mxu1 }
0x1245   : > { %v10694_v57 = vpack.c.bf16 %v4359_v42, %v4359_v42  ;;  %v4362_v43 = vadd.f32 %v8317_v40, %v4361_v47  ;;  %v9419_v44 = vpop.f32.mrb[63].mxu1 }
0x1247   : > { %v10696_v36 = vpack.c.bf16 %v4362_v43, %v4362_v43  ;;  %4368 = vrot.lane.b32.xlu0 %v10694_v57, %s11271_s24 }
0x1249   : > { %4417 = vrot.lane.b32.xlu1 %v10696_v36, %s11271_s24 }
0x12b9   : > { %v4369_v45 = vpop.permute.xlu0 %4368 }
0x12ba   : > { %v4374_v48 = vsel %vm1187_vm3, %v4369_v45, 0 }
0x12bb   : > { %9421 = vmatpush3.bf16.xpose.msra.mxu0 %v4374_v48  ;;  %v4418_v49 = vpop.permute.xlu1 %4417 }
0x12bc   : > { %v4423_v50 = vsel %vm1187_vm3, %v4418_v49, 0  ;;  %9432 = vmatprep.subr.bf16.mxu0 %v9953_v0 }
0x12bd   : > { %9427 = vmatpush3.bf16.xpose.msra.mxu1 %v4423_v50 }
0x12be   : > { %9438 = vmatprep.subr.bf16.mxu1 %v9953_v0 }
0x12c2   : > { %9423 = vmatmul.mubr.msk.bf16.vlgmr.msra.gmra.mrb[80].mxu0 %vm1187_vm3, %v10694_v57 }
0x12c3   : > { %9434 = vmatprep.mubr.msk.bf16.mxu0 %vm9954_vm0, %v9953_v0 }
0x12c4   : > { %9429 = vmatmul.mubr.msk.bf16.vlgmr.msra.gmra.mrb[64].mxu1 %vm1187_vm3, %v10696_v36 }
0x12c5   : > { %9440 = vmatprep.mubr.msk.bf16.mxu1 %vm9954_vm0, %v9953_v0 }
0x1395   : > { %v4410_v18 = vpop.f32.mrb[80].mxu0 }
0x1396   : > { %v4465_v51 = vmul.f32 0.35355338, %v4410_v18  ;;  %v9424_v19 = vpop.f32.mrb[81].mxu0 }
0x1397   : > { %v4413_v52 = vpop.f32.mrb[82].mxu0  ;;  %v4459_v53 = vpop.f32.mrb[64].mxu1 }
0x1398   : > { %v4466_v54 = vmul.f32 0.35355338, %v4459_v53  ;;  %v9425_v55 = vpop.f32.mrb[83].mxu0  ;;  %v9430_v56 = vpop.f32.mrb[65].mxu1  ;;  %v4467_v58 = vsel %vm1187_vm3, %v4465_v51, -inf }
0x1399   : > { %4468 = vmax.xlane.f32.xlu1 %v4467_v58  ;;  %v4462_v60 = vpop.f32.mrb[66].mxu1 }
0x139a   : > { %v9431_v61 = vpop.f32.mrb[67].mxu1  ;;  %v4470_v62 = vsel %vm1187_vm3, %v4466_v54, -inf }
0x139b   : > { %4471 = vmax.xlane.f32.xlu0 %v4470_v62 }
0x13aa   : > { %4539 = vrot.lane.b32.xlu1 %v10696_v36, %s11272_s5 }
0x13b1   : > { %4491 = vrot.lane.b32.xlu0 %v10694_v57, %s11272_s5 }
0x1426   : > { %v4469_v7 = vpop.xlane.xlu1 %4468 }
0x1427   : > { %v4473_v3 = vsub.f32 %v4465_v51, %v4469_v7 }
0x1428   : > { %v4472_v4 = vpop.xlane.xlu0 %4471 }
0x1429   : > { %v4475_v6 = vmul.f32 1.442695, %v4473_v3  ;;  %v4474_v8 = vsub.f32 %v4466_v54, %v4472_v4 }
0x142a   : > { %v4540_v5 = vpop.permute.xlu1 %4539 }
0x142b   : > { %9901 = vpow2.f32 %v4475_v6  ;;  %v4477_v9 = vmul.f32 1.442695, %v4474_v8  ;;  %v4545_v10 = vsel %vm1314_vm4, %v4540_v5, 0 }
0x142c   : > { %9439 = vmatpush3.bf16.msra.mxu1 %v4545_v10  ;;  %v4492_v12 = vpop.permute.xlu0 %4491 }
0x142d   : > { %9903 = vpow2.f32 %v4477_v9  ;;  %v4497_v13 = vsel %vm1314_vm4, %v4492_v12, 0  ;;  %9450 = vmatprep.subr.bf16.mxu1 %v9953_v0 }
0x142e   : > { %9433 = vmatpush3.bf16.msra.mxu0 %v4497_v13 }
0x142f   : > { %9444 = vmatprep.subr.bf16.mxu0 %v9953_v0 }
0x1435   : > { %v9902_v1 = vpop.eup %9901 }
0x1436   : > { %v4479_v15 = vsel %vm1187_vm3, %v9902_v1, 0.0 }
0x1437   : > { %v9904_v17 = vpop.eup %9903  ;;  %4480 = vadd.xlane.f32.xlu0 %v4479_v15 }
0x1438   : > { %v4482_v14 = vsel %vm1187_vm3, %v9904_v17, 0.0 }
0x1439   : > { %4483 = vadd.xlane.f32.xlu1 %v4482_v14 }
0x144a   : > { %4589 = vrot.lane.b32.xlu1 %v10694_v57, %s11273_s27 }
0x144d   : > { %4639 = vrot.lane.b32.xlu0 %v10696_v36, %s11273_s27  ;;  %s11276_s27 = smov 80  }
0x144e   : > { %4587 = vrot.lane.b32.xlu1 %v10694_v57, %s11274_s30 }
0x1451   : > { %4637 = vrot.lane.b32.xlu0 %v10696_v36, %s11274_s30  ;;  %s11277_s30 = smov 112  }
0x14c4   : > { %v4481_v25 = vpop.xlane.xlu0 %4480 }
0x14c5   : > { %9905 = vrcp.f32 %v4481_v25 }
0x14c6   : > { %v4484_v35 = vpop.xlane.xlu1 %4483 }
0x14c7   : > { %9907 = vrcp.f32 %v4484_v35 }
0x14c8   : > { %v4640_v31 = vpop.permute.xlu0 %4639 }
0x14c9   : > { %v4645_v33 = vsel %vm1187_vm3, %v4640_v31, 0 }
0x14ca   : > { %v4590_v16 = vpop.permute.xlu1 %4589 }
0x14cb   : > { %v4595_v32 = vsel %vm1187_vm3, %v4590_v16, 0 }
0x14cc   : > { %v4638_v40 = vpop.permute.xlu0 %4637 }
0x14ce   : > { %v4588_v38 = vpop.permute.xlu1 %4587 }
0x14cf   : > { %v9906_v24 = vpop.eup %9905 }
0x14d0   : > { %v4487_v23 = vmul.f32 %v9906_v24, %v9902_v1 }
0x14d1   : > { %v9908_v59 = vpop.eup %9907 }
0x14d2   : > { %v4488_v63 = vmul.f32 %v9908_v59, %v9904_v17  ;;  %v4489_v27 = vpack.c.bf16 %v4487_v23, %v4487_v23 }
0x14d4   : > { %9435 = vmatmul.mubr.msk.bf16.vlgmr.msra.gmra.mrb[84].mxu0 %vm1187_vm3, %v4489_v27  ;;  %v4490_v28 = vpack.c.bf16 %v4488_v63, %v4488_v63 }
0x14d5   : > { %9445 = vmatpush3.bf16.xpose.msra.mxu0 %v4595_v32  ;;  %9446 = vmatprep.mubr.msk.bf16.mxu0 %vm9954_vm0, %v9953_v0 }
0x14d6   : > { %9441 = vmatmul.mubr.msk.bf16.vlgmr.msra.gmra.mrb[68].mxu1 %vm1187_vm3, %v4490_v28  ;;  %9456 = vmatprep.subr.bf16.mxu0 %v9953_v0 }
0x14d7   : > { %9451 = vmatpush3.bf16.xpose.msra.mxu1 %v4645_v33  ;;  %9452 = vmatprep.mubr.msk.bf16.mxu1 %vm9954_vm0, %v9953_v0 }
0x14d8   : > { %9462 = vmatprep.subr.bf16.mxu1 %v9953_v0 }
0x14dc   : > { %9447 = vmatmul.mubr.msk.bf16.vlgmr.msra.gmra.mrb[88].mxu0 %vm1187_vm3, %v4588_v38 }
0x14dd   : > { %9458 = vmatprep.mubr.msk.bf16.mxu0 %vm9954_vm0, %v9953_v0 }
0x14de   : > { %9453 = vmatmul.mubr.msk.bf16.vlgmr.msra.gmra.mrb[72].mxu1 %vm1187_vm3, %v4638_v40 }
0x14df   : > { %9464 = vmatprep.mubr.msk.bf16.mxu1 %vm9954_vm0, %v9953_v0 }
0x15a7   : > { %v10750_v41 = vpop.f32.mrb[84].mxu0 }
0x15a8   : > { %v9436_v42 = vpop.f32.mrb[85].mxu0 }
0x15a9   : > { %v4536_v46 = vpop.f32.mrb[86].mxu0  ;;  %v10752_v47 = vpop.f32.mrb[68].mxu1 }
0x15aa   : > { %v9437_v43 = vpop.f32.mrb[87].mxu0  ;;  %v9442_v44 = vpop.f32.mrb[69].mxu1 }
0x15ab   : > { %v4584_v45 = vpop.f32.mrb[70].mxu1 }
0x15ac   : > { %v9443_v48 = vpop.f32.mrb[71].mxu1 }
0x15af   : > { %v4631_v49 = vpop.f32.mrb[88].mxu0 }
0x15b0   : > { %v4687_v50 = vmul.f32 0.35355338, %v4631_v49  ;;  %v9448_v18 = vpop.f32.mrb[89].mxu0 }
0x15b1   : > { %v4634_v51 = vpop.f32.mrb[90].mxu0  ;;  %v4681_v19 = vpop.f32.mrb[72].mxu1 }
0x15b2   : > { %v4688_v52 = vmul.f32 0.35355338, %v4681_v19  ;;  %v9449_v53 = vpop.f32.mrb[91].mxu0  ;;  %v9454_v54 = vpop.f32.mrb[73].mxu1  ;;  %v4689_v55 = vsel %vm1187_vm3, %v4687_v50, -inf }
0x15b3   : > { %4690 = vmax.xlane.f32.xlu1 %v4689_v55  ;;  %v4684_v56 = vpop.f32.mrb[74].mxu1 }
0x15b4   : > { %v9455_v58 = vpop.f32.mrb[75].mxu1  ;;  %v4692_v60 = vsel %vm1187_vm3, %v4688_v52, -inf }
0x15b5   : > { %4693 = vmax.xlane.f32.xlu0 %v4692_v60 }
0x15c4   : > { %4761 = vrot.lane.b32.xlu1 %v10696_v36, %s11275_s1 }
0x15cb   : > { %4713 = vrot.lane.b32.xlu0 %v10694_v57, %s11275_s1  ;;  %s11278_s1 = smov 48  }
0x1640   : > { %v4691_v61 = vpop.xlane.xlu1 %4690 }
0x1641   : > { %v4695_v62 = vsub.f32 %v4687_v50, %v4691_v61 }
0x1642   : > { %v4694_v7 = vpop.xlane.xlu0 %4693 }
0x1643   : > { %v4697_v3 = vmul.f32 1.442695, %v4695_v62  ;;  %v4696_v4 = vsub.f32 %v4688_v52, %v4694_v7 }
0x1644   : > { %v4762_v6 = vpop.permute.xlu1 %4761 }
0x1645   : > { %9909 = vpow2.f32 %v4697_v3  ;;  %v4699_v8 = vmul.f32 1.442695, %v4696_v4  ;;  %v4767_v5 = vsel %vm1314_vm4, %v4762_v6, 0 }
0x1646   : > { %9463 = vmatpush3.bf16.msra.mxu1 %v4767_v5  ;;  %v4714_v9 = vpop.permute.xlu0 %4713 }
0x1647   : > { %9911 = vpow2.f32 %v4699_v8  ;;  %v4719_v10 = vsel %vm1314_vm4, %v4714_v9, 0  ;;  %9474 = vmatprep.subr.bf16.mxu1 %v9953_v0 }
0x1648   : > { %9457 = vmatpush3.bf16.msra.mxu0 %v4719_v10 }
0x1649   : > { %9468 = vmatprep.subr.bf16.mxu0 %v9953_v0 }
0x164f   : > { %v9910_v12 = vpop.eup %9909 }
0x1650   : > { %v4701_v13 = vsel %vm1187_vm3, %v9910_v12, 0.0 }
0x1651   : > { %v9912_v1 = vpop.eup %9911  ;;  %4702 = vadd.xlane.f32.xlu0 %v4701_v13 }
0x1652   : > { %v4704_v15 = vsel %vm1187_vm3, %v9912_v1, 0.0 }
0x1653   : > { %4705 = vadd.xlane.f32.xlu1 %v4704_v15 }
0x1664   : > { %4811 = vrot.lane.b32.xlu1 %v10694_v57, %s11276_s27 }
0x1667   : > { %4861 = vrot.lane.b32.xlu0 %v10696_v36, %s11276_s27  ;;  %s11279_s27 = smov 72  }
0x1668   : > { %4809 = vrot.lane.b32.xlu1 %v10694_v57, %s11277_s30 }
0x166b   : > { %4859 = vrot.lane.b32.xlu0 %v10696_v36, %s11277_s30  ;;  %s11280_s30 = smov 104  }
0x16de   : > { %v4703_v17 = vpop.xlane.xlu0 %4702 }
0x16df   : > { %9913 = vrcp.f32 %v4703_v17 }
0x16e0   : > { %v4706_v14 = vpop.xlane.xlu1 %4705 }
0x16e1   : > { %9915 = vrcp.f32 %v4706_v14 }
0x16e2   : > { %v4862_v63 = vpop.permute.xlu0 %4861 }
0x16e3   : > { %v4867_v32 = vsel %vm1187_vm3, %v4862_v63, 0 }
0x16e4   : > { %v4812_v23 = vpop.permute.xlu1 %4811 }
0x16e5   : > { %v4817_v27 = vsel %vm1187_vm3, %v4812_v23, 0 }
0x16e6   : > { %v4860_v33 = vpop.permute.xlu0 %4859 }
0x16e8   : > { %v4810_v28 = vpop.permute.xlu1 %4809 }
0x16e9   : > { %v9914_v25 = vpop.eup %9913 }
0x16ea   : > { %v4709_v35 = vmul.f32 %v9914_v25, %v9910_v12 }
0x16eb   : > { %v9916_v24 = vpop.eup %9915 }
0x16ec   : > { %v4710_v59 = vmul.f32 %v9916_v24, %v9912_v1  ;;  %v4711_v16 = vpack.c.bf16 %v4709_v35, %v4709_v35 }
0x16ee   : > { %9459 = vmatmul.mubr.msk.bf16.vlgmr.msra.gmra.mrb[92].mxu0 %vm1187_vm3, %v4711_v16  ;;  %v4712_v31 = vpack.c.bf16 %v4710_v59, %v4710_v59 }
0x16ef   : > { %9469 = vmatpush3.bf16.xpose.msra.mxu0 %v4817_v27  ;;  %9470 = vmatprep.mubr.msk.bf16.mxu0 %vm9954_vm0, %v9953_v0 }
0x16f0   : > { %9465 = vmatmul.mubr.msk.bf16.vlgmr.msra.gmra.mrb[76].mxu1 %vm1187_vm3, %v4712_v31  ;;  %9480 = vmatprep.subr.bf16.mxu0 %v9953_v0 }
0x16f1   : > { %9475 = vmatpush3.bf16.xpose.msra.mxu1 %v4867_v32  ;;  %9476 = vmatprep.mubr.msk.bf16.mxu1 %vm9954_vm0, %v9953_v0 }
0x16f2   : > { %9486 = vmatprep.subr.bf16.mxu1 %v9953_v0 }
0x16f6   : > { %9471 = vmatmul.mubr.msk.bf16.vlgmr.msra.gmra.mrb[96].mxu0 %vm1187_vm3, %v4810_v28 }
0x16f7   : > { %9482 = vmatprep.mubr.msk.bf16.mxu0 %vm9954_vm0, %v9953_v0 }
0x16f8   : > { %9477 = vmatmul.mubr.msk.bf16.vlgmr.msra.gmra.mrb[80].mxu1 %vm1187_vm3, %v4860_v33 }
0x16f9   : > { %9488 = vmatprep.mubr.msk.bf16.mxu1 %vm9954_vm0, %v9953_v0 }
0x17c1   : > { %v10790_v38 = vpop.f32.mrb[92].mxu0 }
0x17c2   : > { %v9460_v40 = vpop.f32.mrb[93].mxu0 }
0x17c3   : > { %v4758_v42 = vpop.f32.mrb[94].mxu0  ;;  %v10792_v46 = vpop.f32.mrb[76].mxu1 }
0x17c4   : > { %v9565_v43 = vpack.i.bf16 %v10792_v46, %v10790_v38  ;;  %v9461_v44 = vpop.f32.mrb[95].mxu0  ;;  %v9466_v45 = vpop.f32.mrb[77].mxu1 }
0x17c5   : > { %v4806_v48 = vpop.f32.mrb[78].mxu1 }
0x17c6   : > { %v9467_v49 = vpop.f32.mrb[79].mxu1 }
0x17c9   : > { %v4853_v50 = vpop.f32.mrb[96].mxu0 }
0x17ca   : > { %v4909_v18 = vmul.f32 0.35355338, %v4853_v50  ;;  %v9472_v51 = vpop.f32.mrb[97].mxu0 }
0x17cb   : > { %v4856_v19 = vpop.f32.mrb[98].mxu0  ;;  %v4903_v52 = vpop.f32.mrb[80].mxu1 }
0x17cc   : > { %v4910_v53 = vmul.f32 0.35355338, %v4903_v52  ;;  %v9473_v54 = vpop.f32.mrb[99].mxu0  ;;  %v9478_v55 = vpop.f32.mrb[81].mxu1  ;;  %v4911_v56 = vsel %vm1187_vm3, %v4909_v18, -inf }
0x17cd   : > { %4912 = vmax.xlane.f32.xlu1 %v4911_v56  ;;  %v4906_v58 = vpop.f32.mrb[82].mxu1 }
0x17ce   : > { %v9479_v60 = vpop.f32.mrb[83].mxu1  ;;  %v4914_v61 = vsel %vm1187_vm3, %v4910_v53, -inf }
0x17cf   : > { %4915 = vmax.xlane.f32.xlu0 %v4914_v61 }
0x17de   : > { %4983 = vrot.lane.b32.xlu1 %v10696_v36, %s11278_s1 }
0x17e5   : > { %4935 = vrot.lane.b32.xlu0 %v10694_v57, %s11278_s1  ;;  %s11281_s1 = smov 40  }
0x185a   : > { %v4913_v62 = vpop.xlane.xlu1 %4912 }
0x185b   : > { %v4917_v7 = vsub.f32 %v4909_v18, %v4913_v62 }
0x185c   : > { %v4916_v3 = vpop.xlane.xlu0 %4915 }
0x185d   : > { %v4919_v4 = vmul.f32 1.442695, %v4917_v7  ;;  %v4918_v6 = vsub.f32 %v4910_v53, %v4916_v3 }
0x185e   : > { %v4984_v8 = vpop.permute.xlu1 %4983 }
0x185f   : > { %9917 = vpow2.f32 %v4919_v4  ;;  %v4921_v5 = vmul.f32 1.442695, %v4918_v6  ;;  %v4989_v9 = vsel %vm1314_vm4, %v4984_v8, 0 }
0x1860   : > { %9487 = vmatpush3.bf16.msra.mxu1 %v4989_v9  ;;  %v4936_v10 = vpop.permute.xlu0 %4935 }
0x1861   : > { %9919 = vpow2.f32 %v4921_v5  ;;  %v4941_v12 = vsel %vm1314_vm4, %v4936_v10, 0  ;;  %9498 = vmatprep.subr.bf16.mxu1 %v9953_v0 }
0x1862   : > { %9481 = vmatpush3.bf16.msra.mxu0 %v4941_v12 }
0x1863   : > { %9492 = vmatprep.subr.bf16.mxu0 %v9953_v0 }
0x1869   : > { %v9918_v13 = vpop.eup %9917 }
0x186a   : > { %v4923_v1 = vsel %vm1187_vm3, %v9918_v13, 0.0 }
0x186b   : > { %v9920_v15 = vpop.eup %9919  ;;  %4924 = vadd.xlane.f32.xlu0 %v4923_v1 }
0x186c   : > { %v4926_v17 = vsel %vm1187_vm3, %v9920_v15, 0.0 }
0x186d   : > { %4927 = vadd.xlane.f32.xlu1 %v4926_v17 }
0x187e   : > { %5033 = vrot.lane.b32.xlu1 %v10694_v57, %s11279_s27 }
0x1881   : > { %5083 = vrot.lane.b32.xlu0 %v10696_v36, %s11279_s27  ;;  %s11282_s27 = smov 8  }
0x1882   : > { %5031 = vrot.lane.b32.xlu1 %v10694_v57, %s11280_s30 }
0x1885   : > { %5081 = vrot.lane.b32.xlu0 %v10696_v36, %s11280_s30  ;;  %s11283_s30 = smov 16  }
0x18f8   : > { %v4925_v14 = vpop.xlane.xlu0 %4924 }
0x18f9   : > { %9921 = vrcp.f32 %v4925_v14 }
0x18fa   : > { %v4928_v25 = vpop.xlane.xlu1 %4927 }
0x18fb   : > { %9923 = vrcp.f32 %v4928_v25 }
0x18fc   : > { %v5084_v27 = vpop.permute.xlu0 %5083 }
0x18fd   : > { %v5089_v28 = vsel %vm1187_vm3, %v5084_v27, 0  ;;  %v9716_v27 = vld [vmem:[%s10327_s23 + $0x18] sm:$0xff]  }
0x18fe   : > { %v5034_v59 = vpop.permute.xlu1 %5033 }
0x18ff   : > { %v5039_v31 = vsel %vm1187_vm3, %v5034_v59, 0 }
0x1900   : > { %v5082_v40 = vpop.permute.xlu0 %5081 }
0x1902   : > { %v5032_v33 = vpop.permute.xlu1 %5031 }
0x1903   : > { %v9922_v35 = vpop.eup %9921 }
0x1904   : > { %v4931_v24 = vmul.f32 %v9922_v35, %v9918_v13 }
0x1905   : > { %v9924_v23 = vpop.eup %9923 }
0x1906   : > { %v4932_v16 = vmul.f32 %v9924_v23, %v9920_v15  ;;  %v4933_v63 = vpack.c.bf16 %v4931_v24, %v4931_v24 }
0x1908   : > { %9483 = vmatmul.mubr.msk.bf16.vlgmr.msra.gmra.mrb[100].mxu0 %vm1187_vm3, %v4933_v63  ;;  %v4934_v32 = vpack.c.bf16 %v4932_v16, %v4932_v16  ;;  %v9715_v63 = vld [vmem:[%s10327_s23 + $0x10] sm:$0xff]  }
0x1909   : > { %9493 = vmatpush3.bf16.xpose.msra.mxu0 %v5039_v31  ;;  %9494 = vmatprep.mubr.msk.bf16.mxu0 %vm9954_vm0, %v9953_v0 }
0x190a   : > { %9489 = vmatmul.mubr.msk.bf16.vlgmr.msra.gmra.mrb[84].mxu1 %vm1187_vm3, %v4934_v32  ;;  %9504 = vmatprep.subr.bf16.mxu0 %v9953_v0 }
0x190b   : > { %9499 = vmatpush3.bf16.xpose.msra.mxu1 %v5089_v28  ;;  %9500 = vmatprep.mubr.msk.bf16.mxu1 %vm9954_vm0, %v9953_v0 }
0x190c   : > { %9510 = vmatprep.subr.bf16.mxu1 %v9953_v0 }
0x1910   : > { %9495 = vmatmul.mubr.msk.bf16.vlgmr.msra.gmra.mrb[104].mxu0 %vm1187_vm3, %v5032_v33 }
0x1911   : > { %9506 = vmatprep.mubr.msk.bf16.mxu0 %vm9954_vm0, %v9953_v0 }
0x1912   : > { %9501 = vmatmul.mubr.msk.bf16.vlgmr.msra.gmra.mrb[88].mxu1 %vm1187_vm3, %v5082_v40 }
0x1913   : > { %9512 = vmatprep.mubr.msk.bf16.mxu1 %vm9954_vm0, %v9953_v0 }
0x19db   : > { %v4977_v42 = vpop.f32.mrb[100].mxu0 }
0x19dc   : > { %v9484_v44 = vpop.f32.mrb[101].mxu0 }
0x19dd   : > { %v4980_v45 = vpop.f32.mrb[102].mxu0  ;;  %v5025_v48 = vpop.f32.mrb[84].mxu1 }
0x19de   : > { %v9570_v49 = vpack.i.bf16 %v5025_v48, %v4977_v42  ;;  %v9485_v50 = vpop.f32.mrb[103].mxu0  ;;  %v9490_v18 = vpop.f32.mrb[85].mxu1 }
0x19df   : > { %v5028_v51 = vpop.f32.mrb[86].mxu1 }
0x19e0   : > { %v9491_v19 = vpop.f32.mrb[87].mxu1 }
0x19e3   : > { %v5075_v52 = vpop.f32.mrb[104].mxu0 }
0x19e4   : > { %v5131_v53 = vmul.f32 0.35355338, %v5075_v52  ;;  %v9496_v54 = vpop.f32.mrb[105].mxu0 }
0x19e5   : > { %v5078_v55 = vpop.f32.mrb[106].mxu0  ;;  %v5125_v56 = vpop.f32.mrb[88].mxu1 }
0x19e6   : > { %v5132_v58 = vmul.f32 0.35355338, %v5125_v56  ;;  %v9497_v60 = vpop.f32.mrb[107].mxu0  ;;  %v9502_v61 = vpop.f32.mrb[89].mxu1  ;;  %v5133_v62 = vsel %vm1187_vm3, %v5131_v53, -inf }
0x19e7   : > { %5134 = vmax.xlane.f32.xlu1 %v5133_v62  ;;  %v5128_v7 = vpop.f32.mrb[90].mxu1 }
0x19e8   : > { %v9503_v3 = vpop.f32.mrb[91].mxu1  ;;  %v5136_v4 = vsel %vm1187_vm3, %v5132_v58, -inf }
0x19e9   : > { %5137 = vmax.xlane.f32.xlu0 %v5136_v4 }
0x1a74   : > { %v5135_v6 = vpop.xlane.xlu1 %5134 }
0x1a75   : > { %v5139_v8 = vsub.f32 %v5131_v53, %v5135_v6 }
0x1a76   : > { %v5138_v5 = vpop.xlane.xlu0 %5137 }
0x1a77   : > { %v5141_v9 = vmul.f32 1.442695, %v5139_v8  ;;  %v5140_v10 = vsub.f32 %v5132_v58, %v5138_v5 }
0x1a79   : > { %9925 = vpow2.f32 %v5141_v9  ;;  %v5143_v12 = vmul.f32 1.442695, %v5140_v10 }
0x1a7b   : > { %9927 = vpow2.f32 %v5143_v12 }
0x1a83   : > { %v9926_v13 = vpop.eup %9925 }
0x1a84   : > { %v5145_v1 = vsel %vm1187_vm3, %v9926_v13, 0.0 }
0x1a85   : > { %v9928_v15 = vpop.eup %9927  ;;  %5146 = vadd.xlane.f32.xlu0 %v5145_v1 }
0x1a86   : > { %v5148_v17 = vsel %vm1187_vm3, %v9928_v15, 0.0 }
0x1a87   : > { %5149 = vadd.xlane.f32.xlu1 %v5148_v17 }
0x1a98   : > { %5205 = vrot.lane.b32.xlu1 %v10696_v36, %s11281_s1 }
0x1a9b   : > { %5157 = vrot.lane.b32.xlu0 %v10694_v57, %s11281_s1  ;;  %s11284_s1 = smov 24  }
0x1a9c   : > { %9566 = vrot.lane.b32.xlu1 %v9565_v43, %s11282_s27 }
0x1a9f   : > { %9571 = vrot.lane.b32.xlu0 %v9570_v49, %s11283_s30  ;;  %s1032_s30 = scalar_lea.vmem %s11221_s19, %s10156_s12 }
0x1b12   : > { %v5147_v14 = vpop.xlane.xlu0 %5146 }
0x1b13   : > { %9929 = vrcp.f32 %v5147_v14 }
0x1b14   : > { %v5150_v25 = vpop.xlane.xlu1 %5149 }
0x1b15   : > { %9931 = vrcp.f32 %v5150_v25 }
0x1b16   : > { %v5158_v35 = vpop.permute.xlu0 %5157 }
0x1b17   : > { %v5163_v24 = vsel %vm1314_vm4, %v5158_v35, 0 }
0x1b18   : > { %v5206_v23 = vpop.permute.xlu1 %5205  ;;  %9505 = vmatpush3.bf16.msra.mxu0 %v5163_v24 }
0x1b19   : > { %v5211_v36 = vsel %vm1314_vm4, %v5206_v23, 0  ;;  %9516 = vmatprep.subr.bf16.mxu0 %v9953_v0 }
0x1b1a   : > { %9511 = vmatpush3.bf16.msra.mxu1 %v5211_v36  ;;  %v9572_v51 = vpop.permute.xlu0 %9571  ;;  %v8350_v36 = vld [vmem:[%s10359_s4 + $0x100] sm:$0xff] }
0x1b1b   : > { %v9574_v52 = vunpack.i.h.bf16 %v9572_v51  ;;  %v9573_v53 = vunpack.i.l.bf16 %v9572_v51  ;;  %v8361_v51 = vld [vmem:[%s10359_s4 + $0x158] sm:$0xff] }
0x1b1c   : > { %v9567_v49 = vpop.permute.xlu1 %9566 }
0x1b1d   : > { %v9930_v57 = vpop.eup %9929  ;;  %v9569_v50 = vunpack.i.h.bf16 %v9567_v49  ;;  %v9568_v18 = vunpack.i.l.bf16 %v9567_v49  ;;  %v8353_v49 = vld [vmem:[%s10359_s4 + $0x118] sm:$0xff] }
0x1b1e   : > { %v5153_v38 = vmul.f32 %v9930_v57, %v9926_v13  ;;  %v8358_v57 = vld [vmem:[%s10359_s4 + $0x140] sm:$0xff] }
0x1b1f   : > { %v9932_v46 = vpop.eup %9931  ;;  %v5277_v19 = vsel %vm1187_vm3, %v10750_v41, %v9568_v18 }
0x1b20   : > { %v5154_v43 = vmul.f32 %v9932_v46, %v9928_v15  ;;  %v5155_v59 = vpack.c.bf16 %v5153_v38, %v5153_v38  ;;  %v5279_v58 = vsel %vm1057_vm1, %v5277_v19, %v9573_v53  ;;  %v8351_v38 = vld [vmem:[%s10359_s4 + $0x108] sm:$0xff]  ;;  %v8385_v46 = vcombine.high %v8350_v36, %v8358_v57 }
0x1b21   : > { %v8391_v19 = vcombine.high %v8353_v49, %v8361_v51 }
0x1b22   : > { %9507 = vmatmul.mubr.msk.bf16.vlgmr.msra.gmra.mrb[108].mxu0 %vm1187_vm3, %v5155_v59  ;;  %v5156_v16 = vpack.c.bf16 %v5154_v43, %v5154_v43  ;;  %v8359_v43 = vld [vmem:[%s10359_s4 + $0x148] sm:$0xff]  ;;  %v8384_v59 = vcombine.low %v8350_v36, %v8358_v57  ;;  %5683 = vmatprep.subr.bf16.mxu1 %v8385_v46  ;;  %v8370_v36 = vld [vmem:[%s10359_s4 + $0x1a0] sm:$0xff] }
0x1b23   : > { %9520 = vmatprep.mubr.msk.bf16.mxu0 %vm9954_vm0, %v9953_v0  ;;  %9517 = vmatpush3.bf16.msra.mxu0 %v9715_v63  ;;  %v8387_v63 = vcombine.high %v8351_v38, %v8359_v43  ;;  %v8378_v57 = vld [vmem:[%s10359_s4 + $0x1e0] sm:$0xff]  ;;  %v8379_v46 = vld [vmem:[%s10359_s4 + $0x1e8] sm:$0xff] }
0x1b24   : > { %9513 = vmatmul.mubr.msk.bf16.vlgmr.msra.gmra.mrb[92].mxu1 %vm1187_vm3, %v5156_v16  ;;  %9518 = vmatprep.subr.bf16.mxu0 %v9953_v0  ;;  %v5278_v0 = vsel %vm1187_vm3, %v10752_v47, %v9569_v50  ;;  %v8342_v47 = vld [vmem:[%s10346_s22 + $0x1] ss:$0 sm:$0xff]  ;;  %v8386_v16 = vcombine.low %v8351_v38, %v8359_v43  ;;  %v8371_v38 = vld [vmem:[%s10359_s4 + $0x1a8] sm:$0xff]  ;;  %s1024_s22 = scalar_lea.vmem %s11219_s17, %s11288_s28 }
0x1b25   : > { %5715 = vmatprep.mubr.bf16.mxu1 %v9969_v39  ;;  %v5280_v60 = vsel %vm1057_vm1, %v5278_v0, %v9574_v52  ;;  %5684 = vmatpush1.bf16.msra.mxu1 %v8384_v59  ;;  %v8390_v0 = vcombine.low %v8353_v49, %v8361_v51  ;;  %v8373_v49 = vld [vmem:[%s10359_s4 + $0x1b8] sm:$0xff] }
0x1b27   : > { %9519 = vmatpush3.bf16.msra.mxu0 %v9716_v27  ;;  %v8366_v27 = vld [vmem:[%s10359_s4 + $0x180] sm:$0xff] }
0x1b28   : > { %5726 = vmatprep.subr.bf16.mxu0 %v8387_v63  ;;  %v8411_v63 = vcombine.high %v8371_v38, %v8379_v46 }
0x1bf5   : > { %v5199_v31 = vpop.f32.mrb[108].mxu0 }
0x1bf6   : > { %v9508_v32 = vpop.f32.mrb[109].mxu0 }
0x1bf7   : > { %v5202_v28 = vpop.f32.mrb[110].mxu0  ;;  %v5247_v33 = vpop.f32.mrb[92].mxu1  ;;  %v8367_v32 = vld [vmem:[%s10359_s4 + $0x188] sm:$0xff] }
0x1bf8   : > { %v9575_v40 = vpack.i.bf16 %v5247_v33, %v5199_v31  ;;  %v9509_v42 = vpop.f32.mrb[111].mxu0  ;;  %v9514_v44 = vpop.f32.mrb[93].mxu1  ;;  %v8374_v31 = vld [vmem:[%s10359_s4 + $0x1c0] sm:$0xff]  ;;  %v8375_v33 = vld [vmem:[%s10359_s4 + $0x1c8] sm:$0xff] }
0x1bf9   : > { %v5250_v45 = vpop.f32.mrb[94].mxu1  ;;  %v8401_v28 = vcombine.high %v8366_v27, %v8374_v31  ;;  %v8402_v42 = vcombine.low %v8367_v32, %v8375_v33  ;;  %v8403_v44 = vcombine.high %v8367_v32, %v8375_v33  ;;  %v8357_v32 = vld [vmem:[%s10359_s4 + $0x138] sm:$0xff]  ;;  %v8408_v33 = vcombine.low %v8370_v36, %v8378_v57 }
0x1bfa   : > { %9576 = vrot.lane.b32.xlu1 %v9575_v40, %s11284_s1  ;;  %v9515_v48 = vpop.f32.mrb[95].mxu1  ;;  %v8400_v40 = vcombine.low %v8366_v27, %v8374_v31  ;;  %v8352_v45 = vld [vmem:[%s10359_s4 + $0x110] sm:$0xff]  ;;  %s1040_s1 = scalar_lea.vmem %s11223_s21, %s11288_s28 }
0x1bfb   : > { %5685 = vmatprep.subr.bf16.mxu1 %v8401_v28  ;;  %v8360_v48 = vld [vmem:[%s10359_s4 + $0x150] sm:$0xff]  ;;  %v8365_v28 = vld [vmem:[%s10359_s4 + $0x178] sm:$0xff] }
0x1bfc   : > { %5686 = vmatpush1.bf16.msra.mxu1 %v8400_v40  ;;  %v8388_v50 = vcombine.low %v8352_v45, %v8360_v48  ;;  %v8389_v18 = vcombine.high %v8352_v45, %v8360_v48  ;;  %v8356_v27 = vld [vmem:[%s10359_s4 + $0x130] sm:$0xff]  ;;  %v8410_v40 = vcombine.low %v8371_v38, %v8379_v46  ;;  %v8398_v51 = vcombine.low %v8357_v32, %v8365_v28  ;;  %v9747_v38 = vld [vmem:[%s10110_s6 + $0x438] sm:$0xff]  }
0x1bfd   : > { %v8364_v31 = vld [vmem:[%s10359_s4 + $0x170] sm:$0xff]  ;;  %v9748_v46 = vld [vmem:[%s10110_s6 + $0x4b8] sm:$0xff]  }
0x1bfe   : > { %5769 = vmatprep.subr.bf16.mxu1 %v8389_v18  ;;  %v8372_v45 = vld [vmem:[%s10359_s4 + $0x1b0] sm:$0xff]  ;;  %v8396_v18 = vcombine.low %v8356_v27, %v8364_v31 }
0x1bff   : > { %v8380_v48 = vld [vmem:[%s10359_s4 + $0x1f0] sm:$0xff] }
0x1c6c   : > { %v9577_v54 = vpop.permute.xlu1 %9576 }
0x1c6d   : > { %v9579_v55 = vunpack.i.h.bf16 %v9577_v54  ;;  %v9578_v56 = vunpack.i.l.bf16 %v9577_v54 }
0x1c6f   : > { %v5282_v61 = vsel %vm2100_vm5, %v5280_v60, %v9579_v55  ;;  %v5281_v62 = vsel %vm2100_vm5, %v5279_v58, %v9578_v56 }
0x1c70   : > { %v5283_v7 = vpack.c.bf16 %v5282_v61, %v5281_v62  ;;  %v8348_v62 = vld [vmem:[%s10379_s3 + $0x1] ss:$0 sm:$0xff]  ;;  %s9970_s3 = smov 32  }
0x1c72   : > { %9521 = vmatmul.mubr.msk.bf16.vlgmr.msra.gmra.mrb[112].mxu0 %vm1137_vm2, %v5283_v7 }
0x1c73   : > { %5758 = vmatprep.mubr.bf16.mxu0 %v9969_v39  ;;  %5727 = vmatpush1.bf16.msra.mxu0 %v8386_v16  ;;  %v8409_v16 = vcombine.high %v8370_v36, %v8378_v57  ;;  %v9745_v36 = vld [vmem:[%s10110_s6 + $0x478] sm:$0xff]  }
0x1c74   : > { %5728 = vmatprep.subr.bf16.mxu0 %v8403_v44  ;;  %v8399_v44 = vcombine.high %v8357_v32, %v8365_v28  ;;  %v9746_v57 = vld [vmem:[%s10110_s6 + $0x4f8] sm:$0xff]  }
0x1c77   : > { %5729 = vmatpush1.bf16.msra.mxu0 %v8402_v42  ;;  %v8397_v42 = vcombine.high %v8356_v27, %v8364_v31 }
0x1c78   : > { %5812 = vmatprep.subr.bf16.mxu0 %v8391_v19 }
0x1d45   : > { %v5346_v41 = vpop.f32.mrb[112].mxu0 }
0x1d46   : > { %v5347_v3 = vadd.f32 %v8342_v47, %v5346_v41  ;;  %v9522_v4 = vpop.f32.mrb[113].mxu0 }
0x1d47   : > { %v5349_v6 = vpop.f32.mrb[114].mxu0 }
0x1d48   : > { %v5350_v8 = vadd.f32 %v8342_v47, %v5349_v6  ;;  %v9523_v5 = vpop.f32.mrb[115].mxu0  ;;  %v5353_v9 = vadd.f32 %v5347_v3, %v10684_v34  ;;  %v8349_v3 = vld [vmem:[%s10386_s26 + $0x1] ss:$0 sm:$0xff]  ;;  %v8368_v6 = vld [vmem:[%s10359_s4 + $0x190] sm:$0xff]  ;;  %s1021_s26 = scalar_lea.vmem %s11218_s16, %s11288_s28 }
0x1d49   : > { %v8369_v5 = vld [vmem:[%s10359_s4 + $0x198] sm:$0xff] }
0x1d4a   : > { %v5354_v10 = vadd.f32 %v5350_v8, %v10686_v37  ;;  %v5359_v12 = vsel %vm1137_vm2, %v5353_v9, 0.0  ;;  %v8376_v8 = vld [vmem:[%s10359_s4 + $0x1d0] sm:$0xff] }
0x1d4b   : > { %5360 = vadd.xlane.f32.xlu0 %v5359_v12 }
0x1d4c   : > { %v5362_v13 = vsel %vm1137_vm2, %v5354_v10, 0.0 }
0x1d4d   : > { %5363 = vadd.xlane.f32.xlu1 %v5362_v13 }
0x1dd8   : > { %v5361_v1 = vpop.xlane.xlu0 %5360 }
0x1dd9   : > { %v5365_v15 = vmul.f32 0.03125, %v5361_v1  ;;  %v8405_v1 = vcombine.high %v8368_v6, %v8376_v8 }
0x1dda   : > { %v5364_v17 = vpop.xlane.xlu1 %5363 }
0x1ddb   : > { %v5367_v14 = vsub.f32 %v5353_v9, %v5365_v15  ;;  %v5366_v25 = vmul.f32 0.03125, %v5364_v17  ;;  %v8377_v9 = vld [vmem:[%s10359_s4 + $0x1d8] sm:$0xff]  ;;  %v8354_v17 = vld [vmem:[%s10359_s4 + $0x120] sm:$0xff] }
0x1ddc   : > { %v8407_v15 = vcombine.high %v8369_v5, %v8377_v9 }
0x1ddd   : > { %v5368_v35 = vsub.f32 %v5354_v10, %v5366_v25  ;;  %v5369_v24 = vmul.f32 %v5367_v14, %v5367_v14  ;;  %v8355_v25 = vld [vmem:[%s10359_s4 + $0x128] sm:$0xff] }
0x1ddf   : > { %v5371_v34 = vsel %vm1137_vm2, %v5369_v24, 0.0  ;;  %v5370_v37 = vmul.f32 %v5368_v35, %v5368_v35  ;;  %v8404_v24 = vcombine.low %v8368_v6, %v8376_v8  ;;  %v9730_v6 = vld [vmem:[%s10110_s6 + $0x4d8] sm:$0xff]  }
0x1de0   : > { %5372 = vadd.xlane.f32.xlu0 %v5371_v34  ;;  %v8406_v34 = vcombine.low %v8369_v5, %v8377_v9  ;;  %v9731_v8 = vld [vmem:[%s10110_s6 + $0x418] sm:$0xff]   ;;  %v9733_v9 = vld [vmem:[%s10110_s6 + $0x460] sm:$0xff]  }
0x1de1   : > { %v5374_v23 = vsel %vm1137_vm2, %v5370_v37, 0.0  ;;  %v9732_v5 = vld [vmem:[%s10110_s6 + $0x498] sm:$0xff]  }
0x1de4   : > { %5375 = vadd.xlane.f32.xlu0 %v5374_v23 }
0x1e6d   : > { %v5373_v52 = vpop.xlane.xlu0 %5372 }
0x1e6e   : > { %v5377_v53 = vmul.f32 0.03125, %v5373_v52  ;;  %v8412_v52 = vcombine.low %v8372_v45, %v8380_v48 }
0x1e70   : > { %v5379_v54 = vadd.f32 1e-05, %v5377_v53 }
0x1e71   : > { %v5376_v55 = vpop.xlane.xlu0 %5375 }
0x1e72   : > { %9933 = vrsqrt.f32 %v5379_v54  ;;  %v5378_v56 = vmul.f32 0.03125, %v5376_v55  ;;  %v9717_v54 = vld [vmem:[%s10110_s6 + $0x440] sm:$0xff]  }
0x1e73   : > { %v9718_v55 = vld [vmem:[%s10110_s6 + $0x4c0] sm:$0xff]  }
0x1e74   : > { %v5380_v58 = vadd.f32 1e-05, %v5378_v56  ;;  %v9719_v56 = vld [vmem:[%s10110_s6 + $0x400] sm:$0xff]  }
0x1e76   : > { %9935 = vrsqrt.f32 %v5380_v58  ;;  %v9720_v58 = vld [vmem:[%s10110_s6 + $0x480] sm:$0xff]  }
0x1e7c   : > { %v9934_v60 = vpop.eup %9933 }
0x1e7d   : > { %v5383_v61 = vmul.f32 %v9934_v60, %v5367_v14  ;;  %v8362_v14 = vld [vmem:[%s10359_s4 + $0x160] sm:$0xff]  ;;  %v9721_v60 = vld [vmem:[%s10110_s6 + $0x448] sm:$0xff]  }
0x1e7e   : > { %v8393_v37 = vcombine.high %v8354_v17, %v8362_v14  ;;  %v8392_v43 = vcombine.low %v8354_v17, %v8362_v14  ;;  %v9737_v17 = vld [vmem:[%s10110_s6 + $0x468] sm:$0xff]  }
0x1e7f   : > { %v5391_v47 = vmul.f32 %v8348_v62, %v5383_v61  ;;  %v9722_v61 = vld [vmem:[%s10110_s6 + $0x4c8] sm:$0xff]  }
0x1e80   : > { %v9936_v7 = vpop.eup %9935  ;;  %v9738_v14 = vld [vmem:[%s10110_s6 + $0x4e8] sm:$0xff]  }
0x1e81   : > { %v5384_v41 = vmul.f32 %v9936_v7, %v5368_v35  ;;  %v10892_v10 = vadd.f32 %v8349_v3, %v5391_v47  ;;  %v8363_v35 = vld [vmem:[%s10359_s4 + $0x168] sm:$0xff]  ;;  %v9725_v7 = vld [vmem:[%s10110_s6 + $0x450] sm:$0xff]  }
0x1e82   : > { %v8395_v23 = vcombine.high %v8355_v25, %v8363_v35  ;;  %v8394_v59 = vcombine.low %v8355_v25, %v8363_v35  ;;  %v9726_v47 = vld [vmem:[%s10110_s6 + $0x4d0] sm:$0xff]   ;;  %v9739_v25 = vld [vmem:[%s10110_s6 + $0x428] sm:$0xff]  }
0x1e83   : > { %v5392_v4 = vmul.f32 %v8348_v62, %v5384_v41  ;;  %v9724_v62 = vld [vmem:[%s10110_s6 + $0x488] sm:$0xff]   ;;  %v9727_v41 = vld [vmem:[%s10110_s6 + $0x410] sm:$0xff]  }
0x1e84   : > { %v9740_v35 = vld [vmem:[%s10110_s6 + $0x4a8] sm:$0xff]  }
0x1e85   : > { %v10894_v12 = vadd.f32 %v8349_v3, %v5392_v4  ;;  %v9728_v3 = vld [vmem:[%s10110_s6 + $0x490] sm:$0xff]   ;;  %v9729_v4 = vld [vmem:[%s10110_s6 + $0x458] sm:$0xff]  }
0x1e87   : > { %v10898_v13 = vpack.c.bf16 %v10894_v12, %v10892_v10 }
0x1e89   : > { %8416 = vmatmul.mubr.msk.bf16.vlgmr.msra.gmra.mrb[96].mxu1 %vm1137_vm2, %v10898_v13  ;;  %8417 = vmatmul.mubr.msk.bf16.vlgmr.msra.gmra.mrb[116].mxu0 %vm1137_vm2, %v10898_v13 }
0x1e8a   : > { %5770 = vmatpush1.bf16.msra.mxu1 %v8388_v50  ;;  %5813 = vmatpush1.bf16.msra.mxu0 %v8390_v0  ;;  %v8381_v50 = vld [vmem:[%s10359_s4 + $0x1f8] sm:$0xff]  ;;  %v8413_v0 = vcombine.high %v8372_v45, %v8380_v48 }
0x1e8b   : > { %5771 = vmatprep.subr.bf16.mxu1 %v8405_v1  ;;  %5814 = vmatprep.subr.bf16.mxu0 %v8407_v15  ;;  %v8415_v19 = vcombine.high %v8373_v49, %v8381_v50  ;;  %v8414_v53 = vcombine.low %v8373_v49, %v8381_v50  ;;  %v9735_v1 = vld [vmem:[%s10110_s6 + $0x420] sm:$0xff]  }
0x1e8c   : > { %5801 = vmatprep.mubr.bf16.mxu1 %v9969_v39  ;;  %5844 = vmatprep.mubr.bf16.mxu0 %v9969_v39  ;;  %v9736_v15 = vld [vmem:[%s10110_s6 + $0x4a0] sm:$0xff]  }
0x1e8e   : > { %5772 = vmatpush1.bf16.msra.mxu1 %v8404_v24  ;;  %5815 = vmatpush1.bf16.msra.mxu0 %v8406_v34  ;;  %v9741_v24 = vld [vmem:[%s10110_s6 + $0x470] sm:$0xff]  }
0x1e8f   : > { %5855 = vmatprep.subr.bf16.mxu1 %v8393_v37  ;;  %5898 = vmatprep.subr.bf16.mxu0 %v8395_v23  ;;  %v9742_v34 = vld [vmem:[%s10110_s6 + $0x4f0] sm:$0xff]  }
0x1e90   : > { %v9743_v37 = vld [vmem:[%s10110_s6 + $0x430] sm:$0xff]  }
0x1e91   : > { %8418 = vmatmul.mubr.msk.bf16.vlgmr.msra.gmra.mrb[100].mxu1 %vm1137_vm2, %v10898_v13  ;;  %8419 = vmatmul.mubr.msk.bf16.vlgmr.msra.gmra.mrb[120].mxu0 %vm1137_vm2, %v10898_v13  ;;  %v9744_v23 = vld [vmem:[%s10110_s6 + $0x4b0] sm:$0xff]  }
0x1e92   : > { %5856 = vmatpush1.bf16.msra.mxu1 %v8392_v43  ;;  %5899 = vmatpush1.bf16.msra.mxu0 %v8394_v59  ;;  %v9749_v43 = vld [vmem:[%s10110_s6 + $0x540] sm:$0xff]  }
0x1e93   : > { %5857 = vmatprep.subr.bf16.mxu1 %v8409_v16  ;;  %5900 = vmatprep.subr.bf16.mxu0 %v8411_v63  ;;  %v9750_v59 = vld [vmem:[%s10110_s6 + $0x5c0] sm:$0xff]   ;;  %v8382_v16 = vld [vmem:[%s10477_s0 + $0x10] sm:$0xff] }
0x1e94   : > { %5887 = vmatprep.mubr.bf16.mxu1 %v9969_v39  ;;  %5930 = vmatprep.mubr.bf16.mxu0 %v9969_v39  ;;  %v5443_v63 = vrot.slane %v8382_v16, %v10479_v20  ;;  %v5451_v27 = vrot.slane %v8382_v16, %v10481_v21  ;;  %v5447_v31 = vrot.slane %v8382_v16, %v10484_v22 }
0x1e95   : > { %v5455_v32 = vrot.slane %v8382_v16, %v10486_v11 }
0x1e96   : > { %5858 = vmatpush1.bf16.msra.mxu1 %v8408_v33  ;;  %5901 = vmatpush1.bf16.msra.mxu0 %v8410_v40 }
0x1e97   : > { %5941 = vmatprep.subr.bf16.mxu1 %v8397_v42  ;;  %5984 = vmatprep.subr.bf16.mxu0 %v8399_v44 }
0x1e99   : > { %8420 = vmatmul.mubr.msk.bf16.vlgmr.msra.gmra.mrb[104].mxu1 %vm1137_vm2, %v10898_v13  ;;  %8421 = vmatmul.mubr.msk.bf16.vlgmr.msra.gmra.mrb[124].mxu0 %vm1137_vm2, %v10898_v13 }
0x1e9a   : > { %5942 = vmatpush1.bf16.msra.mxu1 %v8396_v18  ;;  %5985 = vmatpush1.bf16.msra.mxu0 %v8398_v51 }
0x1e9b   : > { %5943 = vmatprep.subr.bf16.mxu1 %v8413_v0  ;;  %5986 = vmatprep.subr.bf16.mxu0 %v8415_v19 }
0x1e9c   : > { %5973 = vmatprep.mubr.bf16.mxu1 %v9969_v39  ;;  %6016 = vmatprep.mubr.bf16.mxu0 %v9969_v39  ;;  %v9723_v39 = vld [vmem:[%s10110_s6 + $0x408] sm:$0xff]  }
0x1e9e   : > { %5944 = vmatpush1.bf16.msra.mxu1 %v8412_v52  ;;  %5987 = vmatpush1.bf16.msra.mxu0 %v8414_v53  ;;  %v5459_v53 = vrot.slane %v8382_v16, %v10492_v2 }
0x1e9f   : > { %9096 = vmatprep.subr.bf16.mxu1 %v9717_v54  ;;  %9118 = vmatprep.subr.bf16.mxu0 %v9718_v55  ;;  %v5467_v54 = vrot.slane %v8382_v16, %v10494_v26 }
0x1ea1   : > { %8422 = vmatmul.mubr.msk.bf16.vlgmr.msra.gmra.mrb[108].mxu1 %vm1137_vm2, %v10898_v13  ;;  %8423 = vmatmul.mubr.msk.bf16.vlgmr.msra.gmra.mrb[128].mxu0 %vm1137_vm2, %v10898_v13  ;;  %v9734_v13 = vld [vmem:[%s10110_s6 + $0x4e0] sm:$0xff]  }
0x1ea2   : > { %9097 = vmatpush3.bf16.msra.mxu1 %v9719_v56  ;;  %9119 = vmatpush3.bf16.msra.mxu0 %v9720_v58  ;;  %v5463_v58 = vrot.slane %v8382_v16, %v10496_v29 }
0x1ea3   : > { %9098 = vmatprep.subr.bf16.mxu1 %v9721_v60  ;;  %9120 = vmatprep.subr.bf16.mxu0 %v9722_v61  ;;  %v5471_v60 = vrot.slane %v8382_v16, %v10498_v30 }
0x1ea6   : > { %9099 = vmatpush3.bf16.msra.mxu1 %v9723_v39  ;;  %9121 = vmatpush3.bf16.msra.mxu0 %v9724_v62 }
0x1ea7   : > { %9100 = vmatprep.subr.bf16.mxu1 %v9725_v7  ;;  %9122 = vmatprep.subr.bf16.mxu0 %v9726_v47 }
0x1eaa   : > { %9101 = vmatpush3.bf16.msra.mxu1 %v9727_v41  ;;  %9123 = vmatpush3.bf16.msra.mxu0 %v9728_v3 }
0x1eab   : > { %9102 = vmatprep.subr.bf16.mxu1 %v9729_v4  ;;  %9124 = vmatprep.subr.bf16.mxu0 %v9730_v6  ;;  %v10982_v6 = vld [vmem:[%s10477_s0 + $0x18] sm:$0xff] }
0x1eae   : > { %9103 = vmatpush3.bf16.msra.mxu1 %v9731_v8  ;;  %9125 = vmatpush3.bf16.msra.mxu0 %v9732_v5 }
0x1eaf   : > { %9104 = vmatprep.subr.bf16.mxu1 %v9733_v9  ;;  %9126 = vmatprep.subr.bf16.mxu0 %v9734_v13 }
0x1eb2   : > { %9105 = vmatpush3.bf16.msra.mxu1 %v9735_v1  ;;  %9127 = vmatpush3.bf16.msra.mxu0 %v9736_v15 }
0x1eb3   : > { %9106 = vmatprep.subr.bf16.mxu1 %v9737_v17  ;;  %9128 = vmatprep.subr.bf16.mxu0 %v9738_v14  ;;  %v9751_v17 = vld [vmem:[%s10110_s6 + $0x500] sm:$0xff]  }
0x1eb4   : > { %v9752_v14 = vld [vmem:[%s10110_s6 + $0x580] sm:$0xff]  }
0x1eb6   : > { %9107 = vmatpush3.bf16.msra.mxu1 %v9739_v25  ;;  %9129 = vmatpush3.bf16.msra.mxu0 %v9740_v35 }
0x1eb7   : > { %9108 = vmatprep.subr.bf16.mxu1 %v9741_v24  ;;  %9130 = vmatprep.subr.bf16.mxu0 %v9742_v34 }
0x1eba   : > { %9109 = vmatpush3.bf16.msra.mxu1 %v9743_v37  ;;  %9131 = vmatpush3.bf16.msra.mxu0 %v9744_v23  ;;  %v9753_v37 = vld [vmem:[%s10110_s6 + $0x548] sm:$0xff]  }
0x1ebb   : > { %9110 = vmatprep.subr.bf16.mxu1 %v9745_v36  ;;  %9132 = vmatprep.subr.bf16.mxu0 %v9746_v57  ;;  %v9754_v23 = vld [vmem:[%s10110_s6 + $0x5c8] sm:$0xff]   ;;  %v5475_v36 = vrot.slane %v10982_v6, %v10479_v20 }
0x1ebe   : > { %9111 = vmatpush3.bf16.msra.mxu1 %v9747_v38  ;;  %9133 = vmatpush3.bf16.msra.mxu0 %v9748_v46 }
0x1ebf   : > { %9140 = vmatprep.subr.bf16.mxu1 %v9749_v43  ;;  %9162 = vmatprep.subr.bf16.mxu0 %v9750_v59  ;;  %v5483_v59 = vrot.slane %v10982_v6, %v10481_v21  ;;  %v5487_v21 = vrot.slane %v10982_v6, %v10486_v11 }
0x1f5c   : > { %v5717_v28 = vpop.f32.mrb[96].mxu1  ;;  %v5760_v33 = vpop.f32.mrb[116].mxu0 }
0x1f5d   : > { %v5718_v40 = vadd.f32 %v5717_v28, %v5443_v63  ;;  %v5761_v42 = vadd.f32 %v5760_v33, %v5451_v27  ;;  %v5719_v44 = vpop.f32.mrb[97].mxu1  ;;  %v5762_v45 = vpop.f32.mrb[117].mxu0 }
0x1f5e   : > { %v5720_v48 = vadd.f32 %v5719_v44, %v5447_v31  ;;  %v5763_v49 = vadd.f32 %v5762_v45, %v5455_v32  ;;  %v5721_v50 = vpop.f32.mrb[98].mxu1  ;;  %v5764_v18 = vpop.f32.mrb[118].mxu0 }
0x1f5f   : > { %v5722_v51 = vadd.f32 %v5721_v50, %v5443_v63  ;;  %v5765_v0 = vadd.f32 %v5764_v18, %v5451_v27  ;;  %v5723_v19 = vpop.f32.mrb[99].mxu1  ;;  %v5766_v52 = vpop.f32.mrb[119].mxu0  ;;  %v6027_v61 = vmax.f32 %v5718_v40, 0.0  ;;  %v6029_v39 = vmax.f32 %v5761_v42, 0.0  ;;  %v9755_v40 = vld [vmem:[%s10110_s6 + $0x508] sm:$0xff]   ;;  %v9757_v50 = vld [vmem:[%s10110_s6 + $0x550] sm:$0xff]  }
0x1f60   : > { %v5724_v55 = vadd.f32 %v5723_v19, %v5447_v31  ;;  %v5767_v56 = vadd.f32 %v5766_v52, %v5455_v32  ;;  %v6028_v47 = vmax.f32 %v5720_v48, 0.0  ;;  %v6030_v41 = vmax.f32 %v5763_v49, 0.0  ;;  %v9756_v42 = vld [vmem:[%s10110_s6 + $0x588] sm:$0xff]   ;;  %v9758_v18 = vld [vmem:[%s10110_s6 + $0x5d0] sm:$0xff]  }
0x1f61   : > { %v6043_v62 = vmax.f32 %v5722_v51, 0.0  ;;  %v6045_v7 = vmax.f32 %v5765_v0, 0.0  ;;  %v5479_v32 = vrot.slane %v10982_v6, %v10484_v22 }
0x1f62   : > { %v6044_v3 = vmax.f32 %v5724_v55, 0.0  ;;  %v6046_v4 = vmax.f32 %v5767_v56, 0.0 }
0x1f63   : > { %v6059_v8 = vpack.c.bf16 %v6043_v62, %v6027_v61  ;;  %v6061_v5 = vpack.c.bf16 %v6045_v7, %v6029_v39  ;;  %v9760_v61 = vld [vmem:[%s10110_s6 + $0x590] sm:$0xff]  }
0x1f64   : > { %v6060_v9 = vpack.c.bf16 %v6044_v3, %v6028_v47  ;;  %v6062_v13 = vpack.c.bf16 %v6046_v4, %v6030_v41  ;;  %v5803_v1 = vpop.f32.mrb[100].mxu1  ;;  %v5846_v15 = vpop.f32.mrb[120].mxu0  ;;  %v9761_v41 = vld [vmem:[%s10110_s6 + $0x558] sm:$0xff]  }
0x1f65   : > { %v5804_v25 = vadd.f32 %v5803_v1, %v5459_v53  ;;  %v5847_v35 = vadd.f32 %v5846_v15, %v5467_v54  ;;  %v5805_v24 = vpop.f32.mrb[101].mxu1  ;;  %v5848_v34 = vpop.f32.mrb[121].mxu0  ;;  %v9762_v3 = vld [vmem:[%s10110_s6 + $0x5d8] sm:$0xff]  }
0x1f66   : > { %v5806_v57 = vadd.f32 %v5805_v24, %v5463_v58  ;;  %v5849_v38 = vadd.f32 %v5848_v34, %v5471_v60  ;;  %v5807_v46 = vpop.f32.mrb[102].mxu1  ;;  %v5850_v43 = vpop.f32.mrb[122].mxu0  ;;  %7140 = vmatprep.mubr.bf16.mxu1 %v6060_v9  ;;  %7181 = vmatprep.mubr.bf16.mxu0 %v6062_v13  ;;  %v5491_v13 = vrot.slane %v10982_v6, %v10492_v2 }
0x1f67   : > { %v5808_v16 = vadd.f32 %v5807_v46, %v5459_v53  ;;  %v5851_v63 = vadd.f32 %v5850_v43, %v5467_v54  ;;  %v5809_v27 = vpop.f32.mrb[103].mxu1  ;;  %v5852_v31 = vpop.f32.mrb[123].mxu0  ;;  %7141 = vmatmul.mubr.bf16.vlgmr.msra.gmra.mrb[112].mxu1 %v6059_v8  ;;  %7182 = vmatmul.mubr.bf16.vlgmr.msra.gmra.mrb[132].mxu0 %v6061_v5  ;;  %v6031_v44 = vmax.f32 %v5804_v25, 0.0  ;;  %v6033_v45 = vmax.f32 %v5847_v35, 0.0  ;;  %v9766_v43 = vld [vmem:[%s10110_s6 + $0x5e0] sm:$0xff]  }
0x1f68   : > { %v5810_v28 = vadd.f32 %v5809_v27, %v5463_v58  ;;  %v5853_v33 = vadd.f32 %v5852_v31, %v5471_v60  ;;  %9141 = vmatpush3.bf16.msra.mxu1 %v9751_v17  ;;  %9163 = vmatpush3.bf16.msra.mxu0 %v9752_v14  ;;  %v6032_v51 = vmax.f32 %v5806_v57, 0.0  ;;  %v6034_v0 = vmax.f32 %v5849_v38, 0.0  ;;  %v9759_v60 = vld [vmem:[%s10110_s6 + $0x510] sm:$0xff]  }
0x1f69   : > { %v6047_v48 = vmax.f32 %v5808_v16, 0.0  ;;  %v6049_v49 = vmax.f32 %v5851_v63, 0.0  ;;  %9142 = vmatprep.subr.bf16.mxu1 %v9753_v37  ;;  %9164 = vmatprep.subr.bf16.mxu0 %v9754_v23  ;;  %v5499_v25 = vrot.slane %v10982_v6, %v10494_v26  ;;  %v5495_v35 = vrot.slane %v10982_v6, %v10496_v29  ;;  %v9763_v37 = vld [vmem:[%s10110_s6 + $0x518] sm:$0xff]   ;;  %v9765_v26 = vld [vmem:[%s10110_s6 + $0x560] sm:$0xff]  }
0x1f6a   : > { %v6048_v19 = vmax.f32 %v5810_v28, 0.0  ;;  %v6050_v52 = vmax.f32 %v5853_v33, 0.0  ;;  %v9764_v23 = vld [vmem:[%s10110_s6 + $0x598] sm:$0xff]   ;;  %v5503_v2 = vrot.slane %v10982_v6, %v10498_v30  ;;  %v9767_v33 = vld [vmem:[%s10110_s6 + $0x520] sm:$0xff]  }
0x1f6b   : > { %v11000_v53 = vpack.c.bf16 %v6047_v48, %v6031_v44  ;;  %v11002_v54 = vpack.c.bf16 %v6049_v49, %v6033_v45  ;;  %v9769_v48 = vld [vmem:[%s10110_s6 + $0x568] sm:$0xff]  }
0x1f6c   : > { %v6064_v11 = vpack.c.bf16 %v6048_v19, %v6032_v51  ;;  %v6066_v55 = vpack.c.bf16 %v6050_v52, %v6034_v0  ;;  %9143 = vmatpush3.bf16.msra.mxu1 %v9755_v40  ;;  %9165 = vmatpush3.bf16.msra.mxu0 %v9756_v42  ;;  %v5889_v56 = vpop.f32.mrb[104].mxu1  ;;  %v5932_v58 = vpop.f32.mrb[124].mxu0  ;;  %v9768_v40 = vld [vmem:[%s10110_s6 + $0x5a0] sm:$0xff]   ;;  %v9770_v49 = vld [vmem:[%s10110_s6 + $0x5e8] sm:$0xff]  }
0x1f6d   : > { %v5890_v39 = vadd.f32 %v5889_v56, %v5475_v36  ;;  %v5933_v62 = vadd.f32 %v5932_v58, %v5483_v59  ;;  %v5891_v7 = vpop.f32.mrb[105].mxu1  ;;  %v5934_v47 = vpop.f32.mrb[125].mxu0  ;;  %9144 = vmatprep.subr.bf16.mxu1 %v9757_v50  ;;  %9166 = vmatprep.subr.bf16.mxu0 %v9758_v18 }
0x1f6e   : > { %v5892_v4 = vadd.f32 %v5891_v7, %v5479_v32  ;;  %v5935_v8 = vadd.f32 %v5934_v47, %v5487_v21  ;;  %v5893_v5 = vpop.f32.mrb[106].mxu1  ;;  %v5936_v9 = vpop.f32.mrb[126].mxu0  ;;  %7222 = vmatprep.mubr.bf16.mxu1 %v6064_v11  ;;  %7263 = vmatprep.mubr.bf16.mxu0 %v6066_v55 }
0x1f6f   : > { %v5894_v1 = vadd.f32 %v5893_v5, %v5475_v36  ;;  %v5937_v15 = vadd.f32 %v5936_v9, %v5483_v59  ;;  %v5895_v17 = vpop.f32.mrb[107].mxu1  ;;  %v5938_v14 = vpop.f32.mrb[127].mxu0  ;;  %v6035_v36 = vmax.f32 %v5890_v39, 0.0  ;;  %v6037_v57 = vmax.f32 %v5933_v62, 0.0 }
0x1f70   : > { %v5896_v24 = vadd.f32 %v5895_v17, %v5479_v32  ;;  %v5939_v34 = vadd.f32 %v5938_v14, %v5487_v21  ;;  %9145 = vmatpush3.bf16.msra.mxu1 %v9759_v60  ;;  %9167 = vmatpush3.bf16.msra.mxu0 %v9760_v61  ;;  %v6036_v29 = vmax.f32 %v5892_v4, 0.0  ;;  %v6038_v59 = vmax.f32 %v5935_v8, 0.0  ;;  %v9771_v60 = vld [vmem:[%s10110_s6 + $0x528] sm:$0xff]   ;;  %v9775_v14 = vld [vmem:[%s10110_s6 + $0x530] sm:$0xff]  }
0x1f71   : > { %v6051_v38 = vmax.f32 %v5894_v1, 0.0  ;;  %v6053_v46 = vmax.f32 %v5937_v15, 0.0  ;;  %9146 = vmatprep.subr.bf16.mxu1 %v9761_v41  ;;  %9168 = vmatprep.subr.bf16.mxu0 %v9762_v3  ;;  %v9772_v61 = vld [vmem:[%s10110_s6 + $0x5a8] sm:$0xff]   ;;  %v9773_v41 = vld [vmem:[%s10110_s6 + $0x570] sm:$0xff]  }
0x1f72   : > { %v6052_v16 = vmax.f32 %v5896_v24, 0.0  ;;  %v6054_v63 = vmax.f32 %v5939_v34, 0.0  ;;  %v9774_v3 = vld [vmem:[%s10110_s6 + $0x5f0] sm:$0xff]   ;;  %v9778_v24 = vld [vmem:[%s10110_s6 + $0x5f8] sm:$0xff]  }
0x1f73   : > { %v11020_v27 = vpack.c.bf16 %v6051_v38, %v6035_v36  ;;  %v11022_v31 = vpack.c.bf16 %v6053_v46, %v6037_v57  ;;  %v9779_v34 = vld [vmem:[%s10110_s6 + $0x538] sm:$0xff]   ;;  %v9783_v36 = vld [vmem:[%s10110_s6 + $0x600] sm:$0xff]   ;;  %v9785_v38 = vld [vmem:[%s10110_s6 + $0x648] sm:$0xff]  }
0x1f74   : > { %v11024_v30 = vpack.c.bf16 %v6052_v16, %v6036_v29  ;;  %v11026_v6 = vpack.c.bf16 %v6054_v63, %v6038_v59  ;;  %9147 = vmatpush3.bf16.msra.mxu1 %v9763_v37  ;;  %9169 = vmatpush3.bf16.msra.mxu0 %v9764_v23  ;;  %v5975_v32 = vpop.f32.mrb[108].mxu1  ;;  %v6018_v28 = vpop.f32.mrb[128].mxu0  ;;  %v9780_v37 = vld [vmem:[%s10110_s6 + $0x5b8] sm:$0xff]   ;;  %v9781_v23 = vld [vmem:[%s10110_s6 + $0x640] sm:$0xff]   ;;  %v9786_v46 = vld [vmem:[%s10110_s6 + $0x6c8] sm:$0xff]  }
0x1f75   : > { %v5976_v42 = vadd.f32 %v5975_v32, %v5491_v13  ;;  %v6019_v21 = vadd.f32 %v6018_v28, %v5499_v25  ;;  %v5977_v44 = vpop.f32.mrb[109].mxu1  ;;  %v6020_v45 = vpop.f32.mrb[129].mxu0  ;;  %9148 = vmatprep.subr.bf16.mxu1 %v9765_v26  ;;  %9170 = vmatprep.subr.bf16.mxu0 %v9766_v43  ;;  %v9784_v57 = vld [vmem:[%s10110_s6 + $0x680] sm:$0xff]   ;;  %v9787_v26 = vld [vmem:[%s10110_s6 + $0x608] sm:$0xff]   ;;  %v9789_v29 = vld [vmem:[%s10110_s6 + $0x650] sm:$0xff]  }
0x1f76   : > { %v5978_v50 = vadd.f32 %v5977_v44, %v5495_v35  ;;  %v6021_v18 = vadd.f32 %v6020_v45, %v5503_v2  ;;  %v5979_v51 = vpop.f32.mrb[110].mxu1  ;;  %v6022_v0 = vpop.f32.mrb[130].mxu0  ;;  %v9788_v43 = vld [vmem:[%s10110_s6 + $0x688] sm:$0xff]   ;;  %v9792_v59 = vld [vmem:[%s10110_s6 + $0x690] sm:$0xff]   ;;  %v9793_v16 = vld [vmem:[%s10110_s6 + $0x658] sm:$0xff]  }
0x1f77   : > { %v5980_v19 = vadd.f32 %v5979_v51, %v5491_v13  ;;  %v6023_v52 = vadd.f32 %v6022_v0, %v5499_v25  ;;  %v5981_v11 = vpop.f32.mrb[111].mxu1  ;;  %v6024_v55 = vpop.f32.mrb[131].mxu0  ;;  %v6039_v39 = vmax.f32 %v5976_v42, 0.0  ;;  %v6041_v62 = vmax.f32 %v6019_v21, 0.0  ;;  %v9776_v25 = vld [vmem:[%s10110_s6 + $0x5b0] sm:$0xff]   ;;  %v9794_v63 = vld [vmem:[%s10110_s6 + $0x6d8] sm:$0xff]  }
0x1f78   : > { %v5982_v56 = vadd.f32 %v5981_v11, %v5495_v35  ;;  %v6025_v58 = vadd.f32 %v6024_v55, %v5503_v2  ;;  %9149 = vmatpush3.bf16.msra.mxu1 %v9767_v33  ;;  %9171 = vmatpush3.bf16.msra.mxu0 %v9768_v40  ;;  %v6040_v4 = vmax.f32 %v5978_v50, 0.0  ;;  %v6042_v8 = vmax.f32 %v6021_v18, 0.0  ;;  %v9777_v35 = vld [vmem:[%s10110_s6 + $0x578] sm:$0xff]   ;;  %v9782_v2 = vld [vmem:[%s10110_s6 + $0x6c0] sm:$0xff]   ;;  %v9801_v42 = vld [vmem:[%s10110_s6 + $0x668] sm:$0xff]  }
0x1f79   : > { %v6055_v7 = vmax.f32 %v5980_v19, 0.0  ;;  %v6057_v47 = vmax.f32 %v6023_v52, 0.0  ;;  %9150 = vmatprep.subr.bf16.mxu1 %v9769_v48  ;;  %9172 = vmatprep.subr.bf16.mxu0 %v9770_v49  ;;  %v9797_v32 = vld [vmem:[%s10110_s6 + $0x660] sm:$0xff]   ;;  %v9802_v21 = vld [vmem:[%s10110_s6 + $0x6e8] sm:$0xff]   ;;  %v9805_v48 = vld [vmem:[%s10110_s6 + $0x670] sm:$0xff]  }
0x1f7a   : > { %v6056_v5 = vmax.f32 %v5982_v56, 0.0  ;;  %v6058_v9 = vmax.f32 %v6025_v58, 0.0  ;;  %v9798_v28 = vld [vmem:[%s10110_s6 + $0x6e0] sm:$0xff]   ;;  %v9803_v44 = vld [vmem:[%s10110_s6 + $0x628] sm:$0xff]   ;;  %v9806_v49 = vld [vmem:[%s10110_s6 + $0x6f0] sm:$0xff]  }
0x1f7b   : > { %v11036_v13 = vpack.c.bf16 %v6055_v7, %v6039_v39  ;;  %v11038_v1 = vpack.c.bf16 %v6057_v47, %v6041_v62  ;;  %v9799_v33 = vld [vmem:[%s10110_s6 + $0x620] sm:$0xff]   ;;  %v9804_v45 = vld [vmem:[%s10110_s6 + $0x6a8] sm:$0xff]   ;;  %v9807_v50 = vld [vmem:[%s10110_s6 + $0x630] sm:$0xff]  }
0x1f7c   : > { %v11040_v15 = vpack.c.bf16 %v6056_v5, %v6040_v4  ;;  %v11042_v17 = vpack.c.bf16 %v6058_v9, %v6042_v8  ;;  %9151 = vmatpush3.bf16.msra.mxu1 %v9771_v60  ;;  %9173 = vmatpush3.bf16.msra.mxu0 %v9772_v61  ;;  %v9800_v40 = vld [vmem:[%s10110_s6 + $0x6a0] sm:$0xff]   ;;  %v9808_v18 = vld [vmem:[%s10110_s6 + $0x6b0] sm:$0xff]   ;;  %v9809_v51 = vld [vmem:[%s10110_s6 + $0x678] sm:$0xff]  }
0x1f7d   : > { %9152 = vmatprep.subr.bf16.mxu1 %v9773_v41  ;;  %9174 = vmatprep.subr.bf16.mxu0 %v9774_v3  ;;  %v9810_v0 = vld [vmem:[%s10110_s6 + $0x6f8] sm:$0xff]   ;;  %v9813_v11 = vld [vmem:[%s10110_s6 + $0x740] sm:$0xff]   ;;  %v9817_v60 = vld [vmem:[%s10110_s6 + $0x748] sm:$0xff]  }
0x1f7e   : > { %v9811_v19 = vld [vmem:[%s10110_s6 + $0x638] sm:$0xff]   ;;  %v9814_v55 = vld [vmem:[%s10110_s6 + $0x7c0] sm:$0xff]   ;;  %v9818_v61 = vld [vmem:[%s10110_s6 + $0x7c8] sm:$0xff]  }
0x1f7f   : > { %v9812_v52 = vld [vmem:[%s10110_s6 + $0x6b8] sm:$0xff]   ;;  %v9815_v56 = vld [vmem:[%s10110_s6 + $0x700] sm:$0xff]   ;;  %v9819_v39 = vld [vmem:[%s10110_s6 + $0x708] sm:$0xff]  }
0x1f80   : > { %9153 = vmatpush3.bf16.msra.mxu1 %v9775_v14  ;;  %9175 = vmatpush3.bf16.msra.mxu0 %v9776_v25  ;;  %v9816_v58 = vld [vmem:[%s10110_s6 + $0x780] sm:$0xff]   ;;  %v9820_v62 = vld [vmem:[%s10110_s6 + $0x788] sm:$0xff]   ;;  %v9821_v7 = vld [vmem:[%s10110_s6 + $0x750] sm:$0xff]  }
0x1f81   : > { %9154 = vmatprep.subr.bf16.mxu1 %v9777_v35  ;;  %9176 = vmatprep.subr.bf16.mxu0 %v9778_v24  ;;  %v9824_v47 = vld [vmem:[%s10110_s6 + $0x790] sm:$0xff]   ;;  %v9825_v41 = vld [vmem:[%s10110_s6 + $0x758] sm:$0xff]   ;;  %v9829_v5 = vld [vmem:[%s10110_s6 + $0x760] sm:$0xff]  }
0x1f82   : > { %v9826_v3 = vld [vmem:[%s10110_s6 + $0x7d8] sm:$0xff]   ;;  %v9830_v9 = vld [vmem:[%s10110_s6 + $0x7e0] sm:$0xff]   ;;  %v9833_v14 = vld [vmem:[%s10110_s6 + $0x768] sm:$0xff]  }
0x1f83   : > { %v9827_v4 = vld [vmem:[%s10110_s6 + $0x718] sm:$0xff]   ;;  %v9834_v25 = vld [vmem:[%s10110_s6 + $0x7e8] sm:$0xff]  }
0x1f84   : > { %9155 = vmatpush3.bf16.msra.mxu1 %v9779_v34  ;;  %9177 = vmatpush3.bf16.msra.mxu0 %v9780_v37  ;;  %v9828_v8 = vld [vmem:[%s10110_s6 + $0x798] sm:$0xff]   ;;  %v9835_v35 = vld [vmem:[%s10110_s6 + $0x728] sm:$0xff]   ;;  %v9837_v34 = vld [vmem:[%s10110_s6 + $0x770] sm:$0xff]  }
0x1f85   : > { %9184 = vmatprep.subr.bf16.mxu1 %v9781_v23  ;;  %9206 = vmatprep.subr.bf16.mxu0 %v9782_v2  ;;  %v9836_v24 = vld [vmem:[%s10110_s6 + $0x7a8] sm:$0xff]   ;;  %v9838_v37 = vld [vmem:[%s10110_s6 + $0x7f0] sm:$0xff]  }
0x1f86   : > { %v9839_v23 = vld [vmem:[%s10110_s6 + $0x730] sm:$0xff]  }
0x1f87   : > { %7223 = vmatmul.mubr.bf16.vlgmr.msra.gmra.mrb[116].mxu1 %v11000_v53  ;;  %7264 = vmatmul.mubr.bf16.vlgmr.msra.gmra.mrb[136].mxu0 %v11002_v54  ;;  %v9790_v53 = vld [vmem:[%s10110_s6 + $0x6d0] sm:$0xff]  }
0x1f88   : > { %9185 = vmatpush3.bf16.msra.mxu1 %v9783_v36  ;;  %7304 = vmatprep.mubr.bf16.mxu1 %v11024_v30  ;;  %v9791_v54 = vld [vmem:[%s10110_s6 + $0x610] sm:$0xff]   ;;  %v9795_v30 = vld [vmem:[%s10110_s6 + $0x618] sm:$0xff]  }
0x1f89   : > { %9207 = vmatpush3.bf16.msra.mxu0 %v9784_v57  ;;  %7345 = vmatprep.mubr.bf16.mxu0 %v11026_v6  ;;  %v9796_v6 = vld [vmem:[%s10110_s6 + $0x698] sm:$0xff]   ;;  %v9840_v2 = vld [vmem:[%s10110_s6 + $0x7b0] sm:$0xff]  }
0x1f8a   : > { %9186 = vmatprep.subr.bf16.mxu1 %v9785_v38  ;;  %9208 = vmatprep.subr.bf16.mxu0 %v9786_v46  ;;  %v9841_v36 = vld [vmem:[%s10110_s6 + $0x778] sm:$0xff]  }
0x1f8b   : > { %v9842_v57 = vld [vmem:[%s10110_s6 + $0x7f8] sm:$0xff]  }
0x1f8c   : > { %9187 = vmatpush3.bf16.msra.mxu1 %v9787_v26  ;;  %v9843_v38 = vld [vmem:[%s10110_s6 + $0x738] sm:$0xff]  }
0x1f8d   : > { %9209 = vmatpush3.bf16.msra.mxu0 %v9788_v43  ;;  %9188 = vmatprep.subr.bf16.mxu1 %v9789_v29  ;;  %v9844_v46 = vld [vmem:[%s10110_s6 + $0x7b8] sm:$0xff]   ;;  %v8681_v29 = vld [vmem:[%s10657_s2 + $0x1] ss:$0 sm:$0xff] }
0x1f8e   : > { %9210 = vmatprep.subr.bf16.mxu0 %v9790_v53 }
0x1f90   : > { %9189 = vmatpush3.bf16.msra.mxu1 %v9791_v54 }
0x1f91   : > { %9211 = vmatpush3.bf16.msra.mxu0 %v9792_v59  ;;  %9190 = vmatprep.subr.bf16.mxu1 %v9793_v16 }
0x1f92   : > { %9212 = vmatprep.subr.bf16.mxu0 %v9794_v63 }
0x1f94   : > { %9191 = vmatpush3.bf16.msra.mxu1 %v9795_v30 }
0x1f95   : > { %9213 = vmatpush3.bf16.msra.mxu0 %v9796_v6  ;;  %9192 = vmatprep.subr.bf16.mxu1 %v9797_v32 }
0x1f96   : > { %9214 = vmatprep.subr.bf16.mxu0 %v9798_v28 }
0x1f98   : > { %9193 = vmatpush3.bf16.msra.mxu1 %v9799_v33 }
0x1f99   : > { %9215 = vmatpush3.bf16.msra.mxu0 %v9800_v40  ;;  %9194 = vmatprep.subr.bf16.mxu1 %v9801_v42 }
0x1f9a   : > { %9216 = vmatprep.subr.bf16.mxu0 %v9802_v21 }
0x1f9c   : > { %9195 = vmatpush3.bf16.msra.mxu1 %v9803_v44 }
0x1f9d   : > { %9217 = vmatpush3.bf16.msra.mxu0 %v9804_v45  ;;  %9196 = vmatprep.subr.bf16.mxu1 %v9805_v48 }
0x1f9e   : > { %9218 = vmatprep.subr.bf16.mxu0 %v9806_v49 }
0x1fa0   : > { %9197 = vmatpush3.bf16.msra.mxu1 %v9807_v50 }
0x1fa1   : > { %9219 = vmatpush3.bf16.msra.mxu0 %v9808_v18  ;;  %9198 = vmatprep.subr.bf16.mxu1 %v9809_v51 }
0x1fa2   : > { %9220 = vmatprep.subr.bf16.mxu0 %v9810_v0 }
0x1fa4   : > { %9199 = vmatpush3.bf16.msra.mxu1 %v9811_v19 }
0x1fa5   : > { %9221 = vmatpush3.bf16.msra.mxu0 %v9812_v52  ;;  %9228 = vmatprep.subr.bf16.mxu1 %v9813_v11 }
0x1fa6   : > { %9250 = vmatprep.subr.bf16.mxu0 %v9814_v55 }
0x1fa7   : > { %7305 = vmatmul.mubr.bf16.vlgmr.msra.gmra.mrb[120].mxu1 %v11020_v27  ;;  %v9822_v27 = vld [vmem:[%s10110_s6 + $0x7d0] sm:$0xff]  }
0x1fa8   : > { %7346 = vmatmul.mubr.bf16.vlgmr.msra.gmra.mrb[140].mxu0 %v11022_v31  ;;  %9229 = vmatpush3.bf16.msra.mxu1 %v9815_v56  ;;  %v9823_v31 = vld [vmem:[%s10110_s6 + $0x710] sm:$0xff]  }
0x1fa9   : > { %7386 = vmatprep.mubr.bf16.mxu1 %v11040_v15  ;;  %9251 = vmatpush3.bf16.msra.mxu0 %v9816_v58  ;;  %v9831_v15 = vld [vmem:[%s10110_s6 + $0x720] sm:$0xff]  }
0x1faa   : > { %7427 = vmatprep.mubr.bf16.mxu0 %v11042_v17  ;;  %9230 = vmatprep.subr.bf16.mxu1 %v9817_v60  ;;  %v9832_v17 = vld [vmem:[%s10110_s6 + $0x7a0] sm:$0xff]  }
0x1fab   : > { %9252 = vmatprep.subr.bf16.mxu0 %v9818_v61 }
0x1fac   : > { %9231 = vmatpush3.bf16.msra.mxu1 %v9819_v39 }
0x1fad   : > { %9253 = vmatpush3.bf16.msra.mxu0 %v9820_v62  ;;  %9232 = vmatprep.subr.bf16.mxu1 %v9821_v7 }
0x1fae   : > { %9254 = vmatprep.subr.bf16.mxu0 %v9822_v27 }
0x1fb0   : > { %9233 = vmatpush3.bf16.msra.mxu1 %v9823_v31 }
0x1fb1   : > { %9255 = vmatpush3.bf16.msra.mxu0 %v9824_v47  ;;  %9234 = vmatprep.subr.bf16.mxu1 %v9825_v41 }
0x1fb2   : > { %9256 = vmatprep.subr.bf16.mxu0 %v9826_v3 }
0x1fb4   : > { %9235 = vmatpush3.bf16.msra.mxu1 %v9827_v4 }
0x1fb5   : > { %9257 = vmatpush3.bf16.msra.mxu0 %v9828_v8  ;;  %9236 = vmatprep.subr.bf16.mxu1 %v9829_v5 }
0x1fb6   : > { %9258 = vmatprep.subr.bf16.mxu0 %v9830_v9 }
0x1fb8   : > { %9237 = vmatpush3.bf16.msra.mxu1 %v9831_v15 }
0x1fb9   : > { %9259 = vmatpush3.bf16.msra.mxu0 %v9832_v17  ;;  %9238 = vmatprep.subr.bf16.mxu1 %v9833_v14 }
0x1fba   : > { %9260 = vmatprep.subr.bf16.mxu0 %v9834_v25 }
0x1fbc   : > { %9239 = vmatpush3.bf16.msra.mxu1 %v9835_v35 }
0x1fbd   : > { %9261 = vmatpush3.bf16.msra.mxu0 %v9836_v24  ;;  %9240 = vmatprep.subr.bf16.mxu1 %v9837_v34 }
0x1fbe   : > { %9262 = vmatprep.subr.bf16.mxu0 %v9838_v37 }
0x1fc0   : > { %9241 = vmatpush3.bf16.msra.mxu1 %v9839_v23 }
0x1fc1   : > { %9263 = vmatpush3.bf16.msra.mxu0 %v9840_v2  ;;  %9242 = vmatprep.subr.bf16.mxu1 %v9841_v36 }
0x1fc2   : > { %9264 = vmatprep.subr.bf16.mxu0 %v9842_v57 }
0x1fc4   : > { %9243 = vmatpush3.bf16.msra.mxu1 %v9843_v38 }
0x1fc5   : > { %9265 = vmatpush3.bf16.msra.mxu0 %v9844_v46 }
0x1fc7   : > { %7387 = vmatmul.mubr.bf16.vlgmr.msra.gmra.mrb[124].mxu1 %v11036_v13 }
0x1fc8   : > { %7428 = vmatmul.mubr.bf16.vlgmr.msra.gmra.mrb[144].mxu0 %v11038_v1 }
0x203a   : > { %v9112_v26 = vpop.f32.mrb[112].mxu1  ;;  %v9134_v43 = vpop.f32.mrb[132].mxu0 }
0x203b   : > { %v9113_v53 = vpop.f32.mrb[113].mxu1  ;;  %v9135_v54 = vpop.f32.mrb[133].mxu0 }
0x203c   : > { %v9114_v59 = vadd.f32 %v9113_v53, %v9112_v26  ;;  %v9136_v16 = vadd.f32 %v9135_v54, %v9134_v43  ;;  %v9115_v63 = vpop.f32.mrb[114].mxu1  ;;  %v9137_v30 = vpop.f32.mrb[134].mxu0 }
0x203d   : > { %v9116_v6 = vpop.f32.mrb[115].mxu1  ;;  %v9138_v32 = vpop.f32.mrb[135].mxu0 }
0x203e   : > { %v7143_v28 = vadd.f32 %v9114_v59, %v8681_v29  ;;  %v9117_v33 = vadd.f32 %v9116_v6, %v9115_v63  ;;  %v9139_v40 = vadd.f32 %v9138_v32, %v9137_v30 }
0x2040   : > { %v7184_v42 = vadd.f32 %v9136_v16, %v7143_v28  ;;  %v7146_v21 = vadd.f32 %v9117_v33, %v8681_v29 }
0x2042   : > { %v7187_v44 = vadd.f32 %v9139_v40, %v7146_v21 }
0x205a   : > { %v9156_v13 = vpop.f32.mrb[116].mxu1  ;;  %v9178_v45 = vpop.f32.mrb[136].mxu0 }
0x205b   : > { %v9157_v1 = vpop.f32.mrb[117].mxu1  ;;  %v9179_v48 = vpop.f32.mrb[137].mxu0 }
0x205c   : > { %v9158_v49 = vadd.f32 %v9157_v1, %v9156_v13  ;;  %v9180_v50 = vadd.f32 %v9179_v48, %v9178_v45  ;;  %v9159_v18 = vpop.f32.mrb[118].mxu1  ;;  %v9181_v51 = vpop.f32.mrb[138].mxu0 }
0x205d   : > { %v9160_v0 = vpop.f32.mrb[119].mxu1  ;;  %v9182_v19 = vpop.f32.mrb[139].mxu0 }
0x205e   : > { %v7225_v52 = vadd.f32 %v9158_v49, %v7184_v42  ;;  %v9161_v11 = vadd.f32 %v9160_v0, %v9159_v18  ;;  %v9183_v55 = vadd.f32 %v9182_v19, %v9181_v51  ;;  %v8812_v51 = vld [vmem:[%s10674_s29 + $0x1] ss:$0 sm:$0xff]  ;;  %s1028_s29 = scalar_lea.vmem %s11220_s18, %s10156_s12 }
0x2060   : > { %v7266_v56 = vadd.f32 %v9180_v50, %v7225_v52  ;;  %v7228_v58 = vadd.f32 %v9161_v11, %v7187_v44  ;;  %v8813_v52 = vld [vmem:[%s10681_s7 + $0x1] ss:$0 sm:$0xff] }
0x2062   : > { %v7269_v60 = vadd.f32 %v9183_v55, %v7228_v58 }
0x207a   : > { %v9200_v61 = vpop.f32.mrb[120].mxu1 }
0x207b   : > { %v9222_v39 = vpop.f32.mrb[140].mxu0  ;;  %v9201_v62 = vpop.f32.mrb[121].mxu1 }
0x207c   : > { %v9202_v7 = vadd.f32 %v9201_v62, %v9200_v61  ;;  %v9223_v27 = vpop.f32.mrb[141].mxu0  ;;  %v9203_v31 = vpop.f32.mrb[122].mxu1 }
0x207d   : > { %v9224_v47 = vadd.f32 %v9223_v27, %v9222_v39  ;;  %v9225_v41 = vpop.f32.mrb[142].mxu0  ;;  %v9204_v3 = vpop.f32.mrb[123].mxu1 }
0x207e   : > { %v7307_v4 = vadd.f32 %v9202_v7, %v7266_v56  ;;  %v9205_v8 = vadd.f32 %v9204_v3, %v9203_v31  ;;  %v9226_v5 = vpop.f32.mrb[143].mxu0 }
0x207f   : > { %v9227_v9 = vadd.f32 %v9226_v5, %v9225_v41 }
0x2080   : > { %v7348_v15 = vadd.f32 %v9224_v47, %v7307_v4  ;;  %v7310_v17 = vadd.f32 %v9205_v8, %v7269_v60 }
0x2082   : > { %v7351_v14 = vadd.f32 %v9227_v9, %v7310_v17  ;;  %v9845_v9 = vld [vmem:[%s10137_s25 + $0x40] sm:$0xff]   ;;  %v9847_v17 = vld [vmem:[%s10137_s25 + $0x48] sm:$0xff]  }
0x2083   : > { %9272 = vmatprep.subr.bf16.mxu1 %v9845_v9 }
0x209a   : > { %v9244_v25 = vpop.f32.mrb[124].mxu1 }
0x209b   : > { %v9266_v35 = vpop.f32.mrb[144].mxu0  ;;  %v9245_v24 = vpop.f32.mrb[125].mxu1 }
0x209c   : > { %v9246_v34 = vadd.f32 %v9245_v24, %v9244_v25  ;;  %v9267_v37 = vpop.f32.mrb[145].mxu0  ;;  %v9247_v23 = vpop.f32.mrb[126].mxu1  ;;  %v9849_v25 = vld [vmem:[%s10137_s25 + $0x50] sm:$0xff]  }
0x209d   : > { %v9268_v2 = vadd.f32 %v9267_v37, %v9266_v35  ;;  %v9269_v36 = vpop.f32.mrb[146].mxu0  ;;  %v9248_v57 = vpop.f32.mrb[127].mxu1  ;;  %v9850_v35 = vld [vmem:[%s10137_s25 + $0x10] sm:$0xff]  }
0x209e   : > { %v7389_v38 = vadd.f32 %v9246_v34, %v7348_v15  ;;  %v9249_v46 = vadd.f32 %v9248_v57, %v9247_v23  ;;  %v9270_v26 = vpop.f32.mrb[147].mxu0  ;;  %v9846_v15 = vld [vmem:[%s10137_s25] sm:$0xff]   ;;  %v9851_v57 = vld [vmem:[%s10137_s25 + $0x58] sm:$0xff]  }
0x209f   : > { %v9271_v43 = vadd.f32 %v9270_v26, %v9269_v36  ;;  %9273 = vmatpush3.bf16.msra.mxu1 %v9846_v15  ;;  %v8814_v26 = vld [vmem:[%s1021_s26] ss:$0 sm:$0xff]  ;;  %s11285_s26 = sld [smem:[#allocation12_spill]] }
0x20a0   : > { %v7430_v29 = vadd.f32 %v9268_v2, %v7389_v38  ;;  %v7392_v53 = vadd.f32 %v9249_v46, %v7351_v14  ;;  %v9848_v14 = vld [vmem:[%s10137_s25 + $0x8] sm:$0xff]   ;;  %9274 = vmatprep.subr.bf16.mxu1 %v9847_v17  ;;  %v9852_v38 = vld [vmem:[%s10137_s25 + $0x18] sm:$0xff]  }
0x20a2   : > { %v7433_v54 = vadd.f32 %v9271_v43, %v7392_v53  ;;  %v7436_v59 = vadd.f32 %v7430_v29, %v10892_v10  ;;  %v9853_v43 = vld [vmem:[%s10137_s25 + $0x60] sm:$0xff]  }
0x20a3   : > { %9275 = vmatpush3.bf16.msra.mxu1 %v9848_v14 }
0x20a4   : > { %v7442_v16 = vsel %vm1137_vm2, %v7436_v59, 0.0  ;;  %v7437_v63 = vadd.f32 %v7433_v54, %v10894_v12  ;;  %9276 = vmatprep.subr.bf16.mxu1 %v9849_v25  ;;  %v8815_v54 = vld [vmem:[%s1024_s22] ss:$0 sm:$0xff] }
0x20a5   : > { %7443 = vadd.xlane.f32.xlu1 %v7442_v16  ;;  %s1044_s4 = scalar_lea.vmem %s11285_s26, %s10156_s12 }
0x20a6   : > { %v7445_v30 = vsel %vm1137_vm2, %v7437_v63, 0.0 }
0x20a7   : > { %7446 = vadd.xlane.f32.xlu0 %v7445_v30  ;;  %9277 = vmatpush3.bf16.msra.mxu1 %v9850_v35 }
0x20a8   : > { %9278 = vmatprep.subr.bf16.mxu1 %v9851_v57 }
0x20ab   : > { %9279 = vmatpush3.bf16.msra.mxu1 %v9852_v38 }
0x20ac   : > { %9280 = vmatprep.subr.bf16.mxu1 %v9853_v43  ;;  %v8816_v43 = vld [vmem:[%s1040_s1] ss:$0 sm:$0xff] }
0x2132   : > { %v7444_v6 = vpop.xlane.xlu1 %7443 }
0x2133   : > { %v7448_v32 = vmul.f32 0.03125, %v7444_v6 }
0x2134   : > { %v7447_v28 = vpop.xlane.xlu0 %7446 }
0x2135   : > { %v7450_v33 = vsub.f32 %v7436_v59, %v7448_v32  ;;  %v7449_v40 = vmul.f32 0.03125, %v7447_v28  ;;  %v9855_v32 = vld [vmem:[%s10137_s25 + $0x68] sm:$0xff]  }
0x2137   : > { %v7451_v42 = vsub.f32 %v7437_v63, %v7449_v40  ;;  %v7452_v21 = vmul.f32 %v7450_v33, %v7450_v33  ;;  %v9854_v63 = vld [vmem:[%s10137_s25 + $0x20] sm:$0xff]   ;;  %v9856_v40 = vld [vmem:[%s10137_s25 + $0x28] sm:$0xff]  }
0x2138   : > { %9281 = vmatpush3.bf16.msra.mxu1 %v9854_v63 }
0x2139   : > { %v7454_v44 = vsel %vm1137_vm2, %v7452_v21, 0.0  ;;  %v7453_v13 = vmul.f32 %v7451_v42, %v7451_v42  ;;  %9282 = vmatprep.subr.bf16.mxu1 %v9855_v32 }
0x213a   : > { %7455 = vadd.xlane.f32.xlu1 %v7454_v44 }
0x213b   : > { %v7457_v10 = vsel %vm1137_vm2, %v7453_v13, 0.0 }
0x213c   : > { %7458 = vadd.xlane.f32.xlu0 %v7457_v10  ;;  %9283 = vmatpush3.bf16.msra.mxu1 %v9856_v40 }
0x21c7   : > { %v7456_v12 = vpop.xlane.xlu1 %7455 }
0x21c8   : > { %v7460_v45 = vmul.f32 0.03125, %v7456_v12 }
0x21c9   : > { %v7459_v1 = vpop.xlane.xlu0 %7458 }
0x21ca   : > { %v7462_v48 = vadd.f32 1e-05, %v7460_v45  ;;  %v7461_v49 = vmul.f32 0.03125, %v7459_v1 }
0x21cc   : > { %9937 = vrsqrt.f32 %v7462_v48  ;;  %v7463_v50 = vadd.f32 1e-05, %v7461_v49 }
0x21ce   : > { %9939 = vrsqrt.f32 %v7463_v50 }
0x21d6   : > { %v9938_v18 = vpop.eup %9937 }
0x21d7   : > { %v7466_v0 = vmul.f32 %v9938_v18, %v7450_v33  ;;  %v9858_v18 = vld [vmem:[%s10137_s25 + $0x30] sm:$0xff]  }
0x21d8   : > { %v9940_v19 = vpop.eup %9939 }
0x21d9   : > { %v7474_v11 = vmul.f32 %v8812_v51, %v7466_v0  ;;  %v7467_v55 = vmul.f32 %v9940_v19, %v7451_v42  ;;  %v9857_v42 = vld [vmem:[%s10137_s25 + $0x70] sm:$0xff]  }
0x21da   : > { %9284 = vmatprep.subr.bf16.mxu1 %v9857_v42 }
0x21db   : > { %v7482_v56 = vadd.f32 %v8813_v52, %v7474_v11  ;;  %v7475_v58 = vmul.f32 %v8812_v51, %v7467_v55  ;;  %9285 = vmatpush3.bf16.msra.mxu1 %v9858_v18  ;;  %v9859_v11 = vld [vmem:[%s10137_s25 + $0x78] sm:$0xff]  }
0x21dc   : > { %9286 = vmatprep.subr.bf16.mxu1 %v9859_v11 }
0x21dd   : > { %v7486_v60 = vsel %vm1137_vm2, %v7482_v56, 0.0  ;;  %v7483_v61 = vadd.f32 %v8813_v52, %v7475_v58  ;;  %v9860_v58 = vld [vmem:[%s10137_s25 + $0x38] sm:$0xff]  }
0x21de   : > { %7487 = vadd.xlane.f32.xlu1 %v7486_v60 }
0x21df   : > { %v7489_v39 = vsel %vm1137_vm2, %v7483_v61, 0.0  ;;  %9287 = vmatpush3.bf16.msra.mxu1 %v9860_v58 }
0x21e0   : > { %7490 = vadd.xlane.f32.xlu0 %v7489_v39 }
0x226b   : > { %v7488_v62 = vpop.xlane.xlu1 %7487 }
0x226c   : > { %v7492_v7 = vmul.f32 0.03125, %v7488_v62 }
0x226d   : > { %v7491_v27 = vpop.xlane.xlu0 %7490 }
0x226e   : > { %v7494_v31 = vsub.f32 %v7482_v56, %v7492_v7  ;;  %v7493_v47 = vmul.f32 0.03125, %v7491_v27 }
0x2270   : > { %v7495_v41 = vsub.f32 %v7483_v61, %v7493_v47  ;;  %v7496_v3 = vmul.f32 %v7494_v31, %v7494_v31  ;;  %v7581_v47 = vld [vmem:[%s1028_s29] sm:$0x3] }
0x2272   : > { %v7498_v4 = vsel %vm1137_vm2, %v7496_v3, 0.0  ;;  %v7497_v8 = vmul.f32 %v7495_v41, %v7495_v41  ;;  %v7590_v3 = vrot.slane %v7581_v47, %v10484_v22 }
0x2273   : > { %7499 = vadd.xlane.f32.xlu1 %v7498_v4 }
0x2274   : > { %v7501_v5 = vsel %vm1137_vm2, %v7497_v8, 0.0 }
0x2275   : > { %7502 = vadd.xlane.f32.xlu0 %v7501_v5 }
0x2300   : > { %v7500_v24 = vpop.xlane.xlu1 %7499 }
0x2301   : > { %v7504_v34 = vmul.f32 0.03125, %v7500_v24  ;;  %v7586_v24 = vrot.slane %v7581_v47, %v10479_v20 }
0x2302   : > { %v7503_v37 = vpop.xlane.xlu0 %7502 }
0x2303   : > { %v7506_v23 = vadd.f32 1e-05, %v7504_v34  ;;  %v7505_v2 = vmul.f32 0.03125, %v7503_v37 }
0x2305   : > { %9941 = vrsqrt.f32 %v7506_v23  ;;  %v7507_v36 = vadd.f32 1e-05, %v7505_v2 }
0x2307   : > { %9943 = vrsqrt.f32 %v7507_v36 }
0x230f   : > { %v9942_v46 = vpop.eup %9941 }
0x2310   : > { %v7510_v29 = vmul.f32 %v9942_v46, %v7494_v31 }
0x2311   : > { %v9944_v53 = vpop.eup %9943 }
0x2312   : > { %v7518_v59 = vmul.f32 %v8814_v26, %v7510_v29  ;;  %v7511_v16 = vmul.f32 %v9944_v53, %v7495_v41  ;;  %v7595_v41 = vld [vmem:[%s1032_s30] sm:$0x3] }
0x2313   : > { %v7604_v15 = vrot.slane %v7595_v41, %v10484_v22  ;;  %v7600_v2 = vrot.slane %v7595_v41, %v10479_v20 }
0x2314   : > { %v7526_v30 = vadd.f32 %v8815_v54, %v7518_v59  ;;  %v7519_v6 = vmul.f32 %v8814_v26, %v7511_v16 }
0x2316   : > { %v7527_v28 = vadd.f32 %v8815_v54, %v7519_v6  ;;  %v7534_v33 = vrot.slane %v7526_v30, 1  ;;  %v7555_v44 = vrot.slane %v7526_v30, 5  ;;  %v7551_v1 = vrot.slane %v7526_v30, 4 }
0x2317   : > { %v7567_v49 = vrot.slane %v7526_v30, 7  ;;  %v7561_v52 = vrot.slane %v7526_v30, 6  ;;  %v7539_v60 = vrot.slane %v7526_v30, 2  ;;  %v7545_v62 = vrot.slane %v7526_v30, 3 }
0x2318   : > { %v7535_v21 = vsel %vm7531_vm6, %v7527_v28, %v7534_v33  ;;  %v7556_v13 = vrot.slane %v7527_v28, 4  ;;  %v7568_v10 = vrot.slane %v7527_v28, 6  ;;  %v7530_v12 = vrot.slane %v7527_v28, 7 }
0x2319   : > { %7536 = vrot.lane.b32.xlu0 %v7535_v21, %s9970_s3  ;;  %v7552_v45 = vrot.slane %v7527_v28, 3  ;;  %v7562_v50 = vrot.slane %v7527_v28, 5  ;;  %v7540_v56 = vrot.slane %v7527_v28, 1  ;;  %v7546_v39 = vrot.slane %v7527_v28, 2 }
0x231a   : > { %v7557_v48 = vsel %vm7531_vm6, %v7556_v13, %v7555_v44  ;;  %v7532_v51 = vsel %vm7531_vm6, %v7530_v12, %v7526_v30  ;;  %v7569_v19 = vsel %vm7531_vm6, %v7568_v10, %v7567_v49 }
0x231b   : > { %7558 = vrot.lane.b32.xlu1 %v7557_v48, %s9970_s3  ;;  %v7553_v0 = vsel %vm7531_vm6, %v7552_v45, %v7551_v1  ;;  %v7563_v55 = vsel %vm7531_vm6, %v7562_v50, %v7561_v52  ;;  %v7541_v61 = vsel %vm7531_vm6, %v7540_v56, %v7539_v60  ;;  %v7547_v7 = vsel %vm7531_vm6, %v7546_v39, %v7545_v62 }
0x231d   : > { %7570 = vrot.lane.b32.xlu0 %v7569_v19, %s11271_s24 }
0x231f   : > { %7564 = vrot.lane.b32.xlu1 %v7563_v55, %s11272_s5 }
0x2323   : > { %7542 = vrot.lane.b32.xlu1 %v7541_v61, %s11272_s5 }
0x2327   : > { %7548 = vrot.lane.b32.xlu1 %v7547_v7, %s11271_s24 }
0x238b   : > { %v7537_v27 = vpop.permute.xlu0 %7536 }
0x238c   : > { %v7573_v34 = vsel %vm1137_vm2, %v7532_v51, %v7537_v27 }
0x238d   : > { %v7559_v31 = vpop.permute.xlu1 %7558 }
0x238e   : > { %v7578_v4 = vsel %vm1137_vm2, %v7553_v0, %v7559_v31 }
0x238f   : > { %v7571_v5 = vpop.permute.xlu0 %7570 }
0x2391   : > { %v7565_v8 = vpop.permute.xlu1 %7564 }
0x2392   : > { %v7579_v9 = vsel %vm7574_vm7, %v7578_v4, %v7565_v8 }
0x2393   : > { %v7580_v17 = vsel %vm7576_vm8, %v7579_v9, %v7571_v5 }
0x2394   : > { %v7594_v14 = vmul.f32 %v7590_v3, %v7580_v17 }
0x2395   : > { %v7543_v25 = vpop.permute.xlu1 %7542 }
0x2396   : > { %v7608_v35 = vadd.f32 %v7604_v15, %v7594_v14  ;;  %v7575_v23 = vsel %vm7574_vm7, %v7573_v34, %v7543_v25 }
0x2398   : > { %v7610_v37 = vpack.c.bf16 %v7608_v35, %v7608_v35 }
0x2399   : > { %v7549_v36 = vpop.permute.xlu1 %7548 }
0x239a   : > { %v7577_v57 = vsel %vm7576_vm8, %v7575_v23, %v7549_v36  ;;  %7778 = vmatprep.mubr.bf16.mxu1 %v7610_v37 }
0x239b   : > { %v7593_v22 = vmul.f32 %v7586_v24, %v7577_v57 }
0x239d   : > { %v7607_v38 = vadd.f32 %v7600_v2, %v7593_v22 }
0x239f   : > { %v7609_v46 = vpack.c.bf16 %v7607_v38, %v7607_v38 }
0x23a1   : > { %7779 = vmatmul.mubr.bf16.vlgmr.msra.gmra.mrb[128].mxu1 %v7609_v46 }
0x2474   : > { %v9288_v26 = vpop.f32.mrb[128].mxu1 }
0x2475   : > { %v9289_v29 = vpop.f32.mrb[129].mxu1 }
0x2476   : > { %v9290_v53 = vadd.f32 %v9289_v29, %v9288_v26  ;;  %v9291_v54 = vpop.f32.mrb[130].mxu1 }
0x2477   : > { %v9292_v20 = vpop.f32.mrb[131].mxu1 }
0x2478   : > { %v7781_v59 = vadd.f32 %v9290_v53, %v8816_v43 }
0x247a   : > { %7787 = vst.msk [vmem:[%s1044_s4] sm:$0x3] %vm7786_vm9, %v7781_v59 }
0x247b PF: > { %s11286_s23 = sld [smem:[#allocation2_spill]] }
0x2481   : > { %s32_s3 = sadd.s32 1, %s11286_s23  }
0x2482   : > { %p29_p4 = scmp.ge.s32.totalorder %s32_s3, 4  }
0x2484   :  { %31 = sbr.rel (!%p29_p4) target bundleno = 11 (0xb), region = 213 }

</bundles_post_ra>
